<compile_context>
chip_gen: v6e
topology: v6e:2x2x1
jax: 0.10.0
libtpu: 0.0.40
codegen_flags: <defaults>
</compile_context>

<pallas_src>
import functools

import jax
import jax.numpy as jnp
import numpy as np
from jax import lax
from jax.experimental import pallas as pl
from jax.experimental.pallas import tpu as pltpu

EMB_INPUT = 11
EMB_SIZE = 32
OUT_SIZE = 5
HID_RAT = EMB_SIZE // 2          # 16: per-direction hidden size of rational LSTM
BI_HID = 2 * HID_RAT             # 32: packed fwd+bwd hidden width
GATE_W = 4 * BI_HID              # 128: packed gate width (lane dense)

VMEM_SPEC = pl.BlockSpec(memory_space=pltpu.MemorySpace.VMEM)


# --------------------------- fused Pallas kernel ------------------------------

def _fused_forward_kernel(seq, bsz,
                          e_ref,
                          wih0_ref, whh0_ref, b0_ref,
                          wih1_ref, whh1_ref, b1_ref,
                          gslw_ref, gslb_ref, gn_ref,
                          wihp_ref, whhp_ref, bp_ref,
                          outw_ref, outb_ref,
                          logits_ref, z_ref):
    f32 = jnp.float32

    e = e_ref[...]                                   # (seq*bsz, 32), time-major

    # Static lane mask: in the packed 128-wide gate layout, columns with
    # (col % 32) < 16 belong to the forward direction, the rest to backward.
    lane = lax.broadcasted_iota(jnp.int32, (bsz, GATE_W), 1)
    fwd_mask = (lane % BI_HID) < HID_RAT

    def bidir_layer(inp, wih, whh, bias):
        # Hoisted input projection + bias for all timesteps, both directions.
        gx = jnp.dot(inp, wih, preferred_element_type=f32) + bias      # (n, 128)
        h = jnp.zeros((bsz, BI_HID), f32)
        c = jnp.zeros((bsz, BI_HID), f32)
        hs = []
        for s in range(seq):                                           # unrolled
            gxf = gx[s * bsz:(s + 1) * bsz]                 # fwd uses x[s]
            gxb = gx[(seq - 1 - s) * bsz:(seq - s) * bsz]   # bwd uses x[seq-1-s]
            gates = (jnp.where(fwd_mask, gxf, gxb)
                     + jnp.dot(h, whh, preferred_element_type=f32))    # (bsz,128)
            i = jax.nn.sigmoid(gates[:, 0 * BI_HID:1 * BI_HID])
            f = jax.nn.sigmoid(gates[:, 1 * BI_HID:2 * BI_HID])
            g = jnp.tanh(gates[:, 2 * BI_HID:3 * BI_HID])
            o = jax.nn.sigmoid(gates[:, 3 * BI_HID:4 * BI_HID])
            c = f * c + i * g
            h = o * jnp.tanh(c)
            hs.append(h)
        # Time-align the bidirectional output: out[t] = [h_fwd(t) | h_bwd(t)];
        # the backward state for time t was produced at loop step seq-1-t.
        rows = [jnp.concatenate([hs[t][:, :HID_RAT],
                                 hs[seq - 1 - t][:, HID_RAT:]], axis=1)
                for t in range(seq)]
        return jnp.concatenate(rows, axis=0)                           # (n, 32)

    h1 = bidir_layer(e, wih0_ref[...], whh0_ref[...], b0_ref[...])
    h2 = bidir_layer(h1, wih1_ref[...], whh1_ref[...], b1_ref[...])

    # GumbelSelectLayer: Linear(32, 2) + gumbel_softmax(tau=1, hard=False),
    # take prob of class 1.  Softmax over 2 classes == sigmoid(y1 - y0).
    y = (jnp.dot(h2, gslw_ref[...], preferred_element_type=f32)
         + gslb_ref[...] + gn_ref[...])                                # (n, 2)
    z = jax.nn.sigmoid(y[:, 1:2] - y[:, 0:1])                          # (n, 1)
    z_ref[...] = z

    # TODO(synk): the literal reference line `h.unsqueeze(-1).repeat(1,1,E)`
    # raises for 3-D h in PyTorch; implementing the clearly intended z-mask.
    em = e * z                                                         # (n, 32)

    # Prediction LSTM (hidden 32 -> already 128-lane-dense gates),
    # input projection hoisted out of the unrolled recurrence.
    gp = (jnp.dot(em, wihp_ref[...], preferred_element_type=f32)
          + bp_ref[...])                                               # (n, 128)
    whp = whhp_ref[...]
    H = EMB_SIZE
    hp = jnp.zeros((bsz, H), f32)
    cp = jnp.zeros((bsz, H), f32)
    for t in range(seq):                                               # unrolled
        gates = gp[t * bsz:(t + 1) * bsz] + jnp.dot(
            hp, whp, preferred_element_type=f32)
        i = jax.nn.sigmoid(gates[:, 0 * H:1 * H])
        f = jax.nn.sigmoid(gates[:, 1 * H:2 * H])
        g = jnp.tanh(gates[:, 2 * H:3 * H])
        o = jax.nn.sigmoid(gates[:, 3 * H:4 * H])
        cp = f * cp + i * g
        hp = o * jnp.tanh(cp)

    logits_ref[...] = (jnp.dot(hp, outw_ref[...], preferred_element_type=f32)
                       + outb_ref[...])


# --------------------------- wrapper ------------------------------------------

def fused_forward(packed, x, gnoise):
    seq, bsz = x.shape
    # Embedding gather (tiny XLA glue) feeding the single fused kernel.
    e = packed['embedding'][x].reshape(seq * bsz, EMB_SIZE)
    kernel = functools.partial(_fused_forward_kernel, seq, bsz)
    logits, z_flat = pl.pallas_call(
        kernel,
        out_shape=(jax.ShapeDtypeStruct((bsz, OUT_SIZE), jnp.float32),
                   jax.ShapeDtypeStruct((seq * bsz, 1), jnp.float32)),
        in_specs=[VMEM_SPEC] * 15,
        out_specs=(VMEM_SPEC, VMEM_SPEC),
    )(e,
      *packed['rat0'], *packed['rat1'],
      packed['gsl_w'], packed['gsl_b'], gnoise,
      *packed['pred'],
      packed['out_w'], packed['out_b'])
    return {'logits': logits, 'z': z_flat.reshape(seq, bsz)}


@jax.jit
def forward(packed, x, gumbel_key):
    seq, bsz = x.shape
    gnoise = jax.random.gumbel(gumbel_key, (seq * bsz, 2), jnp.float32)
    return fused_forward(packed, x, gnoise)


# --------------------------- parameters ---------------------------------------

def _uniform(key, shape, bound):
    return jax.random.uniform(key, shape, jnp.float32, -bound, bound)


def init_params(key):
    """Raw per-direction parameters; weights pre-transposed to (in, 4*hid)
    with PyTorch gate order (i, f, g, o) and b_ih + b_hh folded."""
    keys = iter(jax.random.split(key, 32))
    nxt = lambda: next(keys)

    def lstm_dir(in_dim, hid):
        bnd = hid ** -0.5
        w_ih = _uniform(nxt(), (in_dim, 4 * hid), bnd)
        w_hh = _uniform(nxt(), (hid, 4 * hid), bnd)
        bias = _uniform(nxt(), (1, 4 * hid), bnd) + _uniform(nxt(), (1, 4 * hid), bnd)
        return (w_ih, w_hh, bias)

    params = {'embedding': jax.random.normal(nxt(), (EMB_INPUT, EMB_SIZE),
                                             jnp.float32),
              'rational': []}
    for _ in range(2):
        params['rational'].append({'fwd': lstm_dir(EMB_SIZE, HID_RAT),
                                   'bwd': lstm_dir(EMB_SIZE, HID_RAT)})
    params['pred'] = lstm_dir(EMB_SIZE, EMB_SIZE)
    lin_bnd = EMB_SIZE ** -0.5
    params['gsl_w'] = _uniform(nxt(), (EMB_SIZE, 2), lin_bnd)
    params['gsl_b'] = _uniform(nxt(), (1, 2), lin_bnd)
    params['out_w'] = _uniform(nxt(), (EMB_SIZE, OUT_SIZE), lin_bnd)
    params['out_b'] = _uniform(nxt(), (1, OUT_SIZE), lin_bnd)
    return params


def _pack_bidir(fwd, bwd, hid):
    """Pack fwd/bwd weights of one bidirectional layer so the per-step gate
    matmul is a single lane-dense (2*hid) x (8*hid) block-diagonal product.
    Column layout per gate k in (i,f,g,o): [fwd gate k (hid) | bwd gate k (hid)]."""
    wih_f, whh_f, b_f = fwd
    wih_b, whh_b, b_b = bwd
    z = jnp.zeros((hid, hid), jnp.float32)
    ih_cols, hh_f_cols, hh_b_cols, b_cols = [], [], [], []
    for k in range(4):
        sl = slice(k * hid, (k + 1) * hid)
        ih_cols.append(jnp.concatenate([wih_f[:, sl], wih_b[:, sl]], axis=1))
        hh_f_cols.append(jnp.concatenate([whh_f[:, sl], z], axis=1))
        hh_b_cols.append(jnp.concatenate([z, whh_b[:, sl]], axis=1))
        b_cols.append(jnp.concatenate([b_f[:, sl], b_b[:, sl]], axis=1))
    wih_c = jnp.concatenate(ih_cols, axis=1)                         # (32, 128)
    whh_c = jnp.concatenate([jnp.concatenate(hh_f_cols, axis=1),
                             jnp.concatenate(hh_b_cols, axis=1)], axis=0)  # (32,128)
    b_c = jnp.concatenate(b_cols, axis=1)                            # (1, 128)
    return (wih_c, whh_c, b_c)


def pack_params(params):
    return {
        'embedding': params['embedding'],
        'rat0': _pack_bidir(params['rational'][0]['fwd'],
                            params['rational'][0]['bwd'], HID_RAT),
        'rat1': _pack_bidir(params['rational'][1]['fwd'],
                            params['rational'][1]['bwd'], HID_RAT),
        'pred': params['pred'],
        'gsl_w': params['gsl_w'], 'gsl_b': params['gsl_b'],
        'out_w': params['out_w'], 'out_b': params['out_b'],
    }


# --------------------------- pure-JAX reference --------------------------------

def reference_forward(params, x, gumbel_key):
    """Non-Pallas reference with unpacked per-direction weights."""
    HI = lax.Precision.HIGHEST
    seq, bsz = x.shape

    def run_lstm(xs, p, hid):
        w_ih, w_hh, b = p

        def step(carry, x_t):
            h, c = carry
            gates = (jnp.dot(x_t, w_ih, precision=HI)
                     + jnp.dot(h, w_hh, precision=HI) + b)
            i = jax.nn.sigmoid(gates[:, :hid])
            f = jax.nn.sigmoid(gates[:, hid:2 * hid])
            g = jnp.tanh(gates[:, 2 * hid:3 * hid])
            o = jax.nn.sigmoid(gates[:, 3 * hid:])
            c = f * c + i * g
            h = o * jnp.tanh(c)
            return (h, c), h

        h0 = jnp.zeros((xs.shape[1], hid), jnp.float32)
        (h_n, _), hs = lax.scan(step, (h0, h0), xs)
        return hs, h_n

    e = params['embedding'][x]                                   # (seq, bsz, 32)
    inp = e
    for layer in range(2):
        hs_f, _ = run_lstm(inp, params['rational'][layer]['fwd'], HID_RAT)
        hs_b, _ = run_lstm(inp[::-1], params['rational'][layer]['bwd'], HID_RAT)
        inp = jnp.concatenate([hs_f, hs_b[::-1]], axis=-1)
    h = inp
    gnoise = jax.random.gumbel(gumbel_key, (seq * bsz, 2),
                               jnp.float32).reshape(seq, bsz, 2)
    logits2 = jnp.dot(h, params['gsl_w'], precision=HI) + params['gsl_b'] + gnoise
    z = jax.nn.softmax(logits2, axis=-1)[..., 1]
    e_masked = e * z[..., None]
    _, h_n = run_lstm(e_masked, params['pred'], EMB_SIZE)
    out = jnp.dot(h_n, params['out_w'], precision=HI) + params['out_b']
    return {'logits': out, 'z': z}


# --------------------------- main ----------------------------------------------

if __name__ == "__main__":
    key = jax.random.PRNGKey(0)
    k_param, k_x, k_gumbel = jax.random.split(key, 3)

    params = init_params(k_param)
    packed = pack_params(params)

    seq, batch = 8, 2
    x = jax.random.randint(k_x, (seq, batch), 0, EMB_INPUT, dtype=jnp.int32)

    out = forward(packed, x, k_gumbel)
    out = jax.block_until_ready(out)

    assert out['logits'].shape == (batch, OUT_SIZE)
    assert out['z'].shape == (seq, batch)
    assert bool(jnp.all(jnp.isfinite(out['logits'])))
    assert bool(jnp.all((out['z'] >= 0.0) & (out['z'] <= 1.0)))

    # Cross-check the fused Pallas kernel against the pure-JAX reference.
    ref = reference_forward(params, x, k_gumbel)
    np.testing.assert_allclose(np.asarray(out['logits']),
                               np.asarray(ref['logits']), rtol=5e-3, atol=5e-3)
    np.testing.assert_allclose(np.asarray(out['z']),
                               np.asarray(ref['z']), rtol=5e-3, atol=5e-3)

    print("KERNEL_OK")
</pallas_src>

<mosaic_0001>
module attributes {stable_mosaic.version = 11 : i64} {
  func.func @_fused_forward_kernel(%arg0: memref<16x32xf32, #tpu.memory_space<vmem>>, %arg1: memref<32x128xf32, #tpu.memory_space<vmem>>, %arg2: memref<32x128xf32, #tpu.memory_space<vmem>>, %arg3: memref<1x128xf32, #tpu.memory_space<vmem>>, %arg4: memref<32x128xf32, #tpu.memory_space<vmem>>, %arg5: memref<32x128xf32, #tpu.memory_space<vmem>>, %arg6: memref<1x128xf32, #tpu.memory_space<vmem>>, %arg7: memref<32x2xf32, #tpu.memory_space<vmem>>, %arg8: memref<1x2xf32, #tpu.memory_space<vmem>>, %arg9: memref<16x2xf32, #tpu.memory_space<vmem>>, %arg10: memref<32x128xf32, #tpu.memory_space<vmem>>, %arg11: memref<32x128xf32, #tpu.memory_space<vmem>>, %arg12: memref<1x128xf32, #tpu.memory_space<vmem>>, %arg13: memref<32x5xf32, #tpu.memory_space<vmem>>, %arg14: memref<1x5xf32, #tpu.memory_space<vmem>>, %arg15: memref<2x5xf32, #tpu.memory_space<vmem>>, %arg16: memref<16x1xf32, #tpu.memory_space<vmem>>) attributes {dimension_semantics = [], scalar_prefetch = 0 : i64, scratch_operands = 0 : i64, tpu.core_type = #tpu.core_type<tc>} {
    %c0 = arith.constant 0 : index
    %c0_0 = arith.constant 0 : index
    %0 = vector.load %arg0[%c0, %c0_0] : memref<16x32xf32, #tpu.memory_space<vmem>>, vector<16x32xf32>
    %1 = tpu.iota {dimensions = array<i32: 1>} : vector<2x128xi32>
    %c32_i32 = arith.constant 32 : i32
    %c0_i32 = arith.constant 0 : i32
    %2 = arith.cmpi eq, %c32_i32, %c0_i32 : i32
    %c1_i32 = arith.constant 1 : i32
    %3 = arith.select %2, %c1_i32, %c32_i32 : i32
    %4 = vector.broadcast %3 : i32 to vector<2x128xi32>
    %5 = arith.remsi %1, %4 : vector<2x128xi32>
    %c0_i32_1 = arith.constant 0 : i32
    %6 = vector.broadcast %c0_i32_1 : i32 to vector<2x128xi32>
    %7 = arith.cmpi ne, %5, %6 : vector<2x128xi32>
    %c0_i32_2 = arith.constant 0 : i32
    %8 = vector.broadcast %c0_i32_2 : i32 to vector<2x128xi32>
    %9 = arith.cmpi slt, %5, %8 : vector<2x128xi32>
    %c0_i32_3 = arith.constant 0 : i32
    %10 = arith.cmpi slt, %3, %c0_i32_3 : i32
    %11 = vector.broadcast %10 : i1 to vector<2x128xi1>
    %12 = vector.broadcast %11 : vector<2x128xi1> to vector<2x128xi1>
    %13 = arith.xori %9, %12 : vector<2x128xi1>
    %14 = arith.andi %13, %7 : vector<2x128xi1>
    %15 = vector.broadcast %3 : i32 to vector<2x128xi32>
    %16 = arith.addi %5, %15 : vector<2x128xi32>
    %17 = arith.select %14, %16, %5 : vector<2x128xi1>, vector<2x128xi32>
    %c16_i32 = arith.constant 16 : i32
    %18 = vector.broadcast %c16_i32 : i32 to vector<2x128xi32>
    %19 = arith.cmpi slt, %17, %18 : vector<2x128xi32>
    %c0_4 = arith.constant 0 : index
    %c0_5 = arith.constant 0 : index
    %20 = vector.load %arg1[%c0_4, %c0_5] : memref<32x128xf32, #tpu.memory_space<vmem>>, vector<32x128xf32>
    %c0_6 = arith.constant 0 : index
    %c0_7 = arith.constant 0 : index
    %21 = vector.load %arg2[%c0_6, %c0_7] : memref<32x128xf32, #tpu.memory_space<vmem>>, vector<32x128xf32>
    %c0_8 = arith.constant 0 : index
    %c0_9 = arith.constant 0 : index
    %22 = vector.load %arg3[%c0_8, %c0_9] : memref<1x128xf32, #tpu.memory_space<vmem>>, vector<1x128xf32>
    %cst = arith.constant dense<0.000000e+00> : vector<16x128xf32>
    %23 = tpu.matmul %0, %20, %cst {dimension_numbers = #tpu.dot_dimension_numbers<[1], [0], [0], [1], [0, 0, 1, 1], [], []>} : vector<16x32xf32>, vector<32x128xf32>, vector<16x128xf32> -> vector<16x128xf32>
    %24 = vector.broadcast %22 : vector<1x128xf32> to vector<16x128xf32>
    %25 = arith.addf %23, %24 : vector<16x128xf32>
    %cst_10 = arith.constant 0.000000e+00 : f32
    %26 = vector.broadcast %cst_10 : f32 to vector<2x32xf32>
    %cst_11 = arith.constant 0.000000e+00 : f32
    %27 = vector.broadcast %cst_11 : f32 to vector<2x32xf32>
    %28 = vector.extract_strided_slice %25 {offsets = [0, 0], sizes = [2, 128], strides = [1, 1]} : vector<16x128xf32> to vector<2x128xf32>
    %29 = vector.extract_strided_slice %25 {offsets = [14, 0], sizes = [2, 128], strides = [1, 1]} : vector<16x128xf32> to vector<2x128xf32>
    %30 = arith.select %19, %28, %29 : vector<2x128xi1>, vector<2x128xf32>
    %cst_12 = arith.constant dense<0.000000e+00> : vector<2x128xf32>
    %31 = tpu.matmul %26, %21, %cst_12 {dimension_numbers = #tpu.dot_dimension_numbers<[1], [0], [0], [1], [0, 0, 1, 1], [], []>} : vector<2x32xf32>, vector<32x128xf32>, vector<2x128xf32> -> vector<2x128xf32>
    %32 = arith.addf %30, %31 : vector<2x128xf32>
    %33 = vector.extract_strided_slice %32 {offsets = [0, 0], sizes = [2, 32], strides = [1, 1]} : vector<2x128xf32> to vector<2x32xf32>
    %34 = arith.negf %33 : vector<2x32xf32>
    %35 = math.exp %34 : vector<2x32xf32>
    %cst_13 = arith.constant 1.000000e+00 : f32
    %36 = vector.broadcast %cst_13 : f32 to vector<2x32xf32>
    %37 = arith.addf %36, %35 : vector<2x32xf32>
    %38 = arith.divf %36, %37 : vector<2x32xf32>
    %39 = vector.extract_strided_slice %32 {offsets = [0, 32], sizes = [2, 32], strides = [1, 1]} : vector<2x128xf32> to vector<2x32xf32>
    %40 = arith.negf %39 : vector<2x32xf32>
    %41 = math.exp %40 : vector<2x32xf32>
    %cst_14 = arith.constant 1.000000e+00 : f32
    %42 = vector.broadcast %cst_14 : f32 to vector<2x32xf32>
    %43 = arith.addf %42, %41 : vector<2x32xf32>
    %44 = arith.divf %42, %43 : vector<2x32xf32>
    %45 = vector.extract_strided_slice %32 {offsets = [0, 64], sizes = [2, 32], strides = [1, 1]} : vector<2x128xf32> to vector<2x32xf32>
    %46 = math.tanh %45 : vector<2x32xf32>
    %47 = vector.extract_strided_slice %32 {offsets = [0, 96], sizes = [2, 32], strides = [1, 1]} : vector<2x128xf32> to vector<2x32xf32>
    %48 = arith.negf %47 : vector<2x32xf32>
    %49 = math.exp %48 : vector<2x32xf32>
    %cst_15 = arith.constant 1.000000e+00 : f32
    %50 = vector.broadcast %cst_15 : f32 to vector<2x32xf32>
    %51 = arith.addf %50, %49 : vector<2x32xf32>
    %52 = arith.divf %50, %51 : vector<2x32xf32>
    %53 = arith.mulf %44, %27 : vector<2x32xf32>
    %54 = arith.mulf %38, %46 : vector<2x32xf32>
    %55 = arith.addf %53, %54 : vector<2x32xf32>
    %56 = math.tanh %55 : vector<2x32xf32>
    %57 = arith.mulf %52, %56 : vector<2x32xf32>
    %58 = vector.extract_strided_slice %25 {offsets = [2, 0], sizes = [2, 128], strides = [1, 1]} : vector<16x128xf32> to vector<2x128xf32>
    %59 = vector.extract_strided_slice %25 {offsets = [12, 0], sizes = [2, 128], strides = [1, 1]} : vector<16x128xf32> to vector<2x128xf32>
    %60 = arith.select %19, %58, %59 : vector<2x128xi1>, vector<2x128xf32>
    %cst_16 = arith.constant dense<0.000000e+00> : vector<2x128xf32>
    %61 = tpu.matmul %57, %21, %cst_16 {dimension_numbers = #tpu.dot_dimension_numbers<[1], [0], [0], [1], [0, 0, 1, 1], [], []>} : vector<2x32xf32>, vector<32x128xf32>, vector<2x128xf32> -> vector<2x128xf32>
    %62 = arith.addf %60, %61 : vector<2x128xf32>
    %63 = vector.extract_strided_slice %62 {offsets = [0, 0], sizes = [2, 32], strides = [1, 1]} : vector<2x128xf32> to vector<2x32xf32>
    %64 = arith.negf %63 : vector<2x32xf32>
    %65 = math.exp %64 : vector<2x32xf32>
    %cst_17 = arith.constant 1.000000e+00 : f32
    %66 = vector.broadcast %cst_17 : f32 to vector<2x32xf32>
    %67 = arith.addf %66, %65 : vector<2x32xf32>
    %68 = arith.divf %66, %67 : vector<2x32xf32>
    %69 = vector.extract_strided_slice %62 {offsets = [0, 32], sizes = [2, 32], strides = [1, 1]} : vector<2x128xf32> to vector<2x32xf32>
    %70 = arith.negf %69 : vector<2x32xf32>
    %71 = math.exp %70 : vector<2x32xf32>
    %cst_18 = arith.constant 1.000000e+00 : f32
    %72 = vector.broadcast %cst_18 : f32 to vector<2x32xf32>
    %73 = arith.addf %72, %71 : vector<2x32xf32>
    %74 = arith.divf %72, %73 : vector<2x32xf32>
    %75 = vector.extract_strided_slice %62 {offsets = [0, 64], sizes = [2, 32], strides = [1, 1]} : vector<2x128xf32> to vector<2x32xf32>
    %76 = math.tanh %75 : vector<2x32xf32>
    %77 = vector.extract_strided_slice %62 {offsets = [0, 96], sizes = [2, 32], strides = [1, 1]} : vector<2x128xf32> to vector<2x32xf32>
    %78 = arith.negf %77 : vector<2x32xf32>
    %79 = math.exp %78 : vector<2x32xf32>
    %cst_19 = arith.constant 1.000000e+00 : f32
    %80 = vector.broadcast %cst_19 : f32 to vector<2x32xf32>
    %81 = arith.addf %80, %79 : vector<2x32xf32>
    %82 = arith.divf %80, %81 : vector<2x32xf32>
    %83 = arith.mulf %74, %55 : vector<2x32xf32>
    %84 = arith.mulf %68, %76 : vector<2x32xf32>
    %85 = arith.addf %83, %84 : vector<2x32xf32>
    %86 = math.tanh %85 : vector<2x32xf32>
    %87 = arith.mulf %82, %86 : vector<2x32xf32>
    %88 = vector.extract_strided_slice %25 {offsets = [4, 0], sizes = [2, 128], strides = [1, 1]} : vector<16x128xf32> to vector<2x128xf32>
    %89 = vector.extract_strided_slice %25 {offsets = [10, 0], sizes = [2, 128], strides = [1, 1]} : vector<16x128xf32> to vector<2x128xf32>
    %90 = arith.select %19, %88, %89 : vector<2x128xi1>, vector<2x128xf32>
    %cst_20 = arith.constant dense<0.000000e+00> : vector<2x128xf32>
    %91 = tpu.matmul %87, %21, %cst_20 {dimension_numbers = #tpu.dot_dimension_numbers<[1], [0], [0], [1], [0, 0, 1, 1], [], []>} : vector<2x32xf32>, vector<32x128xf32>, vector<2x128xf32> -> vector<2x128xf32>
    %92 = arith.addf %90, %91 : vector<2x128xf32>
    %93 = vector.extract_strided_slice %92 {offsets = [0, 0], sizes = [2, 32], strides = [1, 1]} : vector<2x128xf32> to vector<2x32xf32>
    %94 = arith.negf %93 : vector<2x32xf32>
    %95 = math.exp %94 : vector<2x32xf32>
    %cst_21 = arith.constant 1.000000e+00 : f32
    %96 = vector.broadcast %cst_21 : f32 to vector<2x32xf32>
    %97 = arith.addf %96, %95 : vector<2x32xf32>
    %98 = arith.divf %96, %97 : vector<2x32xf32>
    %99 = vector.extract_strided_slice %92 {offsets = [0, 32], sizes = [2, 32], strides = [1, 1]} : vector<2x128xf32> to vector<2x32xf32>
    %100 = arith.negf %99 : vector<2x32xf32>
    %101 = math.exp %100 : vector<2x32xf32>
    %cst_22 = arith.constant 1.000000e+00 : f32
    %102 = vector.broadcast %cst_22 : f32 to vector<2x32xf32>
    %103 = arith.addf %102, %101 : vector<2x32xf32>
    %104 = arith.divf %102, %103 : vector<2x32xf32>
    %105 = vector.extract_strided_slice %92 {offsets = [0, 64], sizes = [2, 32], strides = [1, 1]} : vector<2x128xf32> to vector<2x32xf32>
    %106 = math.tanh %105 : vector<2x32xf32>
    %107 = vector.extract_strided_slice %92 {offsets = [0, 96], sizes = [2, 32], strides = [1, 1]} : vector<2x128xf32> to vector<2x32xf32>
    %108 = arith.negf %107 : vector<2x32xf32>
    %109 = math.exp %108 : vector<2x32xf32>
    %cst_23 = arith.constant 1.000000e+00 : f32
    %110 = vector.broadcast %cst_23 : f32 to vector<2x32xf32>
    %111 = arith.addf %110, %109 : vector<2x32xf32>
    %112 = arith.divf %110, %111 : vector<2x32xf32>
    %113 = arith.mulf %104, %85 : vector<2x32xf32>
    %114 = arith.mulf %98, %106 : vector<2x32xf32>
    %115 = arith.addf %113, %114 : vector<2x32xf32>
    %116 = math.tanh %115 : vector<2x32xf32>
    %117 = arith.mulf %112, %116 : vector<2x32xf32>
    %118 = vector.extract_strided_slice %25 {offsets = [6, 0], sizes = [2, 128], strides = [1, 1]} : vector<16x128xf32> to vector<2x128xf32>
    %119 = vector.extract_strided_slice %25 {offsets = [8, 0], sizes = [2, 128], strides = [1, 1]} : vector<16x128xf32> to vector<2x128xf32>
    %120 = arith.select %19, %118, %119 : vector<2x128xi1>, vector<2x128xf32>
    %cst_24 = arith.constant dense<0.000000e+00> : vector<2x128xf32>
    %121 = tpu.matmul %117, %21, %cst_24 {dimension_numbers = #tpu.dot_dimension_numbers<[1], [0], [0], [1], [0, 0, 1, 1], [], []>} : vector<2x32xf32>, vector<32x128xf32>, vector<2x128xf32> -> vector<2x128xf32>
    %122 = arith.addf %120, %121 : vector<2x128xf32>
    %123 = vector.extract_strided_slice %122 {offsets = [0, 0], sizes = [2, 32], strides = [1, 1]} : vector<2x128xf32> to vector<2x32xf32>
    %124 = arith.negf %123 : vector<2x32xf32>
    %125 = math.exp %124 : vector<2x32xf32>
    %cst_25 = arith.constant 1.000000e+00 : f32
    %126 = vector.broadcast %cst_25 : f32 to vector<2x32xf32>
    %127 = arith.addf %126, %125 : vector<2x32xf32>
    %128 = arith.divf %126, %127 : vector<2x32xf32>
    %129 = vector.extract_strided_slice %122 {offsets = [0, 32], sizes = [2, 32], strides = [1, 1]} : vector<2x128xf32> to vector<2x32xf32>
    %130 = arith.negf %129 : vector<2x32xf32>
    %131 = math.exp %130 : vector<2x32xf32>
    %cst_26 = arith.constant 1.000000e+00 : f32
    %132 = vector.broadcast %cst_26 : f32 to vector<2x32xf32>
    %133 = arith.addf %132, %131 : vector<2x32xf32>
    %134 = arith.divf %132, %133 : vector<2x32xf32>
    %135 = vector.extract_strided_slice %122 {offsets = [0, 64], sizes = [2, 32], strides = [1, 1]} : vector<2x128xf32> to vector<2x32xf32>
    %136 = math.tanh %135 : vector<2x32xf32>
    %137 = vector.extract_strided_slice %122 {offsets = [0, 96], sizes = [2, 32], strides = [1, 1]} : vector<2x128xf32> to vector<2x32xf32>
    %138 = arith.negf %137 : vector<2x32xf32>
    %139 = math.exp %138 : vector<2x32xf32>
    %cst_27 = arith.constant 1.000000e+00 : f32
    %140 = vector.broadcast %cst_27 : f32 to vector<2x32xf32>
    %141 = arith.addf %140, %139 : vector<2x32xf32>
    %142 = arith.divf %140, %141 : vector<2x32xf32>
    %143 = arith.mulf %134, %115 : vector<2x32xf32>
    %144 = arith.mulf %128, %136 : vector<2x32xf32>
    %145 = arith.addf %143, %144 : vector<2x32xf32>
    %146 = math.tanh %145 : vector<2x32xf32>
    %147 = arith.mulf %142, %146 : vector<2x32xf32>
    %148 = vector.extract_strided_slice %25 {offsets = [8, 0], sizes = [2, 128], strides = [1, 1]} : vector<16x128xf32> to vector<2x128xf32>
    %149 = vector.extract_strided_slice %25 {offsets = [6, 0], sizes = [2, 128], strides = [1, 1]} : vector<16x128xf32> to vector<2x128xf32>
    %150 = arith.select %19, %148, %149 : vector<2x128xi1>, vector<2x128xf32>
    %cst_28 = arith.constant dense<0.000000e+00> : vector<2x128xf32>
    %151 = tpu.matmul %147, %21, %cst_28 {dimension_numbers = #tpu.dot_dimension_numbers<[1], [0], [0], [1], [0, 0, 1, 1], [], []>} : vector<2x32xf32>, vector<32x128xf32>, vector<2x128xf32> -> vector<2x128xf32>
    %152 = arith.addf %150, %151 : vector<2x128xf32>
    %153 = vector.extract_strided_slice %152 {offsets = [0, 0], sizes = [2, 32], strides = [1, 1]} : vector<2x128xf32> to vector<2x32xf32>
    %154 = arith.negf %153 : vector<2x32xf32>
    %155 = math.exp %154 : vector<2x32xf32>
    %cst_29 = arith.constant 1.000000e+00 : f32
    %156 = vector.broadcast %cst_29 : f32 to vector<2x32xf32>
    %157 = arith.addf %156, %155 : vector<2x32xf32>
    %158 = arith.divf %156, %157 : vector<2x32xf32>
    %159 = vector.extract_strided_slice %152 {offsets = [0, 32], sizes = [2, 32], strides = [1, 1]} : vector<2x128xf32> to vector<2x32xf32>
    %160 = arith.negf %159 : vector<2x32xf32>
    %161 = math.exp %160 : vector<2x32xf32>
    %cst_30 = arith.constant 1.000000e+00 : f32
    %162 = vector.broadcast %cst_30 : f32 to vector<2x32xf32>
    %163 = arith.addf %162, %161 : vector<2x32xf32>
    %164 = arith.divf %162, %163 : vector<2x32xf32>
    %165 = vector.extract_strided_slice %152 {offsets = [0, 64], sizes = [2, 32], strides = [1, 1]} : vector<2x128xf32> to vector<2x32xf32>
    %166 = math.tanh %165 : vector<2x32xf32>
    %167 = vector.extract_strided_slice %152 {offsets = [0, 96], sizes = [2, 32], strides = [1, 1]} : vector<2x128xf32> to vector<2x32xf32>
    %168 = arith.negf %167 : vector<2x32xf32>
    %169 = math.exp %168 : vector<2x32xf32>
    %cst_31 = arith.constant 1.000000e+00 : f32
    %170 = vector.broadcast %cst_31 : f32 to vector<2x32xf32>
    %171 = arith.addf %170, %169 : vector<2x32xf32>
    %172 = arith.divf %170, %171 : vector<2x32xf32>
    %173 = arith.mulf %164, %145 : vector<2x32xf32>
    %174 = arith.mulf %158, %166 : vector<2x32xf32>
    %175 = arith.addf %173, %174 : vector<2x32xf32>
    %176 = math.tanh %175 : vector<2x32xf32>
    %177 = arith.mulf %172, %176 : vector<2x32xf32>
    %178 = vector.extract_strided_slice %25 {offsets = [10, 0], sizes = [2, 128], strides = [1, 1]} : vector<16x128xf32> to vector<2x128xf32>
    %179 = vector.extract_strided_slice %25 {offsets = [4, 0], sizes = [2, 128], strides = [1, 1]} : vector<16x128xf32> to vector<2x128xf32>
    %180 = arith.select %19, %178, %179 : vector<2x128xi1>, vector<2x128xf32>
    %cst_32 = arith.constant dense<0.000000e+00> : vector<2x128xf32>
    %181 = tpu.matmul %177, %21, %cst_32 {dimension_numbers = #tpu.dot_dimension_numbers<[1], [0], [0], [1], [0, 0, 1, 1], [], []>} : vector<2x32xf32>, vector<32x128xf32>, vector<2x128xf32> -> vector<2x128xf32>
    %182 = arith.addf %180, %181 : vector<2x128xf32>
    %183 = vector.extract_strided_slice %182 {offsets = [0, 0], sizes = [2, 32], strides = [1, 1]} : vector<2x128xf32> to vector<2x32xf32>
    %184 = arith.negf %183 : vector<2x32xf32>
    %185 = math.exp %184 : vector<2x32xf32>
    %cst_33 = arith.constant 1.000000e+00 : f32
    %186 = vector.broadcast %cst_33 : f32 to vector<2x32xf32>
    %187 = arith.addf %186, %185 : vector<2x32xf32>
    %188 = arith.divf %186, %187 : vector<2x32xf32>
    %189 = vector.extract_strided_slice %182 {offsets = [0, 32], sizes = [2, 32], strides = [1, 1]} : vector<2x128xf32> to vector<2x32xf32>
    %190 = arith.negf %189 : vector<2x32xf32>
    %191 = math.exp %190 : vector<2x32xf32>
    %cst_34 = arith.constant 1.000000e+00 : f32
    %192 = vector.broadcast %cst_34 : f32 to vector<2x32xf32>
    %193 = arith.addf %192, %191 : vector<2x32xf32>
    %194 = arith.divf %192, %193 : vector<2x32xf32>
    %195 = vector.extract_strided_slice %182 {offsets = [0, 64], sizes = [2, 32], strides = [1, 1]} : vector<2x128xf32> to vector<2x32xf32>
    %196 = math.tanh %195 : vector<2x32xf32>
    %197 = vector.extract_strided_slice %182 {offsets = [0, 96], sizes = [2, 32], strides = [1, 1]} : vector<2x128xf32> to vector<2x32xf32>
    %198 = arith.negf %197 : vector<2x32xf32>
    %199 = math.exp %198 : vector<2x32xf32>
    %cst_35 = arith.constant 1.000000e+00 : f32
    %200 = vector.broadcast %cst_35 : f32 to vector<2x32xf32>
    %201 = arith.addf %200, %199 : vector<2x32xf32>
    %202 = arith.divf %200, %201 : vector<2x32xf32>
    %203 = arith.mulf %194, %175 : vector<2x32xf32>
    %204 = arith.mulf %188, %196 : vector<2x32xf32>
    %205 = arith.addf %203, %204 : vector<2x32xf32>
    %206 = math.tanh %205 : vector<2x32xf32>
    %207 = arith.mulf %202, %206 : vector<2x32xf32>
    %208 = vector.extract_strided_slice %25 {offsets = [12, 0], sizes = [2, 128], strides = [1, 1]} : vector<16x128xf32> to vector<2x128xf32>
    %209 = vector.extract_strided_slice %25 {offsets = [2, 0], sizes = [2, 128], strides = [1, 1]} : vector<16x128xf32> to vector<2x128xf32>
    %210 = arith.select %19, %208, %209 : vector<2x128xi1>, vector<2x128xf32>
    %cst_36 = arith.constant dense<0.000000e+00> : vector<2x128xf32>
    %211 = tpu.matmul %207, %21, %cst_36 {dimension_numbers = #tpu.dot_dimension_numbers<[1], [0], [0], [1], [0, 0, 1, 1], [], []>} : vector<2x32xf32>, vector<32x128xf32>, vector<2x128xf32> -> vector<2x128xf32>
    %212 = arith.addf %210, %211 : vector<2x128xf32>
    %213 = vector.extract_strided_slice %212 {offsets = [0, 0], sizes = [2, 32], strides = [1, 1]} : vector<2x128xf32> to vector<2x32xf32>
    %214 = arith.negf %213 : vector<2x32xf32>
    %215 = math.exp %214 : vector<2x32xf32>
    %cst_37 = arith.constant 1.000000e+00 : f32
    %216 = vector.broadcast %cst_37 : f32 to vector<2x32xf32>
    %217 = arith.addf %216, %215 : vector<2x32xf32>
    %218 = arith.divf %216, %217 : vector<2x32xf32>
    %219 = vector.extract_strided_slice %212 {offsets = [0, 32], sizes = [2, 32], strides = [1, 1]} : vector<2x128xf32> to vector<2x32xf32>
    %220 = arith.negf %219 : vector<2x32xf32>
    %221 = math.exp %220 : vector<2x32xf32>
    %cst_38 = arith.constant 1.000000e+00 : f32
    %222 = vector.broadcast %cst_38 : f32 to vector<2x32xf32>
    %223 = arith.addf %222, %221 : vector<2x32xf32>
    %224 = arith.divf %222, %223 : vector<2x32xf32>
    %225 = vector.extract_strided_slice %212 {offsets = [0, 64], sizes = [2, 32], strides = [1, 1]} : vector<2x128xf32> to vector<2x32xf32>
    %226 = math.tanh %225 : vector<2x32xf32>
    %227 = vector.extract_strided_slice %212 {offsets = [0, 96], sizes = [2, 32], strides = [1, 1]} : vector<2x128xf32> to vector<2x32xf32>
    %228 = arith.negf %227 : vector<2x32xf32>
    %229 = math.exp %228 : vector<2x32xf32>
    %cst_39 = arith.constant 1.000000e+00 : f32
    %230 = vector.broadcast %cst_39 : f32 to vector<2x32xf32>
    %231 = arith.addf %230, %229 : vector<2x32xf32>
    %232 = arith.divf %230, %231 : vector<2x32xf32>
    %233 = arith.mulf %224, %205 : vector<2x32xf32>
    %234 = arith.mulf %218, %226 : vector<2x32xf32>
    %235 = arith.addf %233, %234 : vector<2x32xf32>
    %236 = math.tanh %235 : vector<2x32xf32>
    %237 = arith.mulf %232, %236 : vector<2x32xf32>
    %238 = vector.extract_strided_slice %25 {offsets = [14, 0], sizes = [2, 128], strides = [1, 1]} : vector<16x128xf32> to vector<2x128xf32>
    %239 = vector.extract_strided_slice %25 {offsets = [0, 0], sizes = [2, 128], strides = [1, 1]} : vector<16x128xf32> to vector<2x128xf32>
    %240 = arith.select %19, %238, %239 : vector<2x128xi1>, vector<2x128xf32>
    %cst_40 = arith.constant dense<0.000000e+00> : vector<2x128xf32>
    %241 = tpu.matmul %237, %21, %cst_40 {dimension_numbers = #tpu.dot_dimension_numbers<[1], [0], [0], [1], [0, 0, 1, 1], [], []>} : vector<2x32xf32>, vector<32x128xf32>, vector<2x128xf32> -> vector<2x128xf32>
    %242 = arith.addf %240, %241 : vector<2x128xf32>
    %243 = vector.extract_strided_slice %242 {offsets = [0, 0], sizes = [2, 32], strides = [1, 1]} : vector<2x128xf32> to vector<2x32xf32>
    %244 = arith.negf %243 : vector<2x32xf32>
    %245 = math.exp %244 : vector<2x32xf32>
    %cst_41 = arith.constant 1.000000e+00 : f32
    %246 = vector.broadcast %cst_41 : f32 to vector<2x32xf32>
    %247 = arith.addf %246, %245 : vector<2x32xf32>
    %248 = arith.divf %246, %247 : vector<2x32xf32>
    %249 = vector.extract_strided_slice %242 {offsets = [0, 32], sizes = [2, 32], strides = [1, 1]} : vector<2x128xf32> to vector<2x32xf32>
    %250 = arith.negf %249 : vector<2x32xf32>
    %251 = math.exp %250 : vector<2x32xf32>
    %cst_42 = arith.constant 1.000000e+00 : f32
    %252 = vector.broadcast %cst_42 : f32 to vector<2x32xf32>
    %253 = arith.addf %252, %251 : vector<2x32xf32>
    %254 = arith.divf %252, %253 : vector<2x32xf32>
    %255 = vector.extract_strided_slice %242 {offsets = [0, 64], sizes = [2, 32], strides = [1, 1]} : vector<2x128xf32> to vector<2x32xf32>
    %256 = math.tanh %255 : vector<2x32xf32>
    %257 = vector.extract_strided_slice %242 {offsets = [0, 96], sizes = [2, 32], strides = [1, 1]} : vector<2x128xf32> to vector<2x32xf32>
    %258 = arith.negf %257 : vector<2x32xf32>
    %259 = math.exp %258 : vector<2x32xf32>
    %cst_43 = arith.constant 1.000000e+00 : f32
    %260 = vector.broadcast %cst_43 : f32 to vector<2x32xf32>
    %261 = arith.addf %260, %259 : vector<2x32xf32>
    %262 = arith.divf %260, %261 : vector<2x32xf32>
    %263 = arith.mulf %254, %235 : vector<2x32xf32>
    %264 = arith.mulf %248, %256 : vector<2x32xf32>
    %265 = arith.addf %263, %264 : vector<2x32xf32>
    %266 = math.tanh %265 : vector<2x32xf32>
    %267 = arith.mulf %262, %266 : vector<2x32xf32>
    %268 = vector.extract_strided_slice %57 {offsets = [0, 0], sizes = [2, 16], strides = [1, 1]} : vector<2x32xf32> to vector<2x16xf32>
    %269 = vector.extract_strided_slice %267 {offsets = [0, 16], sizes = [2, 16], strides = [1, 1]} : vector<2x32xf32> to vector<2x16xf32>
    %270 = tpu.concatenate %268, %269 in 1 : vector<2x16xf32>, vector<2x16xf32> -> vector<2x32xf32>
    %271 = vector.extract_strided_slice %87 {offsets = [0, 0], sizes = [2, 16], strides = [1, 1]} : vector<2x32xf32> to vector<2x16xf32>
    %272 = vector.extract_strided_slice %237 {offsets = [0, 16], sizes = [2, 16], strides = [1, 1]} : vector<2x32xf32> to vector<2x16xf32>
    %273 = tpu.concatenate %271, %272 in 1 : vector<2x16xf32>, vector<2x16xf32> -> vector<2x32xf32>
    %274 = vector.extract_strided_slice %117 {offsets = [0, 0], sizes = [2, 16], strides = [1, 1]} : vector<2x32xf32> to vector<2x16xf32>
    %275 = vector.extract_strided_slice %207 {offsets = [0, 16], sizes = [2, 16], strides = [1, 1]} : vector<2x32xf32> to vector<2x16xf32>
    %276 = tpu.concatenate %274, %275 in 1 : vector<2x16xf32>, vector<2x16xf32> -> vector<2x32xf32>
    %277 = vector.extract_strided_slice %147 {offsets = [0, 0], sizes = [2, 16], strides = [1, 1]} : vector<2x32xf32> to vector<2x16xf32>
    %278 = vector.extract_strided_slice %177 {offsets = [0, 16], sizes = [2, 16], strides = [1, 1]} : vector<2x32xf32> to vector<2x16xf32>
    %279 = tpu.concatenate %277, %278 in 1 : vector<2x16xf32>, vector<2x16xf32> -> vector<2x32xf32>
    %280 = vector.extract_strided_slice %177 {offsets = [0, 0], sizes = [2, 16], strides = [1, 1]} : vector<2x32xf32> to vector<2x16xf32>
    %281 = vector.extract_strided_slice %147 {offsets = [0, 16], sizes = [2, 16], strides = [1, 1]} : vector<2x32xf32> to vector<2x16xf32>
    %282 = tpu.concatenate %280, %281 in 1 : vector<2x16xf32>, vector<2x16xf32> -> vector<2x32xf32>
    %283 = vector.extract_strided_slice %207 {offsets = [0, 0], sizes = [2, 16], strides = [1, 1]} : vector<2x32xf32> to vector<2x16xf32>
    %284 = vector.extract_strided_slice %117 {offsets = [0, 16], sizes = [2, 16], strides = [1, 1]} : vector<2x32xf32> to vector<2x16xf32>
    %285 = tpu.concatenate %283, %284 in 1 : vector<2x16xf32>, vector<2x16xf32> -> vector<2x32xf32>
    %286 = vector.extract_strided_slice %237 {offsets = [0, 0], sizes = [2, 16], strides = [1, 1]} : vector<2x32xf32> to vector<2x16xf32>
    %287 = vector.extract_strided_slice %87 {offsets = [0, 16], sizes = [2, 16], strides = [1, 1]} : vector<2x32xf32> to vector<2x16xf32>
    %288 = tpu.concatenate %286, %287 in 1 : vector<2x16xf32>, vector<2x16xf32> -> vector<2x32xf32>
    %289 = vector.extract_strided_slice %267 {offsets = [0, 0], sizes = [2, 16], strides = [1, 1]} : vector<2x32xf32> to vector<2x16xf32>
    %290 = vector.extract_strided_slice %57 {offsets = [0, 16], sizes = [2, 16], strides = [1, 1]} : vector<2x32xf32> to vector<2x16xf32>
    %291 = tpu.concatenate %289, %290 in 1 : vector<2x16xf32>, vector<2x16xf32> -> vector<2x32xf32>
    %292 = tpu.concatenate %270, %273, %276, %279, %282, %285, %288, %291 in 0 : vector<2x32xf32>, vector<2x32xf32>, vector<2x32xf32>, vector<2x32xf32>, vector<2x32xf32>, vector<2x32xf32>, vector<2x32xf32>, vector<2x32xf32> -> vector<16x32xf32>
    %c0_44 = arith.constant 0 : index
    %c0_45 = arith.constant 0 : index
    %293 = vector.load %arg4[%c0_44, %c0_45] : memref<32x128xf32, #tpu.memory_space<vmem>>, vector<32x128xf32>
    %c0_46 = arith.constant 0 : index
    %c0_47 = arith.constant 0 : index
    %294 = vector.load %arg5[%c0_46, %c0_47] : memref<32x128xf32, #tpu.memory_space<vmem>>, vector<32x128xf32>
    %c0_48 = arith.constant 0 : index
    %c0_49 = arith.constant 0 : index
    %295 = vector.load %arg6[%c0_48, %c0_49] : memref<1x128xf32, #tpu.memory_space<vmem>>, vector<1x128xf32>
    %cst_50 = arith.constant dense<0.000000e+00> : vector<16x128xf32>
    %296 = tpu.matmul %292, %293, %cst_50 {dimension_numbers = #tpu.dot_dimension_numbers<[1], [0], [0], [1], [0, 0, 1, 1], [], []>} : vector<16x32xf32>, vector<32x128xf32>, vector<16x128xf32> -> vector<16x128xf32>
    %297 = vector.broadcast %295 : vector<1x128xf32> to vector<16x128xf32>
    %298 = arith.addf %296, %297 : vector<16x128xf32>
    %cst_51 = arith.constant 0.000000e+00 : f32
    %299 = vector.broadcast %cst_51 : f32 to vector<2x32xf32>
    %cst_52 = arith.constant 0.000000e+00 : f32
    %300 = vector.broadcast %cst_52 : f32 to vector<2x32xf32>
    %301 = vector.extract_strided_slice %298 {offsets = [0, 0], sizes = [2, 128], strides = [1, 1]} : vector<16x128xf32> to vector<2x128xf32>
    %302 = vector.extract_strided_slice %298 {offsets = [14, 0], sizes = [2, 128], strides = [1, 1]} : vector<16x128xf32> to vector<2x128xf32>
    %303 = arith.select %19, %301, %302 : vector<2x128xi1>, vector<2x128xf32>
    %cst_53 = arith.constant dense<0.000000e+00> : vector<2x128xf32>
    %304 = tpu.matmul %299, %294, %cst_53 {dimension_numbers = #tpu.dot_dimension_numbers<[1], [0], [0], [1], [0, 0, 1, 1], [], []>} : vector<2x32xf32>, vector<32x128xf32>, vector<2x128xf32> -> vector<2x128xf32>
    %305 = arith.addf %303, %304 : vector<2x128xf32>
    %306 = vector.extract_strided_slice %305 {offsets = [0, 0], sizes = [2, 32], strides = [1, 1]} : vector<2x128xf32> to vector<2x32xf32>
    %307 = arith.negf %306 : vector<2x32xf32>
    %308 = math.exp %307 : vector<2x32xf32>
    %cst_54 = arith.constant 1.000000e+00 : f32
    %309 = vector.broadcast %cst_54 : f32 to vector<2x32xf32>
    %310 = arith.addf %309, %308 : vector<2x32xf32>
    %311 = arith.divf %309, %310 : vector<2x32xf32>
    %312 = vector.extract_strided_slice %305 {offsets = [0, 32], sizes = [2, 32], strides = [1, 1]} : vector<2x128xf32> to vector<2x32xf32>
    %313 = arith.negf %312 : vector<2x32xf32>
    %314 = math.exp %313 : vector<2x32xf32>
    %cst_55 = arith.constant 1.000000e+00 : f32
    %315 = vector.broadcast %cst_55 : f32 to vector<2x32xf32>
    %316 = arith.addf %315, %314 : vector<2x32xf32>
    %317 = arith.divf %315, %316 : vector<2x32xf32>
    %318 = vector.extract_strided_slice %305 {offsets = [0, 64], sizes = [2, 32], strides = [1, 1]} : vector<2x128xf32> to vector<2x32xf32>
    %319 = math.tanh %318 : vector<2x32xf32>
    %320 = vector.extract_strided_slice %305 {offsets = [0, 96], sizes = [2, 32], strides = [1, 1]} : vector<2x128xf32> to vector<2x32xf32>
    %321 = arith.negf %320 : vector<2x32xf32>
    %322 = math.exp %321 : vector<2x32xf32>
    %cst_56 = arith.constant 1.000000e+00 : f32
    %323 = vector.broadcast %cst_56 : f32 to vector<2x32xf32>
    %324 = arith.addf %323, %322 : vector<2x32xf32>
    %325 = arith.divf %323, %324 : vector<2x32xf32>
    %326 = arith.mulf %317, %300 : vector<2x32xf32>
    %327 = arith.mulf %311, %319 : vector<2x32xf32>
    %328 = arith.addf %326, %327 : vector<2x32xf32>
    %329 = math.tanh %328 : vector<2x32xf32>
    %330 = arith.mulf %325, %329 : vector<2x32xf32>
    %331 = vector.extract_strided_slice %298 {offsets = [2, 0], sizes = [2, 128], strides = [1, 1]} : vector<16x128xf32> to vector<2x128xf32>
    %332 = vector.extract_strided_slice %298 {offsets = [12, 0], sizes = [2, 128], strides = [1, 1]} : vector<16x128xf32> to vector<2x128xf32>
    %333 = arith.select %19, %331, %332 : vector<2x128xi1>, vector<2x128xf32>
    %cst_57 = arith.constant dense<0.000000e+00> : vector<2x128xf32>
    %334 = tpu.matmul %330, %294, %cst_57 {dimension_numbers = #tpu.dot_dimension_numbers<[1], [0], [0], [1], [0, 0, 1, 1], [], []>} : vector<2x32xf32>, vector<32x128xf32>, vector<2x128xf32> -> vector<2x128xf32>
    %335 = arith.addf %333, %334 : vector<2x128xf32>
    %336 = vector.extract_strided_slice %335 {offsets = [0, 0], sizes = [2, 32], strides = [1, 1]} : vector<2x128xf32> to vector<2x32xf32>
    %337 = arith.negf %336 : vector<2x32xf32>
    %338 = math.exp %337 : vector<2x32xf32>
    %cst_58 = arith.constant 1.000000e+00 : f32
    %339 = vector.broadcast %cst_58 : f32 to vector<2x32xf32>
    %340 = arith.addf %339, %338 : vector<2x32xf32>
    %341 = arith.divf %339, %340 : vector<2x32xf32>
    %342 = vector.extract_strided_slice %335 {offsets = [0, 32], sizes = [2, 32], strides = [1, 1]} : vector<2x128xf32> to vector<2x32xf32>
    %343 = arith.negf %342 : vector<2x32xf32>
    %344 = math.exp %343 : vector<2x32xf32>
    %cst_59 = arith.constant 1.000000e+00 : f32
    %345 = vector.broadcast %cst_59 : f32 to vector<2x32xf32>
    %346 = arith.addf %345, %344 : vector<2x32xf32>
    %347 = arith.divf %345, %346 : vector<2x32xf32>
    %348 = vector.extract_strided_slice %335 {offsets = [0, 64], sizes = [2, 32], strides = [1, 1]} : vector<2x128xf32> to vector<2x32xf32>
    %349 = math.tanh %348 : vector<2x32xf32>
    %350 = vector.extract_strided_slice %335 {offsets = [0, 96], sizes = [2, 32], strides = [1, 1]} : vector<2x128xf32> to vector<2x32xf32>
    %351 = arith.negf %350 : vector<2x32xf32>
    %352 = math.exp %351 : vector<2x32xf32>
    %cst_60 = arith.constant 1.000000e+00 : f32
    %353 = vector.broadcast %cst_60 : f32 to vector<2x32xf32>
    %354 = arith.addf %353, %352 : vector<2x32xf32>
    %355 = arith.divf %353, %354 : vector<2x32xf32>
    %356 = arith.mulf %347, %328 : vector<2x32xf32>
    %357 = arith.mulf %341, %349 : vector<2x32xf32>
    %358 = arith.addf %356, %357 : vector<2x32xf32>
    %359 = math.tanh %358 : vector<2x32xf32>
    %360 = arith.mulf %355, %359 : vector<2x32xf32>
    %361 = vector.extract_strided_slice %298 {offsets = [4, 0], sizes = [2, 128], strides = [1, 1]} : vector<16x128xf32> to vector<2x128xf32>
    %362 = vector.extract_strided_slice %298 {offsets = [10, 0], sizes = [2, 128], strides = [1, 1]} : vector<16x128xf32> to vector<2x128xf32>
    %363 = arith.select %19, %361, %362 : vector<2x128xi1>, vector<2x128xf32>
    %cst_61 = arith.constant dense<0.000000e+00> : vector<2x128xf32>
    %364 = tpu.matmul %360, %294, %cst_61 {dimension_numbers = #tpu.dot_dimension_numbers<[1], [0], [0], [1], [0, 0, 1, 1], [], []>} : vector<2x32xf32>, vector<32x128xf32>, vector<2x128xf32> -> vector<2x128xf32>
    %365 = arith.addf %363, %364 : vector<2x128xf32>
    %366 = vector.extract_strided_slice %365 {offsets = [0, 0], sizes = [2, 32], strides = [1, 1]} : vector<2x128xf32> to vector<2x32xf32>
    %367 = arith.negf %366 : vector<2x32xf32>
    %368 = math.exp %367 : vector<2x32xf32>
    %cst_62 = arith.constant 1.000000e+00 : f32
    %369 = vector.broadcast %cst_62 : f32 to vector<2x32xf32>
    %370 = arith.addf %369, %368 : vector<2x32xf32>
    %371 = arith.divf %369, %370 : vector<2x32xf32>
    %372 = vector.extract_strided_slice %365 {offsets = [0, 32], sizes = [2, 32], strides = [1, 1]} : vector<2x128xf32> to vector<2x32xf32>
    %373 = arith.negf %372 : vector<2x32xf32>
    %374 = math.exp %373 : vector<2x32xf32>
    %cst_63 = arith.constant 1.000000e+00 : f32
    %375 = vector.broadcast %cst_63 : f32 to vector<2x32xf32>
    %376 = arith.addf %375, %374 : vector<2x32xf32>
    %377 = arith.divf %375, %376 : vector<2x32xf32>
    %378 = vector.extract_strided_slice %365 {offsets = [0, 64], sizes = [2, 32], strides = [1, 1]} : vector<2x128xf32> to vector<2x32xf32>
    %379 = math.tanh %378 : vector<2x32xf32>
    %380 = vector.extract_strided_slice %365 {offsets = [0, 96], sizes = [2, 32], strides = [1, 1]} : vector<2x128xf32> to vector<2x32xf32>
    %381 = arith.negf %380 : vector<2x32xf32>
    %382 = math.exp %381 : vector<2x32xf32>
    %cst_64 = arith.constant 1.000000e+00 : f32
    %383 = vector.broadcast %cst_64 : f32 to vector<2x32xf32>
    %384 = arith.addf %383, %382 : vector<2x32xf32>
    %385 = arith.divf %383, %384 : vector<2x32xf32>
    %386 = arith.mulf %377, %358 : vector<2x32xf32>
    %387 = arith.mulf %371, %379 : vector<2x32xf32>
    %388 = arith.addf %386, %387 : vector<2x32xf32>
    %389 = math.tanh %388 : vector<2x32xf32>
    %390 = arith.mulf %385, %389 : vector<2x32xf32>
    %391 = vector.extract_strided_slice %298 {offsets = [6, 0], sizes = [2, 128], strides = [1, 1]} : vector<16x128xf32> to vector<2x128xf32>
    %392 = vector.extract_strided_slice %298 {offsets = [8, 0], sizes = [2, 128], strides = [1, 1]} : vector<16x128xf32> to vector<2x128xf32>
    %393 = arith.select %19, %391, %392 : vector<2x128xi1>, vector<2x128xf32>
    %cst_65 = arith.constant dense<0.000000e+00> : vector<2x128xf32>
    %394 = tpu.matmul %390, %294, %cst_65 {dimension_numbers = #tpu.dot_dimension_numbers<[1], [0], [0], [1], [0, 0, 1, 1], [], []>} : vector<2x32xf32>, vector<32x128xf32>, vector<2x128xf32> -> vector<2x128xf32>
    %395 = arith.addf %393, %394 : vector<2x128xf32>
    %396 = vector.extract_strided_slice %395 {offsets = [0, 0], sizes = [2, 32], strides = [1, 1]} : vector<2x128xf32> to vector<2x32xf32>
    %397 = arith.negf %396 : vector<2x32xf32>
    %398 = math.exp %397 : vector<2x32xf32>
    %cst_66 = arith.constant 1.000000e+00 : f32
    %399 = vector.broadcast %cst_66 : f32 to vector<2x32xf32>
    %400 = arith.addf %399, %398 : vector<2x32xf32>
    %401 = arith.divf %399, %400 : vector<2x32xf32>
    %402 = vector.extract_strided_slice %395 {offsets = [0, 32], sizes = [2, 32], strides = [1, 1]} : vector<2x128xf32> to vector<2x32xf32>
    %403 = arith.negf %402 : vector<2x32xf32>
    %404 = math.exp %403 : vector<2x32xf32>
    %cst_67 = arith.constant 1.000000e+00 : f32
    %405 = vector.broadcast %cst_67 : f32 to vector<2x32xf32>
    %406 = arith.addf %405, %404 : vector<2x32xf32>
    %407 = arith.divf %405, %406 : vector<2x32xf32>
    %408 = vector.extract_strided_slice %395 {offsets = [0, 64], sizes = [2, 32], strides = [1, 1]} : vector<2x128xf32> to vector<2x32xf32>
    %409 = math.tanh %408 : vector<2x32xf32>
    %410 = vector.extract_strided_slice %395 {offsets = [0, 96], sizes = [2, 32], strides = [1, 1]} : vector<2x128xf32> to vector<2x32xf32>
    %411 = arith.negf %410 : vector<2x32xf32>
    %412 = math.exp %411 : vector<2x32xf32>
    %cst_68 = arith.constant 1.000000e+00 : f32
    %413 = vector.broadcast %cst_68 : f32 to vector<2x32xf32>
    %414 = arith.addf %413, %412 : vector<2x32xf32>
    %415 = arith.divf %413, %414 : vector<2x32xf32>
    %416 = arith.mulf %407, %388 : vector<2x32xf32>
    %417 = arith.mulf %401, %409 : vector<2x32xf32>
    %418 = arith.addf %416, %417 : vector<2x32xf32>
    %419 = math.tanh %418 : vector<2x32xf32>
    %420 = arith.mulf %415, %419 : vector<2x32xf32>
    %421 = vector.extract_strided_slice %298 {offsets = [8, 0], sizes = [2, 128], strides = [1, 1]} : vector<16x128xf32> to vector<2x128xf32>
    %422 = vector.extract_strided_slice %298 {offsets = [6, 0], sizes = [2, 128], strides = [1, 1]} : vector<16x128xf32> to vector<2x128xf32>
    %423 = arith.select %19, %421, %422 : vector<2x128xi1>, vector<2x128xf32>
    %cst_69 = arith.constant dense<0.000000e+00> : vector<2x128xf32>
    %424 = tpu.matmul %420, %294, %cst_69 {dimension_numbers = #tpu.dot_dimension_numbers<[1], [0], [0], [1], [0, 0, 1, 1], [], []>} : vector<2x32xf32>, vector<32x128xf32>, vector<2x128xf32> -> vector<2x128xf32>
    %425 = arith.addf %423, %424 : vector<2x128xf32>
    %426 = vector.extract_strided_slice %425 {offsets = [0, 0], sizes = [2, 32], strides = [1, 1]} : vector<2x128xf32> to vector<2x32xf32>
    %427 = arith.negf %426 : vector<2x32xf32>
    %428 = math.exp %427 : vector<2x32xf32>
    %cst_70 = arith.constant 1.000000e+00 : f32
    %429 = vector.broadcast %cst_70 : f32 to vector<2x32xf32>
    %430 = arith.addf %429, %428 : vector<2x32xf32>
    %431 = arith.divf %429, %430 : vector<2x32xf32>
    %432 = vector.extract_strided_slice %425 {offsets = [0, 32], sizes = [2, 32], strides = [1, 1]} : vector<2x128xf32> to vector<2x32xf32>
    %433 = arith.negf %432 : vector<2x32xf32>
    %434 = math.exp %433 : vector<2x32xf32>
    %cst_71 = arith.constant 1.000000e+00 : f32
    %435 = vector.broadcast %cst_71 : f32 to vector<2x32xf32>
    %436 = arith.addf %435, %434 : vector<2x32xf32>
    %437 = arith.divf %435, %436 : vector<2x32xf32>
    %438 = vector.extract_strided_slice %425 {offsets = [0, 64], sizes = [2, 32], strides = [1, 1]} : vector<2x128xf32> to vector<2x32xf32>
    %439 = math.tanh %438 : vector<2x32xf32>
    %440 = vector.extract_strided_slice %425 {offsets = [0, 96], sizes = [2, 32], strides = [1, 1]} : vector<2x128xf32> to vector<2x32xf32>
    %441 = arith.negf %440 : vector<2x32xf32>
    %442 = math.exp %441 : vector<2x32xf32>
    %cst_72 = arith.constant 1.000000e+00 : f32
    %443 = vector.broadcast %cst_72 : f32 to vector<2x32xf32>
    %444 = arith.addf %443, %442 : vector<2x32xf32>
    %445 = arith.divf %443, %444 : vector<2x32xf32>
    %446 = arith.mulf %437, %418 : vector<2x32xf32>
    %447 = arith.mulf %431, %439 : vector<2x32xf32>
    %448 = arith.addf %446, %447 : vector<2x32xf32>
    %449 = math.tanh %448 : vector<2x32xf32>
    %450 = arith.mulf %445, %449 : vector<2x32xf32>
    %451 = vector.extract_strided_slice %298 {offsets = [10, 0], sizes = [2, 128], strides = [1, 1]} : vector<16x128xf32> to vector<2x128xf32>
    %452 = vector.extract_strided_slice %298 {offsets = [4, 0], sizes = [2, 128], strides = [1, 1]} : vector<16x128xf32> to vector<2x128xf32>
    %453 = arith.select %19, %451, %452 : vector<2x128xi1>, vector<2x128xf32>
    %cst_73 = arith.constant dense<0.000000e+00> : vector<2x128xf32>
    %454 = tpu.matmul %450, %294, %cst_73 {dimension_numbers = #tpu.dot_dimension_numbers<[1], [0], [0], [1], [0, 0, 1, 1], [], []>} : vector<2x32xf32>, vector<32x128xf32>, vector<2x128xf32> -> vector<2x128xf32>
    %455 = arith.addf %453, %454 : vector<2x128xf32>
    %456 = vector.extract_strided_slice %455 {offsets = [0, 0], sizes = [2, 32], strides = [1, 1]} : vector<2x128xf32> to vector<2x32xf32>
    %457 = arith.negf %456 : vector<2x32xf32>
    %458 = math.exp %457 : vector<2x32xf32>
    %cst_74 = arith.constant 1.000000e+00 : f32
    %459 = vector.broadcast %cst_74 : f32 to vector<2x32xf32>
    %460 = arith.addf %459, %458 : vector<2x32xf32>
    %461 = arith.divf %459, %460 : vector<2x32xf32>
    %462 = vector.extract_strided_slice %455 {offsets = [0, 32], sizes = [2, 32], strides = [1, 1]} : vector<2x128xf32> to vector<2x32xf32>
    %463 = arith.negf %462 : vector<2x32xf32>
    %464 = math.exp %463 : vector<2x32xf32>
    %cst_75 = arith.constant 1.000000e+00 : f32
    %465 = vector.broadcast %cst_75 : f32 to vector<2x32xf32>
    %466 = arith.addf %465, %464 : vector<2x32xf32>
    %467 = arith.divf %465, %466 : vector<2x32xf32>
    %468 = vector.extract_strided_slice %455 {offsets = [0, 64], sizes = [2, 32], strides = [1, 1]} : vector<2x128xf32> to vector<2x32xf32>
    %469 = math.tanh %468 : vector<2x32xf32>
    %470 = vector.extract_strided_slice %455 {offsets = [0, 96], sizes = [2, 32], strides = [1, 1]} : vector<2x128xf32> to vector<2x32xf32>
    %471 = arith.negf %470 : vector<2x32xf32>
    %472 = math.exp %471 : vector<2x32xf32>
    %cst_76 = arith.constant 1.000000e+00 : f32
    %473 = vector.broadcast %cst_76 : f32 to vector<2x32xf32>
    %474 = arith.addf %473, %472 : vector<2x32xf32>
    %475 = arith.divf %473, %474 : vector<2x32xf32>
    %476 = arith.mulf %467, %448 : vector<2x32xf32>
    %477 = arith.mulf %461, %469 : vector<2x32xf32>
    %478 = arith.addf %476, %477 : vector<2x32xf32>
    %479 = math.tanh %478 : vector<2x32xf32>
    %480 = arith.mulf %475, %479 : vector<2x32xf32>
    %481 = vector.extract_strided_slice %298 {offsets = [12, 0], sizes = [2, 128], strides = [1, 1]} : vector<16x128xf32> to vector<2x128xf32>
    %482 = vector.extract_strided_slice %298 {offsets = [2, 0], sizes = [2, 128], strides = [1, 1]} : vector<16x128xf32> to vector<2x128xf32>
    %483 = arith.select %19, %481, %482 : vector<2x128xi1>, vector<2x128xf32>
    %cst_77 = arith.constant dense<0.000000e+00> : vector<2x128xf32>
    %484 = tpu.matmul %480, %294, %cst_77 {dimension_numbers = #tpu.dot_dimension_numbers<[1], [0], [0], [1], [0, 0, 1, 1], [], []>} : vector<2x32xf32>, vector<32x128xf32>, vector<2x128xf32> -> vector<2x128xf32>
    %485 = arith.addf %483, %484 : vector<2x128xf32>
    %486 = vector.extract_strided_slice %485 {offsets = [0, 0], sizes = [2, 32], strides = [1, 1]} : vector<2x128xf32> to vector<2x32xf32>
    %487 = arith.negf %486 : vector<2x32xf32>
    %488 = math.exp %487 : vector<2x32xf32>
    %cst_78 = arith.constant 1.000000e+00 : f32
    %489 = vector.broadcast %cst_78 : f32 to vector<2x32xf32>
    %490 = arith.addf %489, %488 : vector<2x32xf32>
    %491 = arith.divf %489, %490 : vector<2x32xf32>
    %492 = vector.extract_strided_slice %485 {offsets = [0, 32], sizes = [2, 32], strides = [1, 1]} : vector<2x128xf32> to vector<2x32xf32>
    %493 = arith.negf %492 : vector<2x32xf32>
    %494 = math.exp %493 : vector<2x32xf32>
    %cst_79 = arith.constant 1.000000e+00 : f32
    %495 = vector.broadcast %cst_79 : f32 to vector<2x32xf32>
    %496 = arith.addf %495, %494 : vector<2x32xf32>
    %497 = arith.divf %495, %496 : vector<2x32xf32>
    %498 = vector.extract_strided_slice %485 {offsets = [0, 64], sizes = [2, 32], strides = [1, 1]} : vector<2x128xf32> to vector<2x32xf32>
    %499 = math.tanh %498 : vector<2x32xf32>
    %500 = vector.extract_strided_slice %485 {offsets = [0, 96], sizes = [2, 32], strides = [1, 1]} : vector<2x128xf32> to vector<2x32xf32>
    %501 = arith.negf %500 : vector<2x32xf32>
    %502 = math.exp %501 : vector<2x32xf32>
    %cst_80 = arith.constant 1.000000e+00 : f32
    %503 = vector.broadcast %cst_80 : f32 to vector<2x32xf32>
    %504 = arith.addf %503, %502 : vector<2x32xf32>
    %505 = arith.divf %503, %504 : vector<2x32xf32>
    %506 = arith.mulf %497, %478 : vector<2x32xf32>
    %507 = arith.mulf %491, %499 : vector<2x32xf32>
    %508 = arith.addf %506, %507 : vector<2x32xf32>
    %509 = math.tanh %508 : vector<2x32xf32>
    %510 = arith.mulf %505, %509 : vector<2x32xf32>
    %511 = vector.extract_strided_slice %298 {offsets = [14, 0], sizes = [2, 128], strides = [1, 1]} : vector<16x128xf32> to vector<2x128xf32>
    %512 = vector.extract_strided_slice %298 {offsets = [0, 0], sizes = [2, 128], strides = [1, 1]} : vector<16x128xf32> to vector<2x128xf32>
    %513 = arith.select %19, %511, %512 : vector<2x128xi1>, vector<2x128xf32>
    %cst_81 = arith.constant dense<0.000000e+00> : vector<2x128xf32>
    %514 = tpu.matmul %510, %294, %cst_81 {dimension_numbers = #tpu.dot_dimension_numbers<[1], [0], [0], [1], [0, 0, 1, 1], [], []>} : vector<2x32xf32>, vector<32x128xf32>, vector<2x128xf32> -> vector<2x128xf32>
    %515 = arith.addf %513, %514 : vector<2x128xf32>
    %516 = vector.extract_strided_slice %515 {offsets = [0, 0], sizes = [2, 32], strides = [1, 1]} : vector<2x128xf32> to vector<2x32xf32>
    %517 = arith.negf %516 : vector<2x32xf32>
    %518 = math.exp %517 : vector<2x32xf32>
    %cst_82 = arith.constant 1.000000e+00 : f32
    %519 = vector.broadcast %cst_82 : f32 to vector<2x32xf32>
    %520 = arith.addf %519, %518 : vector<2x32xf32>
    %521 = arith.divf %519, %520 : vector<2x32xf32>
    %522 = vector.extract_strided_slice %515 {offsets = [0, 32], sizes = [2, 32], strides = [1, 1]} : vector<2x128xf32> to vector<2x32xf32>
    %523 = arith.negf %522 : vector<2x32xf32>
    %524 = math.exp %523 : vector<2x32xf32>
    %cst_83 = arith.constant 1.000000e+00 : f32
    %525 = vector.broadcast %cst_83 : f32 to vector<2x32xf32>
    %526 = arith.addf %525, %524 : vector<2x32xf32>
    %527 = arith.divf %525, %526 : vector<2x32xf32>
    %528 = vector.extract_strided_slice %515 {offsets = [0, 64], sizes = [2, 32], strides = [1, 1]} : vector<2x128xf32> to vector<2x32xf32>
    %529 = math.tanh %528 : vector<2x32xf32>
    %530 = vector.extract_strided_slice %515 {offsets = [0, 96], sizes = [2, 32], strides = [1, 1]} : vector<2x128xf32> to vector<2x32xf32>
    %531 = arith.negf %530 : vector<2x32xf32>
    %532 = math.exp %531 : vector<2x32xf32>
    %cst_84 = arith.constant 1.000000e+00 : f32
    %533 = vector.broadcast %cst_84 : f32 to vector<2x32xf32>
    %534 = arith.addf %533, %532 : vector<2x32xf32>
    %535 = arith.divf %533, %534 : vector<2x32xf32>
    %536 = arith.mulf %527, %508 : vector<2x32xf32>
    %537 = arith.mulf %521, %529 : vector<2x32xf32>
    %538 = arith.addf %536, %537 : vector<2x32xf32>
    %539 = math.tanh %538 : vector<2x32xf32>
    %540 = arith.mulf %535, %539 : vector<2x32xf32>
    %541 = vector.extract_strided_slice %330 {offsets = [0, 0], sizes = [2, 16], strides = [1, 1]} : vector<2x32xf32> to vector<2x16xf32>
    %542 = vector.extract_strided_slice %540 {offsets = [0, 16], sizes = [2, 16], strides = [1, 1]} : vector<2x32xf32> to vector<2x16xf32>
    %543 = tpu.concatenate %541, %542 in 1 : vector<2x16xf32>, vector<2x16xf32> -> vector<2x32xf32>
    %544 = vector.extract_strided_slice %360 {offsets = [0, 0], sizes = [2, 16], strides = [1, 1]} : vector<2x32xf32> to vector<2x16xf32>
    %545 = vector.extract_strided_slice %510 {offsets = [0, 16], sizes = [2, 16], strides = [1, 1]} : vector<2x32xf32> to vector<2x16xf32>
    %546 = tpu.concatenate %544, %545 in 1 : vector<2x16xf32>, vector<2x16xf32> -> vector<2x32xf32>
    %547 = vector.extract_strided_slice %390 {offsets = [0, 0], sizes = [2, 16], strides = [1, 1]} : vector<2x32xf32> to vector<2x16xf32>
    %548 = vector.extract_strided_slice %480 {offsets = [0, 16], sizes = [2, 16], strides = [1, 1]} : vector<2x32xf32> to vector<2x16xf32>
    %549 = tpu.concatenate %547, %548 in 1 : vector<2x16xf32>, vector<2x16xf32> -> vector<2x32xf32>
    %550 = vector.extract_strided_slice %420 {offsets = [0, 0], sizes = [2, 16], strides = [1, 1]} : vector<2x32xf32> to vector<2x16xf32>
    %551 = vector.extract_strided_slice %450 {offsets = [0, 16], sizes = [2, 16], strides = [1, 1]} : vector<2x32xf32> to vector<2x16xf32>
    %552 = tpu.concatenate %550, %551 in 1 : vector<2x16xf32>, vector<2x16xf32> -> vector<2x32xf32>
    %553 = vector.extract_strided_slice %450 {offsets = [0, 0], sizes = [2, 16], strides = [1, 1]} : vector<2x32xf32> to vector<2x16xf32>
    %554 = vector.extract_strided_slice %420 {offsets = [0, 16], sizes = [2, 16], strides = [1, 1]} : vector<2x32xf32> to vector<2x16xf32>
    %555 = tpu.concatenate %553, %554 in 1 : vector<2x16xf32>, vector<2x16xf32> -> vector<2x32xf32>
    %556 = vector.extract_strided_slice %480 {offsets = [0, 0], sizes = [2, 16], strides = [1, 1]} : vector<2x32xf32> to vector<2x16xf32>
    %557 = vector.extract_strided_slice %390 {offsets = [0, 16], sizes = [2, 16], strides = [1, 1]} : vector<2x32xf32> to vector<2x16xf32>
    %558 = tpu.concatenate %556, %557 in 1 : vector<2x16xf32>, vector<2x16xf32> -> vector<2x32xf32>
    %559 = vector.extract_strided_slice %510 {offsets = [0, 0], sizes = [2, 16], strides = [1, 1]} : vector<2x32xf32> to vector<2x16xf32>
    %560 = vector.extract_strided_slice %360 {offsets = [0, 16], sizes = [2, 16], strides = [1, 1]} : vector<2x32xf32> to vector<2x16xf32>
    %561 = tpu.concatenate %559, %560 in 1 : vector<2x16xf32>, vector<2x16xf32> -> vector<2x32xf32>
    %562 = vector.extract_strided_slice %540 {offsets = [0, 0], sizes = [2, 16], strides = [1, 1]} : vector<2x32xf32> to vector<2x16xf32>
    %563 = vector.extract_strided_slice %330 {offsets = [0, 16], sizes = [2, 16], strides = [1, 1]} : vector<2x32xf32> to vector<2x16xf32>
    %564 = tpu.concatenate %562, %563 in 1 : vector<2x16xf32>, vector<2x16xf32> -> vector<2x32xf32>
    %565 = tpu.concatenate %543, %546, %549, %552, %555, %558, %561, %564 in 0 : vector<2x32xf32>, vector<2x32xf32>, vector<2x32xf32>, vector<2x32xf32>, vector<2x32xf32>, vector<2x32xf32>, vector<2x32xf32>, vector<2x32xf32> -> vector<16x32xf32>
    %c0_85 = arith.constant 0 : index
    %c0_86 = arith.constant 0 : index
    %566 = vector.load %arg7[%c0_85, %c0_86] : memref<32x2xf32, #tpu.memory_space<vmem>>, vector<32x2xf32>
    %cst_87 = arith.constant dense<0.000000e+00> : vector<16x2xf32>
    %567 = tpu.matmul %565, %566, %cst_87 {dimension_numbers = #tpu.dot_dimension_numbers<[1], [0], [0], [1], [0, 0, 1, 1], [], []>} : vector<16x32xf32>, vector<32x2xf32>, vector<16x2xf32> -> vector<16x2xf32>
    %c0_88 = arith.constant 0 : index
    %c0_89 = arith.constant 0 : index
    %568 = vector.load %arg8[%c0_88, %c0_89] : memref<1x2xf32, #tpu.memory_space<vmem>>, vector<1x2xf32>
    %569 = vector.broadcast %568 : vector<1x2xf32> to vector<16x2xf32>
    %570 = arith.addf %567, %569 : vector<16x2xf32>
    %c0_90 = arith.constant 0 : index
    %c0_91 = arith.constant 0 : index
    %571 = vector.load %arg9[%c0_90, %c0_91] : memref<16x2xf32, #tpu.memory_space<vmem>>, vector<16x2xf32>
    %572 = arith.addf %570, %571 : vector<16x2xf32>
    %573 = vector.extract_strided_slice %572 {offsets = [0, 1], sizes = [16, 1], strides = [1, 1]} : vector<16x2xf32> to vector<16x1xf32>
    %574 = vector.extract_strided_slice %572 {offsets = [0, 0], sizes = [16, 1], strides = [1, 1]} : vector<16x2xf32> to vector<16x1xf32>
    %575 = arith.subf %573, %574 : vector<16x1xf32>
    %576 = arith.negf %575 : vector<16x1xf32>
    %577 = math.exp %576 : vector<16x1xf32>
    %cst_92 = arith.constant 1.000000e+00 : f32
    %578 = vector.broadcast %cst_92 : f32 to vector<16x1xf32>
    %579 = arith.addf %578, %577 : vector<16x1xf32>
    %580 = arith.divf %578, %579 : vector<16x1xf32>
    %c0_93 = arith.constant 0 : index
    %c0_94 = arith.constant 0 : index
    %581 = vector.load %arg16[%c0_93, %c0_94] : memref<16x1xf32, #tpu.memory_space<vmem>>, vector<16x1xf32>
    tpu.vector_store %arg16[%c0_93, %c0_94], %580 {strides = array<i32>} : memref<16x1xf32, #tpu.memory_space<vmem>>, vector<16x1xf32>,
    %582 = vector.broadcast %580 : vector<16x1xf32> to vector<16x32xf32>
    %583 = arith.mulf %0, %582 : vector<16x32xf32>
    %c0_95 = arith.constant 0 : index
    %c0_96 = arith.constant 0 : index
    %584 = vector.load %arg10[%c0_95, %c0_96] : memref<32x128xf32, #tpu.memory_space<vmem>>, vector<32x128xf32>
    %cst_97 = arith.constant dense<0.000000e+00> : vector<16x128xf32>
    %585 = tpu.matmul %583, %584, %cst_97 {dimension_numbers = #tpu.dot_dimension_numbers<[1], [0], [0], [1], [0, 0, 1, 1], [], []>} : vector<16x32xf32>, vector<32x128xf32>, vector<16x128xf32> -> vector<16x128xf32>
    %c0_98 = arith.constant 0 : index
    %c0_99 = arith.constant 0 : index
    %586 = vector.load %arg12[%c0_98, %c0_99] : memref<1x128xf32, #tpu.memory_space<vmem>>, vector<1x128xf32>
    %587 = vector.broadcast %586 : vector<1x128xf32> to vector<16x128xf32>
    %588 = arith.addf %585, %587 : vector<16x128xf32>
    %c0_100 = arith.constant 0 : index
    %c0_101 = arith.constant 0 : index
    %589 = vector.load %arg11[%c0_100, %c0_101] : memref<32x128xf32, #tpu.memory_space<vmem>>, vector<32x128xf32>
    %cst_102 = arith.constant 0.000000e+00 : f32
    %590 = vector.broadcast %cst_102 : f32 to vector<2x32xf32>
    %cst_103 = arith.constant 0.000000e+00 : f32
    %591 = vector.broadcast %cst_103 : f32 to vector<2x32xf32>
    %592 = vector.extract_strided_slice %588 {offsets = [0, 0], sizes = [2, 128], strides = [1, 1]} : vector<16x128xf32> to vector<2x128xf32>
    %cst_104 = arith.constant dense<0.000000e+00> : vector<2x128xf32>
    %593 = tpu.matmul %590, %589, %cst_104 {dimension_numbers = #tpu.dot_dimension_numbers<[1], [0], [0], [1], [0, 0, 1, 1], [], []>} : vector<2x32xf32>, vector<32x128xf32>, vector<2x128xf32> -> vector<2x128xf32>
    %594 = arith.addf %592, %593 : vector<2x128xf32>
    %595 = vector.extract_strided_slice %594 {offsets = [0, 0], sizes = [2, 32], strides = [1, 1]} : vector<2x128xf32> to vector<2x32xf32>
    %596 = arith.negf %595 : vector<2x32xf32>
    %597 = math.exp %596 : vector<2x32xf32>
    %cst_105 = arith.constant 1.000000e+00 : f32
    %598 = vector.broadcast %cst_105 : f32 to vector<2x32xf32>
    %599 = arith.addf %598, %597 : vector<2x32xf32>
    %600 = arith.divf %598, %599 : vector<2x32xf32>
    %601 = vector.extract_strided_slice %594 {offsets = [0, 32], sizes = [2, 32], strides = [1, 1]} : vector<2x128xf32> to vector<2x32xf32>
    %602 = arith.negf %601 : vector<2x32xf32>
    %603 = math.exp %602 : vector<2x32xf32>
    %cst_106 = arith.constant 1.000000e+00 : f32
    %604 = vector.broadcast %cst_106 : f32 to vector<2x32xf32>
    %605 = arith.addf %604, %603 : vector<2x32xf32>
    %606 = arith.divf %604, %605 : vector<2x32xf32>
    %607 = vector.extract_strided_slice %594 {offsets = [0, 64], sizes = [2, 32], strides = [1, 1]} : vector<2x128xf32> to vector<2x32xf32>
    %608 = math.tanh %607 : vector<2x32xf32>
    %609 = vector.extract_strided_slice %594 {offsets = [0, 96], sizes = [2, 32], strides = [1, 1]} : vector<2x128xf32> to vector<2x32xf32>
    %610 = arith.negf %609 : vector<2x32xf32>
    %611 = math.exp %610 : vector<2x32xf32>
    %cst_107 = arith.constant 1.000000e+00 : f32
    %612 = vector.broadcast %cst_107 : f32 to vector<2x32xf32>
    %613 = arith.addf %612, %611 : vector<2x32xf32>
    %614 = arith.divf %612, %613 : vector<2x32xf32>
    %615 = arith.mulf %606, %591 : vector<2x32xf32>
    %616 = arith.mulf %600, %608 : vector<2x32xf32>
    %617 = arith.addf %615, %616 : vector<2x32xf32>
    %618 = math.tanh %617 : vector<2x32xf32>
    %619 = arith.mulf %614, %618 : vector<2x32xf32>
    %620 = vector.extract_strided_slice %588 {offsets = [2, 0], sizes = [2, 128], strides = [1, 1]} : vector<16x128xf32> to vector<2x128xf32>
    %cst_108 = arith.constant dense<0.000000e+00> : vector<2x128xf32>
    %621 = tpu.matmul %619, %589, %cst_108 {dimension_numbers = #tpu.dot_dimension_numbers<[1], [0], [0], [1], [0, 0, 1, 1], [], []>} : vector<2x32xf32>, vector<32x128xf32>, vector<2x128xf32> -> vector<2x128xf32>
    %622 = arith.addf %620, %621 : vector<2x128xf32>
    %623 = vector.extract_strided_slice %622 {offsets = [0, 0], sizes = [2, 32], strides = [1, 1]} : vector<2x128xf32> to vector<2x32xf32>
    %624 = arith.negf %623 : vector<2x32xf32>
    %625 = math.exp %624 : vector<2x32xf32>
    %cst_109 = arith.constant 1.000000e+00 : f32
    %626 = vector.broadcast %cst_109 : f32 to vector<2x32xf32>
    %627 = arith.addf %626, %625 : vector<2x32xf32>
    %628 = arith.divf %626, %627 : vector<2x32xf32>
    %629 = vector.extract_strided_slice %622 {offsets = [0, 32], sizes = [2, 32], strides = [1, 1]} : vector<2x128xf32> to vector<2x32xf32>
    %630 = arith.negf %629 : vector<2x32xf32>
    %631 = math.exp %630 : vector<2x32xf32>
    %cst_110 = arith.constant 1.000000e+00 : f32
    %632 = vector.broadcast %cst_110 : f32 to vector<2x32xf32>
    %633 = arith.addf %632, %631 : vector<2x32xf32>
    %634 = arith.divf %632, %633 : vector<2x32xf32>
    %635 = vector.extract_strided_slice %622 {offsets = [0, 64], sizes = [2, 32], strides = [1, 1]} : vector<2x128xf32> to vector<2x32xf32>
    %636 = math.tanh %635 : vector<2x32xf32>
    %637 = vector.extract_strided_slice %622 {offsets = [0, 96], sizes = [2, 32], strides = [1, 1]} : vector<2x128xf32> to vector<2x32xf32>
    %638 = arith.negf %637 : vector<2x32xf32>
    %639 = math.exp %638 : vector<2x32xf32>
    %cst_111 = arith.constant 1.000000e+00 : f32
    %640 = vector.broadcast %cst_111 : f32 to vector<2x32xf32>
    %641 = arith.addf %640, %639 : vector<2x32xf32>
    %642 = arith.divf %640, %641 : vector<2x32xf32>
    %643 = arith.mulf %634, %617 : vector<2x32xf32>
    %644 = arith.mulf %628, %636 : vector<2x32xf32>
    %645 = arith.addf %643, %644 : vector<2x32xf32>
    %646 = math.tanh %645 : vector<2x32xf32>
    %647 = arith.mulf %642, %646 : vector<2x32xf32>
    %648 = vector.extract_strided_slice %588 {offsets = [4, 0], sizes = [2, 128], strides = [1, 1]} : vector<16x128xf32> to vector<2x128xf32>
    %cst_112 = arith.constant dense<0.000000e+00> : vector<2x128xf32>
    %649 = tpu.matmul %647, %589, %cst_112 {dimension_numbers = #tpu.dot_dimension_numbers<[1], [0], [0], [1], [0, 0, 1, 1], [], []>} : vector<2x32xf32>, vector<32x128xf32>, vector<2x128xf32> -> vector<2x128xf32>
    %650 = arith.addf %648, %649 : vector<2x128xf32>
    %651 = vector.extract_strided_slice %650 {offsets = [0, 0], sizes = [2, 32], strides = [1, 1]} : vector<2x128xf32> to vector<2x32xf32>
    %652 = arith.negf %651 : vector<2x32xf32>
    %653 = math.exp %652 : vector<2x32xf32>
    %cst_113 = arith.constant 1.000000e+00 : f32
    %654 = vector.broadcast %cst_113 : f32 to vector<2x32xf32>
    %655 = arith.addf %654, %653 : vector<2x32xf32>
    %656 = arith.divf %654, %655 : vector<2x32xf32>
    %657 = vector.extract_strided_slice %650 {offsets = [0, 32], sizes = [2, 32], strides = [1, 1]} : vector<2x128xf32> to vector<2x32xf32>
    %658 = arith.negf %657 : vector<2x32xf32>
    %659 = math.exp %658 : vector<2x32xf32>
    %cst_114 = arith.constant 1.000000e+00 : f32
    %660 = vector.broadcast %cst_114 : f32 to vector<2x32xf32>
    %661 = arith.addf %660, %659 : vector<2x32xf32>
    %662 = arith.divf %660, %661 : vector<2x32xf32>
    %663 = vector.extract_strided_slice %650 {offsets = [0, 64], sizes = [2, 32], strides = [1, 1]} : vector<2x128xf32> to vector<2x32xf32>
    %664 = math.tanh %663 : vector<2x32xf32>
    %665 = vector.extract_strided_slice %650 {offsets = [0, 96], sizes = [2, 32], strides = [1, 1]} : vector<2x128xf32> to vector<2x32xf32>
    %666 = arith.negf %665 : vector<2x32xf32>
    %667 = math.exp %666 : vector<2x32xf32>
    %cst_115 = arith.constant 1.000000e+00 : f32
    %668 = vector.broadcast %cst_115 : f32 to vector<2x32xf32>
    %669 = arith.addf %668, %667 : vector<2x32xf32>
    %670 = arith.divf %668, %669 : vector<2x32xf32>
    %671 = arith.mulf %662, %645 : vector<2x32xf32>
    %672 = arith.mulf %656, %664 : vector<2x32xf32>
    %673 = arith.addf %671, %672 : vector<2x32xf32>
    %674 = math.tanh %673 : vector<2x32xf32>
    %675 = arith.mulf %670, %674 : vector<2x32xf32>
    %676 = vector.extract_strided_slice %588 {offsets = [6, 0], sizes = [2, 128], strides = [1, 1]} : vector<16x128xf32> to vector<2x128xf32>
    %cst_116 = arith.constant dense<0.000000e+00> : vector<2x128xf32>
    %677 = tpu.matmul %675, %589, %cst_116 {dimension_numbers = #tpu.dot_dimension_numbers<[1], [0], [0], [1], [0, 0, 1, 1], [], []>} : vector<2x32xf32>, vector<32x128xf32>, vector<2x128xf32> -> vector<2x128xf32>
    %678 = arith.addf %676, %677 : vector<2x128xf32>
    %679 = vector.extract_strided_slice %678 {offsets = [0, 0], sizes = [2, 32], strides = [1, 1]} : vector<2x128xf32> to vector<2x32xf32>
    %680 = arith.negf %679 : vector<2x32xf32>
    %681 = math.exp %680 : vector<2x32xf32>
    %cst_117 = arith.constant 1.000000e+00 : f32
    %682 = vector.broadcast %cst_117 : f32 to vector<2x32xf32>
    %683 = arith.addf %682, %681 : vector<2x32xf32>
    %684 = arith.divf %682, %683 : vector<2x32xf32>
    %685 = vector.extract_strided_slice %678 {offsets = [0, 32], sizes = [2, 32], strides = [1, 1]} : vector<2x128xf32> to vector<2x32xf32>
    %686 = arith.negf %685 : vector<2x32xf32>
    %687 = math.exp %686 : vector<2x32xf32>
    %cst_118 = arith.constant 1.000000e+00 : f32
    %688 = vector.broadcast %cst_118 : f32 to vector<2x32xf32>
    %689 = arith.addf %688, %687 : vector<2x32xf32>
    %690 = arith.divf %688, %689 : vector<2x32xf32>
    %691 = vector.extract_strided_slice %678 {offsets = [0, 64], sizes = [2, 32], strides = [1, 1]} : vector<2x128xf32> to vector<2x32xf32>
    %692 = math.tanh %691 : vector<2x32xf32>
    %693 = vector.extract_strided_slice %678 {offsets = [0, 96], sizes = [2, 32], strides = [1, 1]} : vector<2x128xf32> to vector<2x32xf32>
    %694 = arith.negf %693 : vector<2x32xf32>
    %695 = math.exp %694 : vector<2x32xf32>
    %cst_119 = arith.constant 1.000000e+00 : f32
    %696 = vector.broadcast %cst_119 : f32 to vector<2x32xf32>
    %697 = arith.addf %696, %695 : vector<2x32xf32>
    %698 = arith.divf %696, %697 : vector<2x32xf32>
    %699 = arith.mulf %690, %673 : vector<2x32xf32>
    %700 = arith.mulf %684, %692 : vector<2x32xf32>
    %701 = arith.addf %699, %700 : vector<2x32xf32>
    %702 = math.tanh %701 : vector<2x32xf32>
    %703 = arith.mulf %698, %702 : vector<2x32xf32>
    %704 = vector.extract_strided_slice %588 {offsets = [8, 0], sizes = [2, 128], strides = [1, 1]} : vector<16x128xf32> to vector<2x128xf32>
    %cst_120 = arith.constant dense<0.000000e+00> : vector<2x128xf32>
    %705 = tpu.matmul %703, %589, %cst_120 {dimension_numbers = #tpu.dot_dimension_numbers<[1], [0], [0], [1], [0, 0, 1, 1], [], []>} : vector<2x32xf32>, vector<32x128xf32>, vector<2x128xf32> -> vector<2x128xf32>
    %706 = arith.addf %704, %705 : vector<2x128xf32>
    %707 = vector.extract_strided_slice %706 {offsets = [0, 0], sizes = [2, 32], strides = [1, 1]} : vector<2x128xf32> to vector<2x32xf32>
    %708 = arith.negf %707 : vector<2x32xf32>
    %709 = math.exp %708 : vector<2x32xf32>
    %cst_121 = arith.constant 1.000000e+00 : f32
    %710 = vector.broadcast %cst_121 : f32 to vector<2x32xf32>
    %711 = arith.addf %710, %709 : vector<2x32xf32>
    %712 = arith.divf %710, %711 : vector<2x32xf32>
    %713 = vector.extract_strided_slice %706 {offsets = [0, 32], sizes = [2, 32], strides = [1, 1]} : vector<2x128xf32> to vector<2x32xf32>
    %714 = arith.negf %713 : vector<2x32xf32>
    %715 = math.exp %714 : vector<2x32xf32>
    %cst_122 = arith.constant 1.000000e+00 : f32
    %716 = vector.broadcast %cst_122 : f32 to vector<2x32xf32>
    %717 = arith.addf %716, %715 : vector<2x32xf32>
    %718 = arith.divf %716, %717 : vector<2x32xf32>
    %719 = vector.extract_strided_slice %706 {offsets = [0, 64], sizes = [2, 32], strides = [1, 1]} : vector<2x128xf32> to vector<2x32xf32>
    %720 = math.tanh %719 : vector<2x32xf32>
    %721 = vector.extract_strided_slice %706 {offsets = [0, 96], sizes = [2, 32], strides = [1, 1]} : vector<2x128xf32> to vector<2x32xf32>
    %722 = arith.negf %721 : vector<2x32xf32>
    %723 = math.exp %722 : vector<2x32xf32>
    %cst_123 = arith.constant 1.000000e+00 : f32
    %724 = vector.broadcast %cst_123 : f32 to vector<2x32xf32>
    %725 = arith.addf %724, %723 : vector<2x32xf32>
    %726 = arith.divf %724, %725 : vector<2x32xf32>
    %727 = arith.mulf %718, %701 : vector<2x32xf32>
    %728 = arith.mulf %712, %720 : vector<2x32xf32>
    %729 = arith.addf %727, %728 : vector<2x32xf32>
    %730 = math.tanh %729 : vector<2x32xf32>
    %731 = arith.mulf %726, %730 : vector<2x32xf32>
    %732 = vector.extract_strided_slice %588 {offsets = [10, 0], sizes = [2, 128], strides = [1, 1]} : vector<16x128xf32> to vector<2x128xf32>
    %cst_124 = arith.constant dense<0.000000e+00> : vector<2x128xf32>
    %733 = tpu.matmul %731, %589, %cst_124 {dimension_numbers = #tpu.dot_dimension_numbers<[1], [0], [0], [1], [0, 0, 1, 1], [], []>} : vector<2x32xf32>, vector<32x128xf32>, vector<2x128xf32> -> vector<2x128xf32>
    %734 = arith.addf %732, %733 : vector<2x128xf32>
    %735 = vector.extract_strided_slice %734 {offsets = [0, 0], sizes = [2, 32], strides = [1, 1]} : vector<2x128xf32> to vector<2x32xf32>
    %736 = arith.negf %735 : vector<2x32xf32>
    %737 = math.exp %736 : vector<2x32xf32>
    %cst_125 = arith.constant 1.000000e+00 : f32
    %738 = vector.broadcast %cst_125 : f32 to vector<2x32xf32>
    %739 = arith.addf %738, %737 : vector<2x32xf32>
    %740 = arith.divf %738, %739 : vector<2x32xf32>
    %741 = vector.extract_strided_slice %734 {offsets = [0, 32], sizes = [2, 32], strides = [1, 1]} : vector<2x128xf32> to vector<2x32xf32>
    %742 = arith.negf %741 : vector<2x32xf32>
    %743 = math.exp %742 : vector<2x32xf32>
    %cst_126 = arith.constant 1.000000e+00 : f32
    %744 = vector.broadcast %cst_126 : f32 to vector<2x32xf32>
    %745 = arith.addf %744, %743 : vector<2x32xf32>
    %746 = arith.divf %744, %745 : vector<2x32xf32>
    %747 = vector.extract_strided_slice %734 {offsets = [0, 64], sizes = [2, 32], strides = [1, 1]} : vector<2x128xf32> to vector<2x32xf32>
    %748 = math.tanh %747 : vector<2x32xf32>
    %749 = vector.extract_strided_slice %734 {offsets = [0, 96], sizes = [2, 32], strides = [1, 1]} : vector<2x128xf32> to vector<2x32xf32>
    %750 = arith.negf %749 : vector<2x32xf32>
    %751 = math.exp %750 : vector<2x32xf32>
    %cst_127 = arith.constant 1.000000e+00 : f32
    %752 = vector.broadcast %cst_127 : f32 to vector<2x32xf32>
    %753 = arith.addf %752, %751 : vector<2x32xf32>
    %754 = arith.divf %752, %753 : vector<2x32xf32>
    %755 = arith.mulf %746, %729 : vector<2x32xf32>
    %756 = arith.mulf %740, %748 : vector<2x32xf32>
    %757 = arith.addf %755, %756 : vector<2x32xf32>
    %758 = math.tanh %757 : vector<2x32xf32>
    %759 = arith.mulf %754, %758 : vector<2x32xf32>
    %760 = vector.extract_strided_slice %588 {offsets = [12, 0], sizes = [2, 128], strides = [1, 1]} : vector<16x128xf32> to vector<2x128xf32>
    %cst_128 = arith.constant dense<0.000000e+00> : vector<2x128xf32>
    %761 = tpu.matmul %759, %589, %cst_128 {dimension_numbers = #tpu.dot_dimension_numbers<[1], [0], [0], [1], [0, 0, 1, 1], [], []>} : vector<2x32xf32>, vector<32x128xf32>, vector<2x128xf32> -> vector<2x128xf32>
    %762 = arith.addf %760, %761 : vector<2x128xf32>
    %763 = vector.extract_strided_slice %762 {offsets = [0, 0], sizes = [2, 32], strides = [1, 1]} : vector<2x128xf32> to vector<2x32xf32>
    %764 = arith.negf %763 : vector<2x32xf32>
    %765 = math.exp %764 : vector<2x32xf32>
    %cst_129 = arith.constant 1.000000e+00 : f32
    %766 = vector.broadcast %cst_129 : f32 to vector<2x32xf32>
    %767 = arith.addf %766, %765 : vector<2x32xf32>
    %768 = arith.divf %766, %767 : vector<2x32xf32>
    %769 = vector.extract_strided_slice %762 {offsets = [0, 32], sizes = [2, 32], strides = [1, 1]} : vector<2x128xf32> to vector<2x32xf32>
    %770 = arith.negf %769 : vector<2x32xf32>
    %771 = math.exp %770 : vector<2x32xf32>
    %cst_130 = arith.constant 1.000000e+00 : f32
    %772 = vector.broadcast %cst_130 : f32 to vector<2x32xf32>
    %773 = arith.addf %772, %771 : vector<2x32xf32>
    %774 = arith.divf %772, %773 : vector<2x32xf32>
    %775 = vector.extract_strided_slice %762 {offsets = [0, 64], sizes = [2, 32], strides = [1, 1]} : vector<2x128xf32> to vector<2x32xf32>
    %776 = math.tanh %775 : vector<2x32xf32>
    %777 = vector.extract_strided_slice %762 {offsets = [0, 96], sizes = [2, 32], strides = [1, 1]} : vector<2x128xf32> to vector<2x32xf32>
    %778 = arith.negf %777 : vector<2x32xf32>
    %779 = math.exp %778 : vector<2x32xf32>
    %cst_131 = arith.constant 1.000000e+00 : f32
    %780 = vector.broadcast %cst_131 : f32 to vector<2x32xf32>
    %781 = arith.addf %780, %779 : vector<2x32xf32>
    %782 = arith.divf %780, %781 : vector<2x32xf32>
    %783 = arith.mulf %774, %757 : vector<2x32xf32>
    %784 = arith.mulf %768, %776 : vector<2x32xf32>
    %785 = arith.addf %783, %784 : vector<2x32xf32>
    %786 = math.tanh %785 : vector<2x32xf32>
    %787 = arith.mulf %782, %786 : vector<2x32xf32>
    %788 = vector.extract_strided_slice %588 {offsets = [14, 0], sizes = [2, 128], strides = [1, 1]} : vector<16x128xf32> to vector<2x128xf32>
    %cst_132 = arith.constant dense<0.000000e+00> : vector<2x128xf32>
    %789 = tpu.matmul %787, %589, %cst_132 {dimension_numbers = #tpu.dot_dimension_numbers<[1], [0], [0], [1], [0, 0, 1, 1], [], []>} : vector<2x32xf32>, vector<32x128xf32>, vector<2x128xf32> -> vector<2x128xf32>
    %790 = arith.addf %788, %789 : vector<2x128xf32>
    %791 = vector.extract_strided_slice %790 {offsets = [0, 0], sizes = [2, 32], strides = [1, 1]} : vector<2x128xf32> to vector<2x32xf32>
    %792 = arith.negf %791 : vector<2x32xf32>
    %793 = math.exp %792 : vector<2x32xf32>
    %cst_133 = arith.constant 1.000000e+00 : f32
    %794 = vector.broadcast %cst_133 : f32 to vector<2x32xf32>
    %795 = arith.addf %794, %793 : vector<2x32xf32>
    %796 = arith.divf %794, %795 : vector<2x32xf32>
    %797 = vector.extract_strided_slice %790 {offsets = [0, 32], sizes = [2, 32], strides = [1, 1]} : vector<2x128xf32> to vector<2x32xf32>
    %798 = arith.negf %797 : vector<2x32xf32>
    %799 = math.exp %798 : vector<2x32xf32>
    %cst_134 = arith.constant 1.000000e+00 : f32
    %800 = vector.broadcast %cst_134 : f32 to vector<2x32xf32>
    %801 = arith.addf %800, %799 : vector<2x32xf32>
    %802 = arith.divf %800, %801 : vector<2x32xf32>
    %803 = vector.extract_strided_slice %790 {offsets = [0, 64], sizes = [2, 32], strides = [1, 1]} : vector<2x128xf32> to vector<2x32xf32>
    %804 = math.tanh %803 : vector<2x32xf32>
    %805 = vector.extract_strided_slice %790 {offsets = [0, 96], sizes = [2, 32], strides = [1, 1]} : vector<2x128xf32> to vector<2x32xf32>
    %806 = arith.negf %805 : vector<2x32xf32>
    %807 = math.exp %806 : vector<2x32xf32>
    %cst_135 = arith.constant 1.000000e+00 : f32
    %808 = vector.broadcast %cst_135 : f32 to vector<2x32xf32>
    %809 = arith.addf %808, %807 : vector<2x32xf32>
    %810 = arith.divf %808, %809 : vector<2x32xf32>
    %811 = arith.mulf %802, %785 : vector<2x32xf32>
    %812 = arith.mulf %796, %804 : vector<2x32xf32>
    %813 = arith.addf %811, %812 : vector<2x32xf32>
    %814 = math.tanh %813 : vector<2x32xf32>
    %815 = arith.mulf %810, %814 : vector<2x32xf32>
    %c0_136 = arith.constant 0 : index
    %c0_137 = arith.constant 0 : index
    %816 = vector.load %arg13[%c0_136, %c0_137] : memref<32x5xf32, #tpu.memory_space<vmem>>, vector<32x5xf32>
    %cst_138 = arith.constant dense<0.000000e+00> : vector<2x5xf32>
    %817 = tpu.matmul %815, %816, %cst_138 {dimension_numbers = #tpu.dot_dimension_numbers<[1], [0], [0], [1], [0, 0, 1, 1], [], []>} : vector<2x32xf32>, vector<32x5xf32>, vector<2x5xf32> -> vector<2x5xf32>
    %c0_139 = arith.constant 0 : index
    %c0_140 = arith.constant 0 : index
    %818 = vector.load %arg14[%c0_139, %c0_140] : memref<1x5xf32, #tpu.memory_space<vmem>>, vector<1x5xf32>
    %819 = vector.broadcast %818 : vector<1x5xf32> to vector<2x5xf32>
    %820 = arith.addf %817, %819 : vector<2x5xf32>
    %c0_141 = arith.constant 0 : index
    %c0_142 = arith.constant 0 : index
    %821 = vector.load %arg15[%c0_141, %c0_142] : memref<2x5xf32, #tpu.memory_space<vmem>>, vector<2x5xf32>
    tpu.vector_store %arg15[%c0_141, %c0_142], %820 {strides = array<i32>} : memref<2x5xf32, #tpu.memory_space<vmem>>, vector<2x5xf32>,
    return
  }
}

</mosaic_0001>

<bundles_post_ra>
// kernel: forward.1
= control target key start
LH: loop header
LB: loop body
LE: loop exit
PB: predicated region body
PF: predicated region fallthrough
CT: control target
= control target key end

     0   :  { %s4880_s0 = inlined_call_operand.vmem [shape: f32[16,32], index: 0, kind: input, shape index: {}]   ;;  %s4881_s1 = inlined_call_operand.vmem [shape: f32[32,128], index: 1, kind: input, shape index: {}]   ;;  %s4882_s2 = inlined_call_operand.vmem [shape: f32[32,128], index: 2, kind: input, shape index: {}]   ;;  %s4883_s3 = inlined_call_operand.vmem [shape: f32[1,128], index: 3, kind: input, shape index: {}]   ;;  %s4884_s4 = inlined_call_operand.vmem [shape: f32[32,128], index: 4, kind: input, shape index: {}]   ;;  %s4885_s5 = inlined_call_operand.vmem [shape: f32[32,128], index: 5, kind: input, shape index: {}]   ;;  %s4886_s6 = inlined_call_operand.vmem [shape: f32[1,128], index: 6, kind: input, shape index: {}]   ;;  %s4887_s7 = inlined_call_operand.vmem [shape: f32[32,2], index: 7, kind: input, shape index: {}]   ;;  %s4888_s8 = inlined_call_operand.vmem [shape: f32[1,2], index: 8, kind: input, shape index: {}]   ;;  %s4889_s9 = inlined_call_operand.vmem [shape: f32[16,2], index: 9, kind: input, shape index: {}]   ;;  %s4890_s10 = inlined_call_operand.vmem [shape: f32[32,128], index: 10, kind: input, shape index: {}]   ;;  %s4891_s11 = inlined_call_operand.vmem [shape: f32[32,128], index: 11, kind: input, shape index: {}]   ;;  %s4892_s12 = inlined_call_operand.vmem [shape: f32[1,128], index: 12, kind: input, shape index: {}]   ;;  %s4893_s13 = inlined_call_operand.vmem [shape: f32[32,5], index: 13, kind: input, shape index: {}]   ;;  %s4894_s14 = inlined_call_operand.vmem [shape: f32[1,5], index: 14, kind: input, shape index: {}]   ;;  %s4895_s15 = inlined_call_operand.hbm [shape: f32[2,5], index: 15, kind: output, shape index: {0}]   ;;  %s4896_s16 = inlined_call_operand.vmem [shape: f32[16,1], index: 16, kind: output, shape index: {1}]  }
   0x1   :  { %4898 = sst [smem:[#allocation5_spill]] %s4880_s0 }
   0x2   :  { %v73_v0 = vld [vmem:[%s4881_s1 + $0x18] sm:$0xff]  ;;  %v72_v1 = vld [vmem:[%s4881_s1 + $0x10] sm:$0xff]  ;;  %v4048_v2 = vmov 0.0   ;;  %v71_v5 = vld [vmem:[%s4881_s1 + $0x8] sm:$0xff]  ;;  %s4899_s18 = sld [smem:[#allocation5_spill]]  ;;  %vm85_vm0 = vcmask 261120  }
   0x3   :  { %3495 = vmatprep.subr.mxu0 %v73_v0  ;;  %3506 = vmatprep.subr.mxu1 %v4048_v2  ;;  %v4151_v3 = vld [vmem:[%s4882_s2 + $0x18] sm:$0xff]  ;;  %v4156_v4 = vld [vmem:[%s4882_s2 + $0x10] sm:$0xff] }
   0x4   :  { %3496 = vmatpush3.msra.mxu0 %v73_v0  ;;  %3507 = vmatpush3.msra.mxu1 %v4151_v3 }
   0x5   :  { %3497 = vmatprep.subr.mxu0 %v72_v1  ;;  %3508 = vmatprep.subr.mxu1 %v4048_v2 }
   0x8   :  { %v53_v6 = vld [vmem:[%s4899_s18] sm:$0xff] }
   0x9   :  { %22 = vsyncpa [#allocation3], 0  ;;  %3498 = vmatpush3.msra.mxu0 %v72_v1  ;;  %v70_v7 = vld [vmem:[%s4881_s1] sm:$0xff]  ;;  %3509 = vmatpush3.msra.mxu1 %v4156_v4  ;;  %v4173_v8 = vld [vmem:[%s4882_s2 + $0x8] sm:$0xff]  ;;  %vm4049_vm1 = vmmov 0   ;;  %v55_v11 = vlaneseq  ;;  %s4051_s27 = smov 32  }
   0xa   :  { %3499 = vmatprep.subr.mxu0 %v71_v5  ;;  %3503 = vmatprep.mubr.msk.f32.mxu0 %vm85_vm0, %v53_v6  ;;  %v54_v9 = vld [vmem:[%s4899_s18 + $0x8] sm:$0xff]  ;;  %v4183_v10 = vld [vmem:[%s4882_s2] sm:$0xff]  ;;  %vm1029_vm3 = vcmask 130048   ;;  %vm1082_vm4 = vcmask 1041408   ;;  %vm1086_vm5 = vcmask 1045504   ;;  %vm1084_vm6 = vcmask 1043456  }
   0xb   :  { %3500 = vmatpush3.msra.mxu0 %v71_v5  ;;  %3510 = vmatprep.subr.mxu1 %v4048_v2  ;;  %v56_v12 = vand.u32 127, %v55_v11  ;;  %v3285_v13 = vld [vmem:[%s4883_s3] ss:$0 sm:$0xff]  ;;  %s4050_s3 = smov 64   ;;  %s4052_s1 = smov 1   ;;  %vm2230_vm7 = vcmask 7168  }
   0xc   :  { %3501 = vmatprep.subr.mxu0 %v70_v7  ;;  %3511 = vmatpush3.msra.mxu1 %v4173_v8  ;;  %s4054_s28 = smov 127   ;;  %s4055_s17 = smov [#allocation2]   ;;  %vm3265_vm8 = vcmask 33792  }
   0xd   :  { %3502 = vmatpush3.msra.mxu0 %v70_v7  ;;  %3512 = vmatprep.subr.mxu1 %v4048_v2  ;;  %v61_v14 = vand.u32 31, %v56_v12  ;;  %s3273_s19 = sshll.u32 %s4055_s17, 4  ;;  %s3274_s19 = int_to_ptr.vmem [resolvable:$true] %s3273_s19 }
   0xe   :  { %3504 = vmatmul.mubr.msk.f32.vlgmr.msra.gmra.mxu0 %vm85_vm0, %v54_v9  ;;  %3513 = vmatpush3.msra.mxu1 %v4183_v10  ;;  %p4031_p1 = scmp.lt.s32.totalorder %s3274_s19, %s3274_s19 }
   0xf   :  { %3514 = vmatprep.mubr.msk.f32.mxu1 %vm4049_vm1, %v4048_v2  ;;  %3517 = vmatprep.subr.mxu0 %v4048_v2  ;;  %vm4217_vm2 = vcmp.lt.s32.totalorder %v61_v14, 16 }
  0x10   :  { %3515 = vmatmul.mubr.f32.vlgmr.msra.gmra.mxu1 %v4048_v2  ;;  %3518 = vmatpush3.msra.mxu0 %v4151_v3 }
  0x11   :  { %3519 = vmatprep.subr.mxu0 %v4048_v2  ;;  %3525 = vmatprep.mubr.msk.f32.mxu0 %vm4049_vm1, %v4048_v2 }
  0x12   :  { %3520 = vmatpush3.msra.mxu0 %v4156_v4  ;;  %3528 = vmatprep.subr.mxu1 %v4048_v2 }
  0x13   :  { %3521 = vmatprep.subr.mxu0 %v4048_v2  ;;  %3529 = vmatpush3.msra.mxu1 %v4151_v3 }
  0x14   :  { %3522 = vmatpush3.msra.mxu0 %v4173_v8  ;;  %3530 = vmatprep.subr.mxu1 %v4048_v2 }
  0x15   :  { %3523 = vmatprep.subr.mxu0 %v4048_v2  ;;  %3531 = vmatpush3.msra.mxu1 %v4156_v4 }
  0x16   :  { %3524 = vmatpush3.msra.mxu0 %v4183_v10  ;;  %3532 = vmatprep.subr.mxu1 %v4048_v2 }
  0x17   :  { %3533 = vmatpush3.msra.mxu1 %v4173_v8  ;;  %3536 = vmatprep.mubr.msk.f32.mxu1 %vm4049_vm1, %v4048_v2 }
  0x18   :  { %3534 = vmatprep.subr.mxu1 %v4048_v2  ;;  %3539 = vmatprep.subr.mxu0 %v4048_v2 }
  0x19   :  { %3535 = vmatpush3.msra.mxu1 %v4183_v10 }
  0x1a   :  { %3550 = vmatprep.subr.mxu1 %v4048_v2 }
  0xce   :  { %v3505_v15 = vpop.f32.mrf.mxu0 }
  0xcf   :  { %v164_v16 = vadd.f32 %v3505_v15, %v3285_v13 }
  0xd0   :  { %v158_v17 = vpop.f32.mrf.mxu0  ;;  %v240_v19 = vpop.f32.mrf.mxu1 }
  0xd1   :  { %v159_v20 = vadd.f32 %v3285_v13, %v158_v17  ;;  %v168_v21 = vrot.slane %v164_v16, 6  ;;  %v269_v22 = vrot.slane %v164_v16, 2 }
  0xd2   :  { %v3516_v23 = vpop.f32.mrf.mxu1 }
  0xd3   :  { %v4223_v24 = vsel %vm4217_vm2, %v159_v20, %v168_v21  ;;  %v4227_v25 = vsel %vm4217_vm2, %v159_v20, %v269_v22  ;;  %v593_v26 = vrot.slane %v159_v20, 6  ;;  %v700_v27 = vrot.slane %v159_v20, 2 }
  0xd4   :  { %v244_v28 = vadd.f32 %v240_v19, %v4223_v24 }
  0xd5   :  { %v4232_v29 = vsel %vm4217_vm2, %v164_v16, %v593_v26  ;;  %v4236_v30 = vsel %vm4217_vm2, %v164_v16, %v700_v27 }
  0xd6   :  { %3824 = vtanh.f32 %v244_v28  ;;  %v3288_v32 = vmul.f32 -1.442695, %v244_v28 }
  0xd8   :  { %3826 = vpow2.f32 %v3288_v32 }
  0xe3   :  { %v3825_v31 = vpop.eup %3824 }
  0xe4   :  { %254 = vrot.lane.b32.xlu0 %v3825_v31, %s4050_s3 }
  0xe5   :  { %v3827_v33 = vpop.eup %3826 }
  0xe6   :  { %v248_v34 = vadd.f32 1.0, %v3827_v33 }
  0xe8   :  { %3828 = vrcp.f32 %v248_v34 }
  0xf5   :  { %v3829_v35 = vpop.eup %3828 }
  0xf6   :  { %v252_v38 = vmul.f32 0.0, %v3829_v35 }
 0x156   :  { %v255_v36 = vpop.permute.xlu0 %254 }
 0x157   :  { %v257_v37 = vmul.f32 %v3829_v35, %v255_v36 }
 0x159   :  { %259 = vrot.lane.b32.xlu0 %v257_v37, %s4051_s27 }
 0x1cb   :  { %v260_v39 = vpop.permute.xlu0 %259 }
 0x1cc   :  { %v262_v40 = vadd.f32 %v260_v39, %v252_v38 }
 0x1ce   :  { %3830 = vtanh.f32 %v262_v40  ;;  %v359_v56 = vrot.slane %v262_v40, 6 }
 0x1db   :  { %v3831_v41 = vpop.eup %3830 }
 0x1dc   :  { %265 = vrot.lane.b32.xlu1 %v3831_v41, %s4050_s3 }
 0x24e   :  { %v266_v42 = vpop.permute.xlu1 %265 }
 0x24f   :  { %v4241_v43 = vmul.f32 %v3829_v35, %v266_v42 }
 0x251   :  { %273 = vrot.lane.b32.xlu1 %v4241_v43, %s4051_s27 }
 0x2c3   :  { %v4245_v44 = vpop.permute.xlu1 %273 }
 0x2c4   :  { %3526 = vmatmul.mubr.msk.f32.vlgmr.msra.gmra.mxu0 %vm85_vm0, %v4245_v44 }
 0x2c5   :  { %3540 = vmatpush3.msra.mxu0 %v4151_v3  ;;  %3547 = vmatprep.mubr.msk.f32.mxu0 %vm4049_vm1, %v4048_v2 }
 0x2c6   :  { %3541 = vmatprep.subr.mxu0 %v4048_v2 }
 0x2c7   :  { %3542 = vmatpush3.msra.mxu0 %v4156_v4 }
 0x2c8   :  { %3543 = vmatprep.subr.mxu0 %v4048_v2 }
 0x2c9   :  { %3544 = vmatpush3.msra.mxu0 %v4173_v8 }
 0x2ca   :  { %3545 = vmatprep.subr.mxu0 %v4048_v2 }
 0x2cb   :  { %3546 = vmatpush3.msra.mxu0 %v4183_v10 }
 0x2cc   :  { %3561 = vmatprep.subr.mxu0 %v4048_v2 }
 0x384   :  { %v343_v45 = vpop.f32.mrf.mxu0 }
 0x385   :  { %v348_v46 = vrot.slane %v343_v45, 6 }
 0x386   :  { %v3527_v47 = vpop.f32.mrf.mxu0 }
 0x387   :  { %v350_v48 = vadd.f32 %v348_v46, %v4227_v25 }
 0x389   :  { %3832 = vtanh.f32 %v350_v48  ;;  %v3290_v50 = vmul.f32 -1.442695, %v350_v48 }
 0x38b   :  { %3834 = vpow2.f32 %v3290_v50 }
 0x396   :  { %v3833_v49 = vpop.eup %3832 }
 0x397   :  { %363 = vrot.lane.b32.xlu0 %v3833_v49, %s4050_s3 }
 0x398   :  { %v3835_v51 = vpop.eup %3834 }
 0x399   :  { %v354_v52 = vadd.f32 1.0, %v3835_v51 }
 0x39b   :  { %3836 = vrcp.f32 %v354_v52 }
 0x3a8   :  { %v3837_v53 = vpop.eup %3836 }
 0x3a9   :  { %v361_v57 = vmul.f32 %v3837_v53, %v359_v56 }
 0x409   :  { %v364_v54 = vpop.permute.xlu0 %363 }
 0x40a   :  { %v366_v55 = vmul.f32 %v3837_v53, %v364_v54 }
 0x40c   :  { %368 = vrot.lane.b32.xlu1 %v366_v55, %s4051_s27 }
 0x47e   :  { %v369_v58 = vpop.permute.xlu1 %368 }
 0x47f   :  { %v371_v59 = vadd.f32 %v369_v58, %v361_v57 }
 0x481   :  { %3838 = vtanh.f32 %v371_v59  ;;  %v466_v17 = vrot.slane %v371_v59, 6 }
 0x48e   :  { %v3839_v60 = vpop.eup %3838 }
 0x48f   :  { %374 = vrot.lane.b32.xlu0 %v3839_v60, %s4050_s3 }
 0x501   :  { %v375_v61 = vpop.permute.xlu0 %374 }
 0x502   :  { %v4263_v62 = vmul.f32 %v3837_v53, %v375_v61 }
 0x504   :  { %v379_v63 = vrot.slane %v4263_v62, 2 }
 0x506   :  { %380 = vrot.lane.b32.xlu1 %v379_v63, %s4051_s27 }
 0x578   :  { %v381_v0 = vpop.permute.xlu1 %380 }
 0x579   :  { %3537 = vmatmul.mubr.msk.f32.vlgmr.msra.gmra.mxu1 %vm85_vm0, %v381_v0 }
 0x57a   :  { %3551 = vmatpush3.msra.mxu1 %v4151_v3  ;;  %3558 = vmatprep.mubr.msk.f32.mxu1 %vm4049_vm1, %v4048_v2 }
 0x57b   :  { %3552 = vmatprep.subr.mxu1 %v4048_v2 }
 0x57c   :  { %3553 = vmatpush3.msra.mxu1 %v4156_v4 }
 0x57d   :  { %3554 = vmatprep.subr.mxu1 %v4048_v2 }
 0x57e   :  { %3555 = vmatpush3.msra.mxu1 %v4173_v8 }
 0x57f   :  { %3556 = vmatprep.subr.mxu1 %v4048_v2 }
 0x580   :  { %3557 = vmatpush3.msra.mxu1 %v4183_v10 }
 0x581   :  { %3572 = vmatprep.subr.mxu1 %v4048_v2 }
 0x639   :  { %v450_v1 = vpop.f32.mrf.mxu1 }
 0x63a   :  { %v455_v5 = vrot.slane %v450_v1, 4 }
 0x63b   :  { %v3538_v6 = vpop.f32.mrf.mxu1 }
 0x63c   :  { %v457_v7 = vadd.f32 %v455_v5, %v4223_v24 }
 0x63e   :  { %3840 = vtanh.f32 %v457_v7  ;;  %v3292_v11 = vmul.f32 -1.442695, %v457_v7 }
 0x640   :  { %3842 = vpow2.f32 %v3292_v11 }
 0x64b   :  { %v3841_v9 = vpop.eup %3840 }
 0x64c   :  { %470 = vrot.lane.b32.xlu0 %v3841_v9, %s4050_s3 }
 0x64d   :  { %v3843_v12 = vpop.eup %3842 }
 0x64e   :  { %v461_v13 = vadd.f32 1.0, %v3843_v12 }
 0x650   :  { %3844 = vrcp.f32 %v461_v13 }
 0x65d   :  { %v3845_v14 = vpop.eup %3844 }
 0x65e   :  { %v468_v19 = vmul.f32 %v3845_v14, %v466_v17 }
 0x6be   :  { %v471_v15 = vpop.permute.xlu0 %470 }
 0x6bf   :  { %v473_v16 = vmul.f32 %v3845_v14, %v471_v15 }
 0x6c1   :  { %475 = vrot.lane.b32.xlu1 %v473_v16, %s4051_s27 }
 0x733   :  { %v476_v20 = vpop.permute.xlu1 %475 }
 0x734   :  { %v478_v21 = vadd.f32 %v476_v20, %v468_v19 }
 0x736   :  { %3846 = vtanh.f32 %v478_v21  ;;  %v573_v41 = vrot.slane %v478_v21, 6 }
 0x743   :  { %v3847_v22 = vpop.eup %3846 }
 0x744   :  { %481 = vrot.lane.b32.xlu0 %v3847_v22, %s4050_s3 }
 0x7b6   :  { %v482_v23 = vpop.permute.xlu0 %481 }
 0x7b7   :  { %v4282_v24 = vmul.f32 %v3845_v14, %v482_v23 }
 0x7b9   :  { %v486_v26 = vrot.slane %v4282_v24, 4 }
 0x7bb   :  { %487 = vrot.lane.b32.xlu1 %v486_v26, %s4051_s27 }
 0x82d   :  { %v488_v27 = vpop.permute.xlu1 %487 }
 0x82e   :  { %3548 = vmatmul.mubr.msk.f32.vlgmr.msra.gmra.mxu0 %vm85_vm0, %v488_v27 }
 0x82f   :  { %3562 = vmatpush3.msra.mxu0 %v4151_v3  ;;  %3569 = vmatprep.mubr.msk.f32.mxu0 %vm4049_vm1, %v4048_v2 }
 0x830   :  { %3563 = vmatprep.subr.mxu0 %v4048_v2 }
 0x831   :  { %3564 = vmatpush3.msra.mxu0 %v4156_v4 }
 0x832   :  { %3565 = vmatprep.subr.mxu0 %v4048_v2 }
 0x833   :  { %3566 = vmatpush3.msra.mxu0 %v4173_v8 }
 0x834   :  { %3567 = vmatprep.subr.mxu0 %v4048_v2 }
 0x835   :  { %3568 = vmatpush3.msra.mxu0 %v4183_v10 }
 0x836   :  { %3583 = vmatprep.subr.mxu0 %v4048_v2 }
 0x8ee   :  { %v557_v28 = vpop.f32.mrf.mxu0 }
 0x8ef   :  { %v562_v31 = vrot.slane %v557_v28, 2 }
 0x8f0   :  { %v3549_v32 = vpop.f32.mrf.mxu0 }
 0x8f1   :  { %v564_v33 = vadd.f32 %v562_v31, %v4227_v25 }
 0x8f3   :  { %3848 = vtanh.f32 %v564_v33  ;;  %v3294_v35 = vmul.f32 -1.442695, %v564_v33 }
 0x8f5   :  { %3850 = vpow2.f32 %v3294_v35 }
 0x900   :  { %v3849_v34 = vpop.eup %3848 }
 0x901   :  { %577 = vrot.lane.b32.xlu0 %v3849_v34, %s4050_s3 }
 0x902   :  { %v3851_v36 = vpop.eup %3850 }
 0x903   :  { %v568_v37 = vadd.f32 1.0, %v3851_v36 }
 0x905   :  { %3852 = vrcp.f32 %v568_v37 }
 0x912   :  { %v3853_v38 = vpop.eup %3852 }
 0x913   :  { %v575_v42 = vmul.f32 %v3853_v38, %v573_v41 }
 0x973   :  { %v578_v39 = vpop.permute.xlu0 %577 }
 0x974   :  { %v580_v40 = vmul.f32 %v3853_v38, %v578_v39 }
 0x976   :  { %582 = vrot.lane.b32.xlu1 %v580_v40, %s4051_s27 }
 0x9e8   :  { %v583_v45 = vpop.permute.xlu1 %582 }
 0x9e9   :  { %v585_v46 = vadd.f32 %v583_v45, %v575_v42 }
 0x9eb   :  { %3854 = vtanh.f32 %v585_v46  ;;  %v681_v61 = vrot.slane %v585_v46, 6 }
 0x9f8   :  { %v3855_v25 = vpop.eup %3854 }
 0x9f9   :  { %588 = vrot.lane.b32.xlu0 %v3855_v25, %s4050_s3 }
 0xa6b   :  { %v589_v47 = vpop.permute.xlu0 %588 }
 0xa6c   :  { %v4301_v48 = vmul.f32 %v3853_v38, %v589_v47 }
 0xa6e   :  { %v597_v49 = vrot.slane %v4301_v48, 6 }
 0xa70   :  { %598 = vrot.lane.b32.xlu1 %v597_v49, %s4051_s27 }
 0xae2   :  { %v4305_v50 = vpop.permute.xlu1 %598 }
 0xae3   :  { %3559 = vmatmul.mubr.msk.f32.vlgmr.msra.gmra.mxu1 %vm85_vm0, %v4305_v50 }
 0xae4   :  { %3573 = vmatpush3.msra.mxu1 %v4151_v3  ;;  %3580 = vmatprep.mubr.msk.f32.mxu1 %vm4049_vm1, %v4048_v2 }
 0xae5   :  { %3574 = vmatprep.subr.mxu1 %v4048_v2 }
 0xae6   :  { %3575 = vmatpush3.msra.mxu1 %v4156_v4 }
 0xae7   :  { %3576 = vmatprep.subr.mxu1 %v4048_v2 }
 0xae8   :  { %3577 = vmatpush3.msra.mxu1 %v4173_v8 }
 0xae9   :  { %3578 = vmatprep.subr.mxu1 %v4048_v2 }
 0xaea   :  { %3579 = vmatpush3.msra.mxu1 %v4183_v10 }
 0xba3   :  { %v668_v51 = vpop.f32.mrf.mxu1 }
 0xba4   :  { %v672_v52 = vadd.f32 %v668_v51, %v4232_v29 }
 0xba5   :  { %v3560_v53 = vpop.f32.mrf.mxu1 }
 0xba6   :  { %3856 = vtanh.f32 %v672_v52  ;;  %v3296_v55 = vmul.f32 -1.442695, %v672_v52 }
 0xba8   :  { %3858 = vpow2.f32 %v3296_v55 }
 0xbb3   :  { %v3857_v54 = vpop.eup %3856 }
 0xbb4   :  { %685 = vrot.lane.b32.xlu0 %v3857_v54, %s4050_s3 }
 0xbb5   :  { %v3859_v56 = vpop.eup %3858 }
 0xbb6   :  { %v676_v57 = vadd.f32 1.0, %v3859_v56 }
 0xbb8   :  { %3860 = vrcp.f32 %v676_v57 }
 0xbc5   :  { %v3861_v58 = vpop.eup %3860 }
 0xbc6   :  { %v683_v63 = vmul.f32 %v3861_v58, %v681_v61 }
 0xc26   :  { %v686_v59 = vpop.permute.xlu0 %685 }
 0xc27   :  { %v688_v60 = vmul.f32 %v3861_v58, %v686_v59 }
 0xc29   :  { %690 = vrot.lane.b32.xlu1 %v688_v60, %s4051_s27 }
 0xc9b   :  { %v691_v0 = vpop.permute.xlu1 %690 }
 0xc9c   :  { %v693_v1 = vadd.f32 %v691_v0, %v683_v63 }
 0xc9e   :  { %3862 = vtanh.f32 %v693_v1 }
 0xcab   :  { %v3863_v5 = vpop.eup %3862 }
 0xcac   :  { %696 = vrot.lane.b32.xlu0 %v3863_v5, %s4050_s3 }
 0xd1e   :  { %v697_v6 = vpop.permute.xlu0 %696 }
 0xd1f   :  { %v4322_v7 = vmul.f32 %v3861_v58, %v697_v6 }
 0xd21   :  { %704 = vrot.lane.b32.xlu1 %v4322_v7, %s4051_s27 }
 0xd93   :  { %v4326_v9 = vpop.permute.xlu1 %704 }
 0xd94   :  { %3570 = vmatmul.mubr.msk.f32.vlgmr.msra.gmra.mxu0 %vm85_vm0, %v4326_v9 }
 0xd95   :  { %3584 = vmatpush3.msra.mxu0 %v4151_v3  ;;  %3591 = vmatprep.mubr.msk.f32.mxu0 %vm4049_vm1, %v4048_v2 }
 0xd96   :  { %3585 = vmatprep.subr.mxu0 %v4048_v2 }
 0xd97   :  { %3586 = vmatpush3.msra.mxu0 %v4156_v4 }
 0xd98   :  { %3587 = vmatprep.subr.mxu0 %v4048_v2 }
 0xd99   :  { %3588 = vmatpush3.msra.mxu0 %v4173_v8 }
 0xd9a   :  { %3589 = vmatprep.subr.mxu0 %v4048_v2 }
 0xd9b   :  { %3590 = vmatpush3.msra.mxu0 %v4183_v10  ;;  %v790_v10 = vrot.slane %v693_v1, 6 }
 0xd9c   :  { %3605 = vmatprep.subr.mxu0 %v4048_v2 }
 0xe54   :  { %v774_v11 = vpop.f32.mrf.mxu0 }
 0xe55   :  { %v779_v12 = vrot.slane %v774_v11, 6  ;;  %v1050_v11 = vrot.slane %v4322_v7, 2  ;;  %v1094_v7 = vld [vmem:[%s4884_s4 + $0x18] sm:$0xff] }
 0xe56   :  { %v3571_v3 = vpop.f32.mrf.mxu0  ;;  %3594 = vmatprep.subr.mxu1 %v1094_v7 }
 0xe57   :  { %v781_v13 = vadd.f32 %v779_v12, %v4236_v30  ;;  %v1069_v12 = vrot.slane %v4263_v62, 6 }
 0xe59   :  { %3864 = vtanh.f32 %v781_v13  ;;  %v3298_v4 = vmul.f32 -1.442695, %v781_v13 }
 0xe5b   :  { %3866 = vpow2.f32 %v3298_v4 }
 0xe66   :  { %v3865_v14 = vpop.eup %3864 }
 0xe67   :  { %794 = vrot.lane.b32.xlu0 %v3865_v14, %s4050_s3 }
 0xe68   :  { %v3867_v15 = vpop.eup %3866 }
 0xe69   :  { %v785_v16 = vadd.f32 1.0, %v3867_v15 }
 0xe6b   :  { %3868 = vrcp.f32 %v785_v16  ;;  %v1091_v16 = vld [vmem:[%s4884_s4] sm:$0xff] }
 0xe78   :  { %v3869_v8 = vpop.eup %3868 }
 0xe79   :  { %v792_v20 = vmul.f32 %v3869_v8, %v790_v10 }
 0xed9   :  { %v795_v17 = vpop.permute.xlu0 %794 }
 0xeda   :  { %v797_v19 = vmul.f32 %v3869_v8, %v795_v17  ;;  %v4408_v17 = vld [vmem:[%s4885_s5 + $0x8] sm:$0xff] }
 0xedc   :  { %799 = vrot.lane.b32.xlu1 %v797_v19, %s4051_s27  ;;  %v4414_v19 = vld [vmem:[%s4885_s5] sm:$0xff] }
 0xf4e   :  { %v800_v21 = vpop.permute.xlu1 %799 }
 0xf4f   :  { %v802_v22 = vadd.f32 %v800_v21, %v792_v20 }
 0xf51   :  { %3870 = vtanh.f32 %v802_v22  ;;  %v897_v45 = vrot.slane %v802_v22, 6  ;;  %v1077_v22 = vrot.slane %v4241_v43, 2 }
 0xf5e   :  { %v3871_v23 = vpop.eup %3870 }
 0xf5f   :  { %805 = vrot.lane.b32.xlu0 %v3871_v23, %s4050_s3 }
 0xfd1   :  { %v806_v26 = vpop.permute.xlu0 %805 }
 0xfd2   :  { %v4344_v27 = vmul.f32 %v3869_v8, %v806_v26  ;;  %v4401_v8 = vld [vmem:[%s4885_s5 + $0x10] sm:$0xff] }
 0xfd4   :  { %v810_v28 = vrot.slane %v4344_v27, 2  ;;  %v1042_v6 = vrot.slane %v4344_v27, 6 }
 0xfd6   :  { %811 = vrot.lane.b32.xlu1 %v810_v28, %s4051_s27 }
0x1048   :  { %v812_v31 = vpop.permute.xlu1 %811 }
0x1049   :  { %3581 = vmatmul.mubr.msk.f32.vlgmr.msra.gmra.mxu1 %vm85_vm0, %v812_v31 }
0x104a   :  { %3595 = vmatpush3.msra.mxu1 %v1094_v7 }
0x1109   :  { %v881_v32 = vpop.f32.mrf.mxu1 }
0x110a   :  { %v886_v33 = vrot.slane %v881_v32, 4 }
0x110b   :  { %v3582_v34 = vpop.f32.mrf.mxu1 }
0x110c   :  { %v888_v35 = vadd.f32 %v886_v33, %v4232_v29 }
0x110e   :  { %3872 = vtanh.f32 %v888_v35  ;;  %v3300_v37 = vmul.f32 -1.442695, %v888_v35 }
0x1110   :  { %3874 = vpow2.f32 %v3300_v37 }
0x111b   :  { %v3873_v36 = vpop.eup %3872 }
0x111c   :  { %901 = vrot.lane.b32.xlu0 %v3873_v36, %s4050_s3 }
0x111d   :  { %v3875_v38 = vpop.eup %3874 }
0x111e   :  { %v892_v39 = vadd.f32 1.0, %v3875_v38 }
0x1120   :  { %3876 = vrcp.f32 %v892_v39 }
0x112d   :  { %v3877_v40 = vpop.eup %3876 }
0x112e   :  { %v899_v46 = vmul.f32 %v3877_v40, %v897_v45  ;;  %v1057_v45 = vsel %vm1029_vm3, %v4326_v9, %v4305_v50 }
0x118e   :  { %v902_v41 = vpop.permute.xlu0 %901 }
0x118f   :  { %v904_v42 = vmul.f32 %v3877_v40, %v902_v41 }
0x1191   :  { %906 = vrot.lane.b32.xlu1 %v904_v42, %s4051_s27 }
0x1203   :  { %v907_v25 = vpop.permute.xlu1 %906 }
0x1204   :  { %v909_v47 = vadd.f32 %v907_v25, %v899_v46 }
0x1206   :  { %3878 = vtanh.f32 %v909_v47  ;;  %v1004_v3 = vrot.slane %v909_v47, 6 }
0x1213   :  { %v3879_v29 = vpop.eup %3878 }
0x1214   :  { %912 = vrot.lane.b32.xlu0 %v3879_v29, %s4050_s3 }
0x1286   :  { %v913_v49 = vpop.permute.xlu0 %912 }
0x1287   :  { %v915_v51 = vmul.f32 %v3877_v40, %v913_v49 }
0x1289   :  { %v917_v52 = vrot.slane %v915_v51, 4  ;;  %v1034_v5 = vrot.slane %v915_v51, 2 }
0x128b   :  { %918 = vrot.lane.b32.xlu1 %v917_v52, %s4051_s27 }
0x12fd   :  { %v919_v53 = vpop.permute.xlu1 %918 }
0x12fe   :  { %3592 = vmatmul.mubr.msk.f32.vlgmr.msra.gmra.mxu0 %vm85_vm0, %v919_v53 }
0x12ff   :  { %3613 = vmatprep.mubr.msk.f32.mxu0 %vm4049_vm1, %v4048_v2 }
0x13be   :  { %v988_v54 = vpop.f32.mrf.mxu0 }
0x13bf   :  { %v993_v55 = vrot.slane %v988_v54, 2  ;;  %v3303_v54 = vld [vmem:[%s4886_s6] ss:$0 sm:$0xff] }
0x13c0   :  { %v3593_v56 = vpop.f32.mrf.mxu0 }
0x13c1   :  { %v995_v57 = vadd.f32 %v993_v55, %v4236_v30  ;;  %v1061_v30 = vrot.slane %v4282_v24, 2 }
0x13c3   :  { %3880 = vtanh.f32 %v995_v57  ;;  %v3302_v59 = vmul.f32 -1.442695, %v995_v57 }
0x13c5   :  { %3882 = vpow2.f32 %v3302_v59 }
0x13d0   :  { %v3881_v58 = vpop.eup %3880 }
0x13d1   :  { %1008 = vrot.lane.b32.xlu0 %v3881_v58, %s4050_s3 }
0x13d2   :  { %v3883_v60 = vpop.eup %3882 }
0x13d3   :  { %v999_v61 = vadd.f32 1.0, %v3883_v60 }
0x13d5   :  { %3884 = vrcp.f32 %v999_v61 }
0x13e2   :  { %v3885_v63 = vpop.eup %3884 }
0x13e3   :  { %v1006_v13 = vmul.f32 %v3885_v63, %v1004_v3 }
0x1443   :  { %v1009_v0 = vpop.permute.xlu0 %1008 }
0x1444   :  { %v1011_v1 = vmul.f32 %v3885_v63, %v1009_v0 }
0x1446   :  { %1013 = vrot.lane.b32.xlu1 %v1011_v1, %s4051_s27 }
0x144a   :  { %1035 = vrot.lane.b32.xlu1 %v1034_v5, %s4051_s27 }
0x144e   :  { %1043 = vrot.lane.b32.xlu1 %v1042_v6, %s4051_s27 }
0x1452   :  { %1062 = vrot.lane.b32.xlu1 %v1061_v30, %s4051_s27 }
0x1456   :  { %1051 = vrot.lane.b32.xlu1 %v1050_v11, %s4051_s27 }
0x145a   :  { %1070 = vrot.lane.b32.xlu1 %v1069_v12, %s4051_s27 }
0x14b8   :  { %v1014_v14 = vpop.permute.xlu1 %1013 }
0x14b9   :  { %v1016_v4 = vadd.f32 %v1014_v14, %v1006_v13 }
0x14bb   :  { %3886 = vtanh.f32 %v1016_v4 }
0x14bc   :  { %v1036_v23 = vpop.permute.xlu1 %1035 }
0x14c8   :  { %v3887_v15 = vpop.eup %3886 }
0x14c9   :  { %1019 = vrot.lane.b32.xlu0 %v3887_v15, %s4050_s3 }
0x14cd   :  { %1031 = vrot.lane.b32.xlu0 %v4263_v62, %s4051_s27  ;;  %v1093_v62 = vld [vmem:[%s4884_s4 + $0x10] sm:$0xff] }
0x14ce   :  { %3596 = vmatprep.subr.mxu1 %v1093_v62 }
0x14cf   :  { %3597 = vmatpush3.msra.mxu1 %v1093_v62 }
0x14d1   :  { %1039 = vrot.lane.b32.xlu0 %v4282_v24, %s4051_s27  ;;  %v1092_v24 = vld [vmem:[%s4884_s4 + $0x8] sm:$0xff] }
0x14d2   :  { %3598 = vmatprep.subr.mxu1 %v1092_v24 }
0x14d3   :  { %3599 = vmatpush3.msra.mxu1 %v1092_v24 }
0x14d4   :  { %3600 = vmatprep.subr.mxu1 %v1091_v16 }
0x14d5   :  { %1058 = vrot.lane.b32.xlu0 %v4344_v27, %s4051_s27  ;;  %3601 = vmatpush3.msra.mxu1 %v1091_v16  ;;  %v1044_v27 = vpop.permute.xlu1 %1043 }
0x14d6   :  { %3616 = vmatprep.subr.mxu1 %v4048_v2 }
0x14d9   :  { %1047 = vrot.lane.b32.xlu0 %v4301_v48, %s4051_s27  ;;  %v4391_v48 = vld [vmem:[%s4885_s5 + $0x18] sm:$0xff]  ;;  %v1063_v31 = vpop.permute.xlu1 %1062 }
0x14da   :  { %3606 = vmatpush3.msra.mxu0 %v4391_v48 }
0x14db   :  { %3607 = vmatprep.subr.mxu0 %v4048_v2 }
0x14dc   :  { %3608 = vmatpush3.msra.mxu0 %v4401_v8 }
0x14dd   :  { %1066 = vrot.lane.b32.xlu0 %v915_v51, %s4051_s27  ;;  %3609 = vmatprep.subr.mxu0 %v4048_v2  ;;  %v1052_v33 = vpop.permute.xlu1 %1051 }
0x14de   :  { %3610 = vmatpush3.msra.mxu0 %v4408_v17 }
0x14df   :  { %3611 = vmatprep.subr.mxu0 %v4048_v2 }
0x14e0   :  { %3612 = vmatpush3.msra.mxu0 %v4414_v19 }
0x14e1   :  { %3614 = vmatmul.mubr.f32.vlgmr.msra.gmra.mxu0 %v4048_v2  ;;  %3627 = vmatprep.subr.mxu0 %v4048_v2  ;;  %v1071_v35 = vpop.permute.xlu1 %1070 }
0x14e2   :  { %3628 = vmatpush3.msra.mxu0 %v4391_v48  ;;  %3635 = vmatprep.mubr.msk.f32.mxu0 %vm4049_vm1, %v4048_v2 }
0x14e3   :  { %3629 = vmatprep.subr.mxu0 %v4048_v2 }
0x14e4   :  { %3630 = vmatpush3.msra.mxu0 %v4401_v8 }
0x14e5   :  { %3631 = vmatprep.subr.mxu0 %v4048_v2 }
0x14e6   :  { %3632 = vmatpush3.msra.mxu0 %v4408_v17 }
0x14e7   :  { %3633 = vmatprep.subr.mxu0 %v4048_v2 }
0x14e8   :  { %3634 = vmatpush3.msra.mxu0 %v4414_v19 }
0x14e9   :  { %3649 = vmatprep.subr.mxu0 %v4048_v2 }
0x153b   :  { %v1020_v10 = vpop.permute.xlu0 %1019 }
0x153c   :  { %v1022_v20 = vmul.f32 %v3885_v63, %v1020_v10 }
0x153e   :  { %v1025_v21 = vrot.slane %v1022_v20, 6  ;;  %1074 = vrot.lane.b32.xlu0 %v1022_v20, %s4051_s27 }
0x153f   :  { %v1032_v26 = vpop.permute.xlu0 %1031 }
0x1540   :  { %1026 = vrot.lane.b32.xlu1 %v1025_v21, %s4051_s27  ;;  %v1038_v37 = vsel %vm1029_vm3, %v1032_v26, %v1036_v23 }
0x1543   :  { %v1040_v28 = vpop.permute.xlu0 %1039 }
0x1544   :  { %1078 = vrot.lane.b32.xlu1 %v1077_v22, %s4051_s27  ;;  %v1046_v40 = vsel %vm1029_vm3, %v1040_v28, %v1044_v27 }
0x1547   :  { %v1059_v32 = vpop.permute.xlu0 %1058 }
0x1548   :  { %v1065_v38 = vsel %vm1029_vm3, %v1059_v32, %v1063_v31 }
0x1549   :  { %v1088_v47 = vsel %vm1082_vm4, %v1057_v45, %v1065_v38 }
0x154b   :  { %v1048_v34 = vpop.permute.xlu0 %1047 }
0x154c   :  { %v1054_v46 = vsel %vm1029_vm3, %v1048_v34, %v1052_v33 }
0x154f   :  { %v1067_v36 = vpop.permute.xlu0 %1066 }
0x1550   :  { %v1073_v41 = vsel %vm1029_vm3, %v1067_v36, %v1071_v35 }
0x1551   :  { %v1089_v51 = vsel %vm1084_vm6, %v1088_v47, %v1073_v41 }
0x15a1   :  { %v1257_v50 = vpop.f32.mrf.mxu0 }
0x15a3   :  { %v3615_v9 = vpop.f32.mrf.mxu0 }
0x15b0   :  { %v1075_v29 = vpop.permute.xlu0 %1074 }
0x15b2   :  { %v1027_v43 = vpop.permute.xlu1 %1026 }
0x15b3   :  { %v1030_v39 = vsel %vm1029_vm3, %v4245_v44, %v1027_v43 }
0x15b4   :  { %v1083_v42 = vsel %vm1082_vm4, %v1030_v39, %v1038_v37 }
0x15b5   :  { %v1085_v25 = vsel %vm1084_vm6, %v1083_v42, %v1046_v40 }
0x15b6   :  { %v1079_v44 = vpop.permute.xlu1 %1078  ;;  %v1087_v49 = vsel %vm1086_vm5, %v1085_v25, %v1054_v46 }
0x15b7   :  { %v1081_v52 = vsel %vm1029_vm3, %v1075_v29, %v1079_v44  ;;  %3602 = vmatprep.mubr.msk.f32.mxu1 %vm85_vm0, %v1087_v49 }
0x15b8   :  { %v1090_v53 = vsel %vm1086_vm5, %v1089_v51, %v1081_v52 }
0x15b9   :  { %3603 = vmatmul.mubr.msk.f32.vlgmr.msra.gmra.mxu1 %vm85_vm0, %v1090_v53 }
0x15ba   :  { %3617 = vmatpush3.msra.mxu1 %v4391_v48  ;;  %3624 = vmatprep.mubr.msk.f32.mxu1 %vm4049_vm1, %v4048_v2 }
0x15bb   :  { %3618 = vmatprep.subr.mxu1 %v4048_v2 }
0x15bc   :  { %3619 = vmatpush3.msra.mxu1 %v4401_v8 }
0x15bd   :  { %3620 = vmatprep.subr.mxu1 %v4048_v2 }
0x15be   :  { %3621 = vmatpush3.msra.mxu1 %v4408_v17 }
0x15bf   :  { %3622 = vmatprep.subr.mxu1 %v4048_v2 }
0x15c0   :  { %3623 = vmatpush3.msra.mxu1 %v4414_v19 }
0x15c1   :  { %3638 = vmatprep.subr.mxu1 %v4048_v2 }
0x1679   :  { %v3604_v55 = vpop.f32.mrf.mxu1 }
0x167a   :  { %v1184_v56 = vadd.f32 %v3604_v55, %v3303_v54 }
0x167b   :  { %v1178_v57 = vpop.f32.mrf.mxu1 }
0x167c   :  { %v1179_v58 = vadd.f32 %v3303_v54, %v1178_v57  ;;  %v1188_v59 = vrot.slane %v1184_v56, 6  ;;  %v1286_v60 = vrot.slane %v1184_v56, 2 }
0x167e   :  { %v4469_v61 = vsel %vm4217_vm2, %v1179_v58, %v1188_v59  ;;  %v4473_v63 = vsel %vm4217_vm2, %v1179_v58, %v1286_v60  ;;  %v1610_v0 = vrot.slane %v1179_v58, 6  ;;  %v1717_v1 = vrot.slane %v1179_v58, 2 }
0x167f   :  { %v1261_v5 = vadd.f32 %v1257_v50, %v4469_v61 }
0x1680   :  { %v4478_v6 = vsel %vm4217_vm2, %v1184_v56, %v1610_v0  ;;  %v4482_v30 = vsel %vm4217_vm2, %v1184_v56, %v1717_v1 }
0x1681   :  { %3888 = vtanh.f32 %v1261_v5  ;;  %v3306_v12 = vmul.f32 -1.442695, %v1261_v5 }
0x1683   :  { %3890 = vpow2.f32 %v3306_v12 }
0x168e   :  { %v3889_v11 = vpop.eup %3888 }
0x168f   :  { %1271 = vrot.lane.b32.xlu0 %v3889_v11, %s4050_s3 }
0x1690   :  { %v3891_v3 = vpop.eup %3890 }
0x1691   :  { %v1265_v13 = vadd.f32 1.0, %v3891_v3 }
0x1693   :  { %3892 = vrcp.f32 %v1265_v13 }
0x16a0   :  { %v3893_v14 = vpop.eup %3892 }
0x16a1   :  { %v1269_v7 = vmul.f32 0.0, %v3893_v14 }
0x1701   :  { %v1272_v4 = vpop.permute.xlu0 %1271 }
0x1702   :  { %v1274_v15 = vmul.f32 %v3893_v14, %v1272_v4 }
0x1704   :  { %1276 = vrot.lane.b32.xlu1 %v1274_v15, %s4051_s27 }
0x1776   :  { %v1277_v62 = vpop.permute.xlu1 %1276 }
0x1777   :  { %v1279_v24 = vadd.f32 %v1277_v62, %v1269_v7 }
0x1779   :  { %3894 = vtanh.f32 %v1279_v24  ;;  %v1376_v36 = vrot.slane %v1279_v24, 6 }
0x1786   :  { %v3895_v18 = vpop.eup %3894 }
0x1787   :  { %1282 = vrot.lane.b32.xlu0 %v3895_v18, %s4050_s3 }
0x17f9   :  { %v1283_v16 = vpop.permute.xlu0 %1282 }
0x17fa   :  { %v4487_v10 = vmul.f32 %v3893_v14, %v1283_v16 }
0x17fc   :  { %1290 = vrot.lane.b32.xlu1 %v4487_v10, %s4051_s27 }
0x186e   :  { %v4491_v20 = vpop.permute.xlu1 %1290 }
0x186f   :  { %3625 = vmatmul.mubr.msk.f32.vlgmr.msra.gmra.mxu1 %vm85_vm0, %v4491_v20 }
0x1870   :  { %3639 = vmatpush3.msra.mxu1 %v4391_v48  ;;  %3646 = vmatprep.mubr.msk.f32.mxu1 %vm4049_vm1, %v4048_v2 }
0x1871   :  { %3640 = vmatprep.subr.mxu1 %v4048_v2 }
0x1872   :  { %3641 = vmatpush3.msra.mxu1 %v4401_v8 }
0x1873   :  { %3642 = vmatprep.subr.mxu1 %v4048_v2 }
0x1874   :  { %3643 = vmatpush3.msra.mxu1 %v4408_v17 }
0x1875   :  { %3644 = vmatprep.subr.mxu1 %v4048_v2 }
0x1876   :  { %3645 = vmatpush3.msra.mxu1 %v4414_v19 }
0x1877   :  { %3660 = vmatprep.subr.mxu1 %v4048_v2 }
0x192f   :  { %v1360_v21 = vpop.f32.mrf.mxu1 }
0x1930   :  { %v1365_v22 = vrot.slane %v1360_v21, 6 }
0x1931   :  { %v3626_v23 = vpop.f32.mrf.mxu1 }
0x1932   :  { %v1367_v26 = vadd.f32 %v1365_v22, %v4473_v63 }
0x1934   :  { %3896 = vtanh.f32 %v1367_v26  ;;  %v3308_v28 = vmul.f32 -1.442695, %v1367_v26 }
0x1936   :  { %3898 = vpow2.f32 %v3308_v28 }
0x1941   :  { %v3897_v27 = vpop.eup %3896 }
0x1942   :  { %1380 = vrot.lane.b32.xlu0 %v3897_v27, %s4050_s3 }
0x1943   :  { %v3899_v31 = vpop.eup %3898 }
0x1944   :  { %v1371_v32 = vadd.f32 1.0, %v3899_v31 }
0x1946   :  { %3900 = vrcp.f32 %v1371_v32 }
0x1953   :  { %v3901_v33 = vpop.eup %3900 }
0x1954   :  { %v1378_v43 = vmul.f32 %v3901_v33, %v1376_v36 }
0x19b4   :  { %v1381_v34 = vpop.permute.xlu0 %1380 }
0x19b5   :  { %v1383_v35 = vmul.f32 %v3901_v33, %v1381_v34 }
0x19b7   :  { %1385 = vrot.lane.b32.xlu1 %v1383_v35, %s4051_s27 }
0x1a29   :  { %v1386_v37 = vpop.permute.xlu1 %1385 }
0x1a2a   :  { %v1388_v38 = vadd.f32 %v1386_v37, %v1378_v43 }
0x1a2c   :  { %3902 = vtanh.f32 %v1388_v38  ;;  %v1483_v54 = vrot.slane %v1388_v38, 6 }
0x1a39   :  { %v3903_v39 = vpop.eup %3902 }
0x1a3a   :  { %1391 = vrot.lane.b32.xlu0 %v3903_v39, %s4050_s3 }
0x1aac   :  { %v1392_v40 = vpop.permute.xlu0 %1391 }
0x1aad   :  { %v4509_v41 = vmul.f32 %v3901_v33, %v1392_v40 }
0x1aaf   :  { %v1396_v42 = vrot.slane %v4509_v41, 2 }
0x1ab1   :  { %1397 = vrot.lane.b32.xlu1 %v1396_v42, %s4051_s27 }
0x1b23   :  { %v1398_v45 = vpop.permute.xlu1 %1397 }
0x1b24   :  { %3636 = vmatmul.mubr.msk.f32.vlgmr.msra.gmra.mxu0 %vm85_vm0, %v1398_v45 }
0x1b25   :  { %3650 = vmatpush3.msra.mxu0 %v4391_v48  ;;  %3657 = vmatprep.mubr.msk.f32.mxu0 %vm4049_vm1, %v4048_v2 }
0x1b26   :  { %3651 = vmatprep.subr.mxu0 %v4048_v2 }
0x1b27   :  { %3652 = vmatpush3.msra.mxu0 %v4401_v8 }
0x1b28   :  { %3653 = vmatprep.subr.mxu0 %v4048_v2 }
0x1b29   :  { %3654 = vmatpush3.msra.mxu0 %v4408_v17 }
0x1b2a   :  { %3655 = vmatprep.subr.mxu0 %v4048_v2 }
0x1b2b   :  { %3656 = vmatpush3.msra.mxu0 %v4414_v19 }
0x1b2c   :  { %3671 = vmatprep.subr.mxu0 %v4048_v2 }
0x1be4   :  { %v1467_v46 = vpop.f32.mrf.mxu0 }
0x1be5   :  { %v1472_v25 = vrot.slane %v1467_v46, 4 }
0x1be6   :  { %v3637_v47 = vpop.f32.mrf.mxu0 }
0x1be7   :  { %v1474_v29 = vadd.f32 %v1472_v25, %v4469_v61 }
0x1be9   :  { %3904 = vtanh.f32 %v1474_v29  ;;  %v3310_v49 = vmul.f32 -1.442695, %v1474_v29 }
0x1beb   :  { %3906 = vpow2.f32 %v3310_v49 }
0x1bf6   :  { %v3905_v44 = vpop.eup %3904 }
0x1bf7   :  { %1487 = vrot.lane.b32.xlu0 %v3905_v44, %s4050_s3 }
0x1bf8   :  { %v3907_v51 = vpop.eup %3906 }
0x1bf9   :  { %v1478_v52 = vadd.f32 1.0, %v3907_v51 }
0x1bfb   :  { %3908 = vrcp.f32 %v1478_v52 }
0x1c08   :  { %v3909_v53 = vpop.eup %3908 }
0x1c09   :  { %v1485_v55 = vmul.f32 %v3909_v53, %v1483_v54 }
0x1c69   :  { %v1488_v50 = vpop.permute.xlu0 %1487 }
0x1c6a   :  { %v1490_v9 = vmul.f32 %v3909_v53, %v1488_v50 }
0x1c6c   :  { %1492 = vrot.lane.b32.xlu1 %v1490_v9, %s4051_s27 }
0x1cde   :  { %v1493_v56 = vpop.permute.xlu1 %1492 }
0x1cdf   :  { %v1495_v57 = vadd.f32 %v1493_v56, %v1485_v55 }
0x1ce1   :  { %3910 = vtanh.f32 %v1495_v57  ;;  %v1590_v24 = vrot.slane %v1495_v57, 6 }
0x1cee   :  { %v3911_v58 = vpop.eup %3910 }
0x1cef   :  { %1498 = vrot.lane.b32.xlu0 %v3911_v58, %s4050_s3 }
0x1d61   :  { %v1499_v59 = vpop.permute.xlu0 %1498 }
0x1d62   :  { %v4528_v60 = vmul.f32 %v3909_v53, %v1499_v59 }
0x1d64   :  { %v1503_v61 = vrot.slane %v4528_v60, 4 }
0x1d66   :  { %1504 = vrot.lane.b32.xlu1 %v1503_v61, %s4051_s27 }
0x1dd8   :  { %v1505_v0 = vpop.permute.xlu1 %1504 }
0x1dd9   :  { %3647 = vmatmul.mubr.msk.f32.vlgmr.msra.gmra.mxu1 %vm85_vm0, %v1505_v0 }
0x1dda   :  { %3661 = vmatpush3.msra.mxu1 %v4391_v48  ;;  %3668 = vmatprep.mubr.msk.f32.mxu1 %vm4049_vm1, %v4048_v2 }
0x1ddb   :  { %3662 = vmatprep.subr.mxu1 %v4048_v2 }
0x1ddc   :  { %3663 = vmatpush3.msra.mxu1 %v4401_v8 }
0x1ddd   :  { %3664 = vmatprep.subr.mxu1 %v4048_v2 }
0x1dde   :  { %3665 = vmatpush3.msra.mxu1 %v4408_v17 }
0x1ddf   :  { %3666 = vmatprep.subr.mxu1 %v4048_v2 }
0x1de0   :  { %3667 = vmatpush3.msra.mxu1 %v4414_v19 }
0x1de1   :  { %3682 = vmatprep.subr.mxu1 %v4048_v2 }
0x1e99   :  { %v1574_v1 = vpop.f32.mrf.mxu1 }
0x1e9a   :  { %v1579_v5 = vrot.slane %v1574_v1, 2 }
0x1e9b   :  { %v3648_v11 = vpop.f32.mrf.mxu1 }
0x1e9c   :  { %v1581_v12 = vadd.f32 %v1579_v5, %v4473_v63 }
0x1e9e   :  { %3912 = vtanh.f32 %v1581_v12  ;;  %v3312_v13 = vmul.f32 -1.442695, %v1581_v12 }
0x1ea0   :  { %3914 = vpow2.f32 %v3312_v13 }
0x1eab   :  { %v3913_v3 = vpop.eup %3912 }
0x1eac   :  { %1594 = vrot.lane.b32.xlu0 %v3913_v3, %s4050_s3 }
0x1ead   :  { %v3915_v14 = vpop.eup %3914 }
0x1eae   :  { %v1585_v4 = vadd.f32 1.0, %v3915_v14 }
0x1eb0   :  { %3916 = vrcp.f32 %v1585_v4 }
0x1ebd   :  { %v3917_v15 = vpop.eup %3916 }
0x1ebe   :  { %v1592_v18 = vmul.f32 %v3917_v15, %v1590_v24 }
0x1f1e   :  { %v1595_v7 = vpop.permute.xlu0 %1594 }
0x1f1f   :  { %v1597_v62 = vmul.f32 %v3917_v15, %v1595_v7 }
0x1f21   :  { %1599 = vrot.lane.b32.xlu1 %v1597_v62, %s4051_s27 }
0x1f93   :  { %v1600_v16 = vpop.permute.xlu1 %1599 }
0x1f94   :  { %v1602_v21 = vadd.f32 %v1600_v16, %v1592_v18 }
0x1f96   :  { %3918 = vtanh.f32 %v1602_v21  ;;  %v1698_v39 = vrot.slane %v1602_v21, 6 }
0x1fa3   :  { %v3919_v63 = vpop.eup %3918 }
0x1fa4   :  { %1605 = vrot.lane.b32.xlu0 %v3919_v63, %s4050_s3 }
0x2016   :  { %v1606_v22 = vpop.permute.xlu0 %1605 }
0x2017   :  { %v4547_v23 = vmul.f32 %v3917_v15, %v1606_v22 }
0x2019   :  { %v1614_v26 = vrot.slane %v4547_v23, 6 }
0x201b   :  { %1615 = vrot.lane.b32.xlu1 %v1614_v26, %s4051_s27 }
0x208d   :  { %v4551_v27 = vpop.permute.xlu1 %1615 }
0x208e   :  { %3658 = vmatmul.mubr.msk.f32.vlgmr.msra.gmra.mxu0 %vm85_vm0, %v4551_v27 }
0x208f   :  { %3672 = vmatpush3.msra.mxu0 %v4391_v48  ;;  %3679 = vmatprep.mubr.msk.f32.mxu0 %vm4049_vm1, %v4048_v2 }
0x2090   :  { %3673 = vmatprep.subr.mxu0 %v4048_v2 }
0x2091   :  { %3674 = vmatpush3.msra.mxu0 %v4401_v8 }
0x2092   :  { %3675 = vmatprep.subr.mxu0 %v4048_v2 }
0x2093   :  { %3676 = vmatpush3.msra.mxu0 %v4408_v17 }
0x2094   :  { %3677 = vmatprep.subr.mxu0 %v4048_v2 }
0x2095   :  { %3678 = vmatpush3.msra.mxu0 %v4414_v19 }
0x214e   :  { %v1685_v28 = vpop.f32.mrf.mxu0 }
0x214f   :  { %v1689_v31 = vadd.f32 %v1685_v28, %v4478_v6 }
0x2150   :  { %v3659_v32 = vpop.f32.mrf.mxu0 }
0x2151   :  { %3920 = vtanh.f32 %v1689_v31  ;;  %v3314_v34 = vmul.f32 -1.442695, %v1689_v31 }
0x2153   :  { %3922 = vpow2.f32 %v3314_v34 }
0x215e   :  { %v3921_v33 = vpop.eup %3920 }
0x215f   :  { %1702 = vrot.lane.b32.xlu0 %v3921_v33, %s4050_s3 }
0x2160   :  { %v3923_v35 = vpop.eup %3922 }
0x2161   :  { %v1693_v36 = vadd.f32 1.0, %v3923_v35 }
0x2163   :  { %3924 = vrcp.f32 %v1693_v36 }
0x2170   :  { %v3925_v43 = vpop.eup %3924 }
0x2171   :  { %v1700_v40 = vmul.f32 %v3925_v43, %v1698_v39 }
0x21d1   :  { %v1703_v37 = vpop.permute.xlu0 %1702 }
0x21d2   :  { %v1705_v38 = vmul.f32 %v3925_v43, %v1703_v37 }
0x21d4   :  { %1707 = vrot.lane.b32.xlu1 %v1705_v38, %s4051_s27 }
0x2246   :  { %v1708_v42 = vpop.permute.xlu1 %1707 }
0x2247   :  { %v1710_v45 = vadd.f32 %v1708_v42, %v1700_v40 }
0x2249   :  { %3926 = vtanh.f32 %v1710_v45 }
0x2256   :  { %v3927_v46 = vpop.eup %3926 }
0x2257   :  { %1713 = vrot.lane.b32.xlu0 %v3927_v46, %s4050_s3 }
0x22c9   :  { %v1714_v25 = vpop.permute.xlu0 %1713 }
0x22ca   :  { %v4568_v47 = vmul.f32 %v3925_v43, %v1714_v25 }
0x22cc   :  { %1721 = vrot.lane.b32.xlu1 %v4568_v47, %s4051_s27  ;;  %v2066_v25 = vrot.slane %v4568_v47, 2  ;;  %v2107_v47 = vld [vmem:[%s4887_s7 + $0x18] sm:$0xff] }
0x22cd   :  { %3693 = vmatprep.subr.mxu0 %v2107_v47 }
0x233e   :  { %v4572_v29 = vpop.permute.xlu1 %1721 }
0x233f   :  { %3669 = vmatmul.mubr.msk.f32.vlgmr.msra.gmra.mxu1 %vm85_vm0, %v4572_v29 }
0x2340   :  { %3683 = vmatpush3.msra.mxu1 %v4391_v48  ;;  %3690 = vmatprep.mubr.msk.f32.mxu1 %vm4049_vm1, %v4048_v2 }
0x2341   :  { %3684 = vmatprep.subr.mxu1 %v4048_v2 }
0x2342   :  { %3685 = vmatpush3.msra.mxu1 %v4401_v8 }
0x2343   :  { %3686 = vmatprep.subr.mxu1 %v4048_v2 }
0x2344   :  { %3687 = vmatpush3.msra.mxu1 %v4408_v17 }
0x2345   :  { %3688 = vmatprep.subr.mxu1 %v4048_v2 }
0x2346   :  { %3689 = vmatpush3.msra.mxu1 %v4414_v19  ;;  %v1807_v19 = vrot.slane %v1710_v45, 6 }
0x23ff   :  { %v1791_v44 = vpop.f32.mrf.mxu1 }
0x2400   :  { %v1796_v49 = vrot.slane %v1791_v44, 6  ;;  %v2085_v44 = vrot.slane %v4509_v41, 6 }
0x2401   :  { %v3670_v51 = vpop.f32.mrf.mxu1 }
0x2402   :  { %v1798_v48 = vadd.f32 %v1796_v49, %v4482_v30 }
0x2404   :  { %3928 = vtanh.f32 %v1798_v48  ;;  %v3316_v53 = vmul.f32 -1.442695, %v1798_v48 }
0x2406   :  { %3930 = vpow2.f32 %v3316_v53 }
0x2411   :  { %v3929_v52 = vpop.eup %3928 }
0x2412   :  { %1811 = vrot.lane.b32.xlu0 %v3929_v52, %s4050_s3 }
0x2413   :  { %v3931_v8 = vpop.eup %3930 }
0x2414   :  { %v1802_v50 = vadd.f32 1.0, %v3931_v8 }
0x2416   :  { %3932 = vrcp.f32 %v1802_v50 }
0x2423   :  { %v3933_v9 = vpop.eup %3932 }
0x2424   :  { %v1809_v55 = vmul.f32 %v3933_v9, %v1807_v19 }
0x2484   :  { %v1812_v17 = vpop.permute.xlu0 %1811 }
0x2485   :  { %v1814_v54 = vmul.f32 %v3933_v9, %v1812_v17  ;;  %v2093_v17 = vrot.slane %v4487_v10, 2 }
0x2487   :  { %1816 = vrot.lane.b32.xlu1 %v1814_v54, %s4051_s27 }
0x24f9   :  { %v1817_v56 = vpop.permute.xlu1 %1816 }
0x24fa   :  { %v1819_v57 = vadd.f32 %v1817_v56, %v1809_v55 }
0x24fc   :  { %3934 = vtanh.f32 %v1819_v57  ;;  %v1914_v18 = vrot.slane %v1819_v57, 6 }
0x2509   :  { %v3935_v58 = vpop.eup %3934 }
0x250a   :  { %1822 = vrot.lane.b32.xlu0 %v3935_v58, %s4050_s3 }
0x257c   :  { %v1823_v59 = vpop.permute.xlu0 %1822 }
0x257d   :  { %v4589_v61 = vmul.f32 %v3933_v9, %v1823_v59 }
0x257f   :  { %v1827_v0 = vrot.slane %v4589_v61, 2  ;;  %v2058_v46 = vrot.slane %v4589_v61, 6 }
0x2581   :  { %1828 = vrot.lane.b32.xlu1 %v1827_v0, %s4051_s27 }
0x25f3   :  { %v1829_v1 = vpop.permute.xlu1 %1828 }
0x25f4   :  { %3680 = vmatmul.mubr.msk.f32.vlgmr.msra.gmra.mxu0 %vm85_vm0, %v1829_v1 }
0x25f5   :  { %3694 = vmatpush3.msra.mxu0 %v2107_v47 }
0x26b4   :  { %v1898_v5 = vpop.f32.mrf.mxu0 }
0x26b5   :  { %v1903_v11 = vrot.slane %v1898_v5, 4 }
0x26b6   :  { %v3681_v12 = vpop.f32.mrf.mxu0 }
0x26b7   :  { %v1905_v3 = vadd.f32 %v1903_v11, %v4478_v6 }
0x26b9   :  { %3936 = vtanh.f32 %v1905_v3  ;;  %v3318_v14 = vmul.f32 -1.442695, %v1905_v3 }
0x26bb   :  { %3938 = vpow2.f32 %v3318_v14 }
0x26c6   :  { %v3937_v13 = vpop.eup %3936 }
0x26c7   :  { %1918 = vrot.lane.b32.xlu0 %v3937_v13, %s4050_s3 }
0x26c8   :  { %v3939_v4 = vpop.eup %3938 }
0x26c9   :  { %v1909_v15 = vadd.f32 1.0, %v3939_v4  ;;  %v2073_v4 = vsel %vm1029_vm3, %v4572_v29, %v4551_v27  ;;  %v3321_v27 = vld [vmem:[%s4888_s8] ss:$0 sm:$0xff] }
0x26cb   :  { %3940 = vrcp.f32 %v1909_v15 }
0x26d8   :  { %v3941_v7 = vpop.eup %3940 }
0x26d9   :  { %v1916_v16 = vmul.f32 %v3941_v7, %v1914_v18 }
0x2739   :  { %v1919_v62 = vpop.permute.xlu0 %1918 }
0x273a   :  { %v1921_v24 = vmul.f32 %v3941_v7, %v1919_v62 }
0x273c   :  { %1923 = vrot.lane.b32.xlu1 %v1921_v24, %s4051_s27 }
0x27ae   :  { %v1924_v21 = vpop.permute.xlu1 %1923 }
0x27af   :  { %v1926_v63 = vadd.f32 %v1924_v21, %v1916_v16 }
0x27b1   :  { %3942 = vtanh.f32 %v1926_v63  ;;  %v2021_v49 = vrot.slane %v1926_v63, 6 }
0x27be   :  { %v3943_v6 = vpop.eup %3942 }
0x27bf   :  { %1929 = vrot.lane.b32.xlu0 %v3943_v6, %s4050_s3  ;;  %v2197_v6 = vld [vmem:[%s4889_s9 + $0x8] sm:$0xff] }
0x2831   :  { %v1930_v22 = vpop.permute.xlu0 %1929 }
0x2832   :  { %v1932_v26 = vmul.f32 %v3941_v7, %v1930_v22 }
0x2834   :  { %v1934_v28 = vrot.slane %v1932_v26, 4  ;;  %v2050_v45 = vrot.slane %v1932_v26, 2 }
0x2836   :  { %1935 = vrot.lane.b32.xlu1 %v1934_v28, %s4051_s27  ;;  %v2196_v28 = vld [vmem:[%s4889_s9] sm:$0xff] }
0x28a8   :  { %v1936_v31 = vpop.permute.xlu1 %1935 }
0x28a9   :  { %3691 = vmatmul.mubr.msk.f32.vlgmr.msra.gmra.mxu1 %vm85_vm0, %v1936_v31 }
0x2969   :  { %v2005_v32 = vpop.f32.mrf.mxu1 }
0x296a   :  { %v2010_v33 = vrot.slane %v2005_v32, 2 }
0x296b   :  { %v3692_v34 = vpop.f32.mrf.mxu1 }
0x296c   :  { %v2012_v35 = vadd.f32 %v2010_v33, %v4482_v30  ;;  %v2077_v30 = vrot.slane %v4528_v60, 2  ;;  %v4053_v34 = vmov 1  }
0x296d   :  { %3823 = vset.pattern.permute.xlu1 %v4053_v34  ;;  %3822 = vset.pattern.permute.xlu0 %v4053_v34 }
0x296e   :  { %3944 = vtanh.f32 %v2012_v35  ;;  %v3320_v43 = vmul.f32 -1.442695, %v2012_v35  ;;  %v2246_v35 = vld [vmem:[%s4890_s10 + $0x18] sm:$0xff] }
0x296f   :  { %3704 = vmatprep.subr.mxu1 %v2246_v35 }
0x2970   :  { %3946 = vpow2.f32 %v3320_v43  ;;  %3705 = vmatpush3.msra.mxu1 %v2246_v35 }
0x297b   :  { %v3945_v36 = vpop.eup %3944 }
0x297c   :  { %2025 = vrot.lane.b32.xlu0 %v3945_v36, %s4050_s3  ;;  %v2245_v36 = vld [vmem:[%s4890_s10 + $0x10] sm:$0xff] }
0x297d   :  { %v3947_v37 = vpop.eup %3946  ;;  %3706 = vmatprep.subr.mxu1 %v2245_v36 }
0x297e   :  { %v2016_v38 = vadd.f32 1.0, %v3947_v37  ;;  %3707 = vmatpush3.msra.mxu1 %v2245_v36 }
0x2980   :  { %3948 = vrcp.f32 %v2016_v38 }
0x298d   :  { %v3949_v39 = vpop.eup %3948 }
0x298e   :  { %v2023_v51 = vmul.f32 %v3949_v39, %v2021_v49  ;;  %v2244_v49 = vld [vmem:[%s4890_s10 + $0x8] sm:$0xff] }
0x298f   :  { %3708 = vmatprep.subr.mxu1 %v2244_v49 }
0x2990   :  { %3709 = vmatpush3.msra.mxu1 %v2244_v49 }
0x29ee   :  { %v2026_v40 = vpop.permute.xlu0 %2025 }
0x29ef   :  { %v2028_v42 = vmul.f32 %v3949_v39, %v2026_v40 }
0x29f1   :  { %2030 = vrot.lane.b32.xlu1 %v2028_v42, %s4051_s27 }
0x29f5   :  { %2051 = vrot.lane.b32.xlu1 %v2050_v45, %s4051_s27 }
0x29f9   :  { %2059 = vrot.lane.b32.xlu1 %v2058_v46, %s4051_s27 }
0x29fd   :  { %2078 = vrot.lane.b32.xlu1 %v2077_v30, %s4051_s27 }
0x2a01   :  { %2067 = vrot.lane.b32.xlu1 %v2066_v25, %s4051_s27 }
0x2a05   :  { %2086 = vrot.lane.b32.xlu1 %v2085_v44, %s4051_s27  ;;  %v4678_v44 = vld [vmem:[%s4891_s11 + $0x18] sm:$0xff] }
0x2a63   :  { %v2031_v48 = vpop.permute.xlu1 %2030 }
0x2a64   :  { %v2033_v52 = vadd.f32 %v2031_v48, %v2023_v51  ;;  %v4688_v51 = vld [vmem:[%s4891_s11 + $0x10] sm:$0xff]  ;;  %v2243_v48 = vld [vmem:[%s4890_s10] sm:$0xff] }
0x2a65   :  { %3710 = vmatprep.subr.mxu1 %v2243_v48 }
0x2a66   :  { %3950 = vtanh.f32 %v2033_v52  ;;  %3711 = vmatpush3.msra.mxu1 %v2243_v48 }
0x2a67   :  { %v2052_v54 = vpop.permute.xlu1 %2051  ;;  %3726 = vmatprep.subr.mxu1 %v4048_v2 }
0x2a6b   :  { %v2060_v55 = vpop.permute.xlu1 %2059 }
0x2a6f   :  { %v2079_v57 = vpop.permute.xlu1 %2078 }
0x2a73   :  { %v3951_v53 = vpop.eup %3950  ;;  %v2068_v59 = vpop.permute.xlu1 %2067 }
0x2a74   :  { %2036 = vrot.lane.b32.xlu0 %v3951_v53, %s4050_s3  ;;  %v4700_v53 = vld [vmem:[%s4891_s11 + $0x8] sm:$0xff] }
0x2a77   :  { %v2087_v0 = vpop.permute.xlu1 %2086 }
0x2a78   :  { %2047 = vrot.lane.b32.xlu0 %v4509_v41, %s4051_s27  ;;  %v2106_v41 = vld [vmem:[%s4887_s7 + $0x10] sm:$0xff] }
0x2a79   :  { %3695 = vmatprep.subr.mxu0 %v2106_v41 }
0x2a7a   :  { %3696 = vmatpush3.msra.mxu0 %v2106_v41  ;;  %v4709_v41 = vld [vmem:[%s4891_s11] sm:$0xff] }
0x2a7c   :  { %2055 = vrot.lane.b32.xlu0 %v4528_v60, %s4051_s27  ;;  %v2105_v60 = vld [vmem:[%s4887_s7 + $0x8] sm:$0xff] }
0x2a7d   :  { %3697 = vmatprep.subr.mxu0 %v2105_v60 }
0x2a7e   :  { %3698 = vmatpush3.msra.mxu0 %v2105_v60 }
0x2a80   :  { %2074 = vrot.lane.b32.xlu0 %v4589_v61, %s4051_s27 }
0x2a84   :  { %2063 = vrot.lane.b32.xlu0 %v4547_v23, %s4051_s27  ;;  %v2104_v23 = vld [vmem:[%s4887_s7] sm:$0xff] }
0x2a85   :  { %3699 = vmatprep.subr.mxu0 %v2104_v23 }
0x2a86   :  { %3700 = vmatpush3.msra.mxu0 %v2104_v23 }
0x2a87   :  { %3715 = vmatprep.subr.mxu0 %v4048_v2 }
0x2a88   :  { %2082 = vrot.lane.b32.xlu0 %v1932_v26, %s4051_s27 }
0x2ae6   :  { %v2037_v8 = vpop.permute.xlu0 %2036 }
0x2ae7   :  { %v2039_v50 = vmul.f32 %v3949_v39, %v2037_v8  ;;  %v4024_v8 = vld [vmem:[%s4899_s18] sm:$0xff] }
0x2ae9   :  { %v2042_v9 = vrot.slane %v2039_v50, 6  ;;  %2090 = vrot.lane.b32.xlu0 %v2039_v50, %s4051_s27 }
0x2aea   :  { %v2048_v19 = vpop.permute.xlu0 %2047 }
0x2aeb   :  { %2043 = vrot.lane.b32.xlu1 %v2042_v9, %s4051_s27  ;;  %v2054_v11 = vsel %vm1029_vm3, %v2048_v19, %v2052_v54  ;;  %v4025_v9 = vld [vmem:[%s4899_s18 + $0x8] sm:$0xff] }
0x2aee   :  { %v2056_v56 = vpop.permute.xlu0 %2055 }
0x2aef   :  { %2094 = vrot.lane.b32.xlu1 %v2093_v17, %s4051_s27  ;;  %v2062_v3 = vsel %vm1029_vm3, %v2056_v56, %v2060_v55  ;;  %v3326_v55 = vld [vmem:[%s4892_s12] ss:$0 sm:$0xff] }
0x2af2   :  { %v2075_v58 = vpop.permute.xlu0 %2074 }
0x2af3   :  { %v2081_v12 = vsel %vm1029_vm3, %v2075_v58, %v2079_v57 }
0x2af4   :  { %v2101_v62 = vsel %vm1082_vm4, %v2073_v4, %v2081_v12 }
0x2af6   :  { %v2064_v61 = vpop.permute.xlu0 %2063 }
0x2af7   :  { %v2070_v15 = vsel %vm1029_vm3, %v2064_v61, %v2068_v59 }
0x2afa   :  { %v2083_v1 = vpop.permute.xlu0 %2082 }
0x2afb   :  { %v2089_v13 = vsel %vm1029_vm3, %v2083_v1, %v2087_v0 }
0x2afc   :  { %v2102_v16 = vsel %vm1084_vm6, %v2101_v62, %v2089_v13 }
0x2b5b   :  { %v2091_v24 = vpop.permute.xlu0 %2090 }
0x2b5d   :  { %v2044_v5 = vpop.permute.xlu1 %2043 }
0x2b5e   :  { %v2046_v10 = vsel %vm1029_vm3, %v4491_v20, %v2044_v5 }
0x2b5f   :  { %v2098_v14 = vsel %vm1082_vm4, %v2046_v10, %v2054_v11 }
0x2b60   :  { %v2099_v7 = vsel %vm1084_vm6, %v2098_v14, %v2062_v3 }
0x2b61   :  { %v2095_v18 = vpop.permute.xlu1 %2094  ;;  %v2100_v20 = vsel %vm1086_vm5, %v2099_v7, %v2070_v15 }
0x2b62   :  { %v2097_v21 = vsel %vm1029_vm3, %v2091_v24, %v2095_v18  ;;  %3701 = vmatprep.mubr.msk.f32.mxu0 %vm85_vm0, %v2100_v20 }
0x2b63   :  { %v2103_v63 = vsel %vm1086_vm5, %v2102_v16, %v2097_v21 }
0x2b64   :  { %3702 = vmatmul.mubr.msk.f32.vlgmr.msra.gmra.mxu0 %vm85_vm0, %v2103_v63 }
0x2b65   :  { %3723 = vmatprep.mubr.msk.f32.mxu0 %vm4049_vm1, %v4048_v2  ;;  %3716 = vmatpush3.msra.mxu0 %v4678_v44 }
0x2b66   :  { %3717 = vmatprep.subr.mxu0 %v4048_v2 }
0x2b67   :  { %3718 = vmatpush3.msra.mxu0 %v4688_v51 }
0x2b68   :  { %3719 = vmatprep.subr.mxu0 %v4048_v2 }
0x2b69   :  { %3720 = vmatpush3.msra.mxu0 %v4700_v53 }
0x2b6a   :  { %3721 = vmatprep.subr.mxu0 %v4048_v2 }
0x2b6b   :  { %3722 = vmatpush3.msra.mxu0 %v4709_v41 }
0x2b6c   :  { %3724 = vmatmul.mubr.f32.vlgmr.msra.gmra.mxu0 %v4048_v2  ;;  %3737 = vmatprep.subr.mxu0 %v4048_v2 }
0x2b6d   :  { %3738 = vmatpush3.msra.mxu0 %v4678_v44  ;;  %3745 = vmatprep.mubr.msk.f32.mxu0 %vm4049_vm1, %v4048_v2 }
0x2b6e   :  { %3739 = vmatprep.subr.mxu0 %v4048_v2 }
0x2b6f   :  { %3740 = vmatpush3.msra.mxu0 %v4688_v51 }
0x2b70   :  { %3741 = vmatprep.subr.mxu0 %v4048_v2 }
0x2b71   :  { %3742 = vmatpush3.msra.mxu0 %v4700_v53 }
0x2b72   :  { %3743 = vmatprep.subr.mxu0 %v4048_v2 }
0x2b73   :  { %3744 = vmatpush3.msra.mxu0 %v4709_v41 }
0x2b74   :  { %3759 = vmatprep.subr.mxu0 %v4048_v2 }
0x2c24   :  { %v3703_v29 = vpop.f32.mrf.mxu0 }
0x2c25   :  { %v2193_v22 = vadd.f32 %v3703_v29, %v3321_v27 }
0x2c26   :  { %v2187_v26 = vpop.f32.mrf.mxu0 }
0x2c27   :  { %v2199_v31 = vadd.f32 %v2197_v6, %v2193_v22  ;;  %v2188_v32 = vadd.f32 %v3321_v27, %v2187_v26 }
0x2c29   :  { %v2198_v33 = vadd.f32 %v2196_v28, %v2188_v32  ;;  %2204 = vrot.lane.b32.xlu1 %v2199_v31, %s4052_s1 }
0x2c2b   :  { %2202 = vrot.lane.b32.xlu0 %v2198_v33, %s4052_s1 }
0x2c2c   :  { %v2405_v54 = vpop.f32.mrf.mxu0 }
0x2c2e   :  { %v3725_v19 = vpop.f32.mrf.mxu0 }
0x2c9b   :  { %v2205_v43 = vpop.permute.xlu1 %2204 }
0x2c9c   :  { %v2209_v37 = vsub.f32 %v2199_v31, %v2205_v43 }
0x2c9d   :  { %v2203_v38 = vpop.permute.xlu0 %2202 }
0x2c9e   :  { %v3325_v39 = vmul.f32 -1.442695, %v2209_v37  ;;  %v2208_v40 = vsub.f32 %v2198_v33, %v2203_v38 }
0x2ca0   :  { %3952 = vpow2.f32 %v3325_v39  ;;  %v3324_v42 = vmul.f32 -1.442695, %v2208_v40 }
0x2ca2   :  { %3954 = vpow2.f32 %v3324_v42 }
0x2cad   :  { %v3953_v45 = vpop.eup %3952 }
0x2cae   :  { %v2217_v46 = vadd.f32 1.0, %v3953_v45 }
0x2caf   :  { %v3955_v30 = vpop.eup %3954 }
0x2cb0   :  { %3956 = vrcp.f32 %v2217_v46  ;;  %v2216_v25 = vadd.f32 1.0, %v3955_v30 }
0x2cb2   :  { %3958 = vrcp.f32 %v2216_v25 }
0x2cbd   :  { %v4694_v52 = vpop.eup %3956 }
0x2cbe   :  { %2238 = vperm.xlu1 %3823, %v4694_v52  }
0x2cbf   :  { %v4703_v47 = vpop.eup %3958 }
0x2cc0   :  { %2234 = vperm.xlu0 %3822, %v4703_v47  }
0x2d39   :  { %v2239_v60 = vpop.permute.xlu1 %2238 }
0x2d3a   :  { %v2242_v17 = vmul.f32 %v4025_v9, %v2239_v60 }
0x2d3b   :  { %v2235_v23 = vpop.permute.xlu0 %2234 }
0x2d3c   :  { %v2241_v50 = vmul.f32 %v4024_v8, %v2235_v23 }
0x2d3e   :  { %3712 = vmatprep.mubr.msk.f32.mxu1 %vm85_vm0, %v2241_v50 }
0x2d3f   :  { %3713 = vmatmul.mubr.msk.f32.vlgmr.msra.gmra.mxu1 %vm85_vm0, %v2242_v17 }
0x2d40   :  { %3727 = vmatpush3.msra.mxu1 %v4678_v44  ;;  %3734 = vmatprep.mubr.msk.f32.mxu1 %vm4049_vm1, %v4048_v2 }
0x2d41   :  { %3728 = vmatprep.subr.mxu1 %v4048_v2 }
0x2d42   :  { %3729 = vmatpush3.msra.mxu1 %v4688_v51 }
0x2d43   :  { %3730 = vmatprep.subr.mxu1 %v4048_v2 }
0x2d44   :  { %3731 = vmatpush3.msra.mxu1 %v4700_v53 }
0x2d45   :  { %3732 = vmatprep.subr.mxu1 %v4048_v2 }
0x2d46   :  { %3733 = vmatpush3.msra.mxu1 %v4709_v41 }
0x2d47   :  { %3748 = vmatprep.subr.mxu1 %v4048_v2 }
0x2dff   :  { %v3714_v56 = vpop.f32.mrf.mxu1 }
0x2e00   :  { %v4748_v57 = vadd.f32 %v3714_v56, %v3326_v55 }
0x2e01   :  { %v2326_v58 = vpop.f32.mrf.mxu1 }
0x2e02   :  { %v4750_v59 = vadd.f32 %v3326_v55, %v2326_v58 }
0x2e04   :  { %v2409_v61 = vadd.f32 %v2405_v54, %v4750_v59 }
0x2e06   :  { %3960 = vtanh.f32 %v2409_v61  ;;  %v3329_v1 = vmul.f32 -1.442695, %v2409_v61 }
0x2e08   :  { %3962 = vpow2.f32 %v3329_v1 }
0x2e13   :  { %v3961_v0 = vpop.eup %3960 }
0x2e14   :  { %2419 = vrot.lane.b32.xlu1 %v3961_v0, %s4050_s3 }
0x2e15   :  { %v3963_v5 = vpop.eup %3962 }
0x2e16   :  { %v2413_v11 = vadd.f32 1.0, %v3963_v5 }
0x2e18   :  { %3964 = vrcp.f32 %v2413_v11 }
0x2e25   :  { %v3965_v12 = vpop.eup %3964 }
0x2e26   :  { %v2417_v13 = vmul.f32 0.0, %v3965_v12 }
0x2e86   :  { %v2420_v10 = vpop.permute.xlu1 %2419 }
0x2e87   :  { %v2422_v3 = vmul.f32 %v3965_v12, %v2420_v10 }
0x2e89   :  { %2424 = vrot.lane.b32.xlu0 %v2422_v3, %s4051_s27 }
0x2efb   :  { %v2425_v14 = vpop.permute.xlu0 %2424 }
0x2efc   :  { %v2427_v4 = vadd.f32 %v2425_v14, %v2417_v13 }
0x2efe   :  { %3966 = vtanh.f32 %v2427_v4  ;;  %v2521_v31 = vrot.slane %v2427_v4, 6 }
0x2f0b   :  { %v3967_v15 = vpop.eup %3966 }
0x2f0c   :  { %2430 = vrot.lane.b32.xlu1 %v3967_v15, %s4050_s3 }
0x2f7e   :  { %v2431_v7 = vpop.permute.xlu1 %2430 }
0x2f7f   :  { %v2433_v62 = vmul.f32 %v3965_v12, %v2431_v7 }
0x2f81   :  { %2435 = vrot.lane.b32.xlu0 %v2433_v62, %s4051_s27 }
0x2ff3   :  { %v2436_v24 = vpop.permute.xlu0 %2435 }
0x2ff4   :  { %3735 = vmatmul.mubr.msk.f32.vlgmr.msra.gmra.mxu1 %vm85_vm0, %v2436_v24 }
0x2ff5   :  { %3749 = vmatpush3.msra.mxu1 %v4678_v44  ;;  %3756 = vmatprep.mubr.msk.f32.mxu1 %vm4049_vm1, %v4048_v2 }
0x2ff6   :  { %3750 = vmatprep.subr.mxu1 %v4048_v2 }
0x2ff7   :  { %3751 = vmatpush3.msra.mxu1 %v4688_v51 }
0x2ff8   :  { %3752 = vmatprep.subr.mxu1 %v4048_v2 }
0x2ff9   :  { %3753 = vmatpush3.msra.mxu1 %v4700_v53 }
0x2ffa   :  { %3754 = vmatprep.subr.mxu1 %v4048_v2 }
0x2ffb   :  { %3755 = vmatpush3.msra.mxu1 %v4709_v41 }
0x2ffc   :  { %3770 = vmatprep.subr.mxu1 %v4048_v2 }
0x30b4   :  { %v2505_v18 = vpop.f32.mrf.mxu1 }
0x30b5   :  { %v2510_v20 = vrot.slane %v2505_v18, 6 }
0x30b6   :  { %v3736_v16 = vpop.f32.mrf.mxu1 }
0x30b7   :  { %v2512_v21 = vadd.f32 %v2510_v20, %v4750_v59 }
0x30b9   :  { %3968 = vtanh.f32 %v2512_v21  ;;  %v3331_v27 = vmul.f32 -1.442695, %v2512_v21 }
0x30bb   :  { %3970 = vpow2.f32 %v3331_v27 }
0x30c6   :  { %v3969_v63 = vpop.eup %3968 }
0x30c7   :  { %2525 = vrot.lane.b32.xlu1 %v3969_v63, %s4050_s3 }
0x30c8   :  { %v3971_v29 = vpop.eup %3970 }
0x30c9   :  { %v2516_v6 = vadd.f32 1.0, %v3971_v29 }
0x30cb   :  { %3972 = vrcp.f32 %v2516_v6 }
0x30d8   :  { %v3973_v22 = vpop.eup %3972 }
0x30d9   :  { %v2523_v32 = vmul.f32 %v3973_v22, %v2521_v31 }
0x3139   :  { %v2526_v26 = vpop.permute.xlu1 %2525 }
0x313a   :  { %v2528_v28 = vmul.f32 %v3973_v22, %v2526_v26 }
0x313c   :  { %2530 = vrot.lane.b32.xlu0 %v2528_v28, %s4051_s27 }
0x31ae   :  { %v2531_v33 = vpop.permute.xlu0 %2530 }
0x31af   :  { %v2533_v34 = vadd.f32 %v2531_v33, %v2523_v32 }
0x31b1   :  { %3974 = vtanh.f32 %v2533_v34  ;;  %v2628_v8 = vrot.slane %v2533_v34, 6 }
0x31be   :  { %v3975_v35 = vpop.eup %3974 }
0x31bf   :  { %2536 = vrot.lane.b32.xlu1 %v3975_v35, %s4050_s3 }
0x3231   :  { %v2537_v36 = vpop.permute.xlu1 %2536 }
0x3232   :  { %v2539_v43 = vmul.f32 %v3973_v22, %v2537_v36 }
0x3234   :  { %v2541_v37 = vrot.slane %v2539_v43, 2 }
0x3236   :  { %2542 = vrot.lane.b32.xlu0 %v2541_v37, %s4051_s27 }
0x32a8   :  { %v2543_v38 = vpop.permute.xlu0 %2542 }
0x32a9   :  { %3746 = vmatmul.mubr.msk.f32.vlgmr.msra.gmra.mxu0 %vm85_vm0, %v2543_v38 }
0x32aa   :  { %3760 = vmatpush3.msra.mxu0 %v4678_v44  ;;  %3767 = vmatprep.mubr.msk.f32.mxu0 %vm4049_vm1, %v4048_v2 }
0x32ab   :  { %3761 = vmatprep.subr.mxu0 %v4048_v2 }
0x32ac   :  { %3762 = vmatpush3.msra.mxu0 %v4688_v51 }
0x32ad   :  { %3763 = vmatprep.subr.mxu0 %v4048_v2 }
0x32ae   :  { %3764 = vmatpush3.msra.mxu0 %v4700_v53 }
0x32af   :  { %3765 = vmatprep.subr.mxu0 %v4048_v2 }
0x32b0   :  { %3766 = vmatpush3.msra.mxu0 %v4709_v41 }
0x32b1   :  { %3781 = vmatprep.subr.mxu0 %v4048_v2 }
0x3369   :  { %v2612_v39 = vpop.f32.mrf.mxu0 }
0x336a   :  { %v2617_v40 = vrot.slane %v2612_v39, 4 }
0x336b   :  { %v3747_v42 = vpop.f32.mrf.mxu0 }
0x336c   :  { %v2619_v45 = vadd.f32 %v2617_v40, %v4750_v59 }
0x336e   :  { %3976 = vtanh.f32 %v2619_v45  ;;  %v3333_v30 = vmul.f32 -1.442695, %v2619_v45 }
0x3370   :  { %3978 = vpow2.f32 %v3333_v30 }
0x337b   :  { %v3977_v46 = vpop.eup %3976 }
0x337c   :  { %2632 = vrot.lane.b32.xlu1 %v3977_v46, %s4050_s3 }
0x337d   :  { %v3979_v25 = vpop.eup %3978 }
0x337e   :  { %v2623_v49 = vadd.f32 1.0, %v3979_v25 }
0x3380   :  { %3980 = vrcp.f32 %v2623_v49 }
0x338d   :  { %v3981_v48 = vpop.eup %3980 }
0x338e   :  { %v2630_v50 = vmul.f32 %v3981_v48, %v2628_v8 }
0x33ee   :  { %v2633_v60 = vpop.permute.xlu1 %2632 }
0x33ef   :  { %v2635_v23 = vmul.f32 %v3981_v48, %v2633_v60 }
0x33f1   :  { %2637 = vrot.lane.b32.xlu0 %v2635_v23, %s4051_s27 }
0x3463   :  { %v2638_v9 = vpop.permute.xlu0 %2637 }
0x3464   :  { %v2640_v17 = vadd.f32 %v2638_v9, %v2630_v50 }
0x3466   :  { %3982 = vtanh.f32 %v2640_v17  ;;  %v2735_v15 = vrot.slane %v2640_v17, 6 }
0x3473   :  { %v3983_v54 = vpop.eup %3982 }
0x3474   :  { %2643 = vrot.lane.b32.xlu1 %v3983_v54, %s4050_s3 }
0x34e6   :  { %v2644_v19 = vpop.permute.xlu1 %2643 }
0x34e7   :  { %v2646_v55 = vmul.f32 %v3981_v48, %v2644_v19 }
0x34e9   :  { %v2648_v56 = vrot.slane %v2646_v55, 4 }
0x34eb   :  { %2649 = vrot.lane.b32.xlu0 %v2648_v56, %s4051_s27 }
0x355d   :  { %v2650_v58 = vpop.permute.xlu0 %2649 }
0x355e   :  { %3757 = vmatmul.mubr.msk.f32.vlgmr.msra.gmra.mxu1 %vm85_vm0, %v2650_v58 }
0x355f   :  { %3771 = vmatpush3.msra.mxu1 %v4678_v44  ;;  %3778 = vmatprep.mubr.msk.f32.mxu1 %vm4049_vm1, %v4048_v2 }
0x3560   :  { %3772 = vmatprep.subr.mxu1 %v4048_v2 }
0x3561   :  { %3773 = vmatpush3.msra.mxu1 %v4688_v51 }
0x3562   :  { %3774 = vmatprep.subr.mxu1 %v4048_v2 }
0x3563   :  { %3775 = vmatpush3.msra.mxu1 %v4700_v53 }
0x3564   :  { %3776 = vmatprep.subr.mxu1 %v4048_v2 }
0x3565   :  { %3777 = vmatpush3.msra.mxu1 %v4709_v41 }
0x3566   :  { %3792 = vmatprep.subr.mxu1 %v4048_v2 }
0x361e   :  { %v2719_v61 = vpop.f32.mrf.mxu1 }
0x361f   :  { %v2724_v0 = vrot.slane %v2719_v61, 2 }
0x3620   :  { %v3758_v1 = vpop.f32.mrf.mxu1 }
0x3621   :  { %v2726_v5 = vadd.f32 %v2724_v0, %v4750_v59 }
0x3623   :  { %3984 = vtanh.f32 %v2726_v5  ;;  %v3335_v12 = vmul.f32 -1.442695, %v2726_v5 }
0x3625   :  { %3986 = vpow2.f32 %v3335_v12 }
0x3630   :  { %v3985_v11 = vpop.eup %3984 }
0x3631   :  { %2739 = vrot.lane.b32.xlu1 %v3985_v11, %s4050_s3 }
0x3632   :  { %v3987_v10 = vpop.eup %3986 }
0x3633   :  { %v2730_v3 = vadd.f32 1.0, %v3987_v10 }
0x3635   :  { %3988 = vrcp.f32 %v2730_v3 }
0x3642   :  { %v3989_v13 = vpop.eup %3988 }
0x3643   :  { %v2737_v7 = vmul.f32 %v3989_v13, %v2735_v15 }
0x36a3   :  { %v2740_v14 = vpop.permute.xlu1 %2739 }
0x36a4   :  { %v2742_v4 = vmul.f32 %v3989_v13, %v2740_v14 }
0x36a6   :  { %2744 = vrot.lane.b32.xlu0 %v2742_v4, %s4051_s27 }
0x3718   :  { %v2745_v62 = vpop.permute.xlu0 %2744 }
0x3719   :  { %v2747_v24 = vadd.f32 %v2745_v62, %v2737_v7 }
0x371b   :  { %3990 = vtanh.f32 %v2747_v24  ;;  %v2839_v34 = vrot.slane %v2747_v24, 6 }
0x3728   :  { %v3991_v59 = vpop.eup %3990 }
0x3729   :  { %2750 = vrot.lane.b32.xlu1 %v3991_v59, %s4050_s3 }
0x379b   :  { %v2751_v18 = vpop.permute.xlu1 %2750 }
0x379c   :  { %v2753_v20 = vmul.f32 %v3989_v13, %v2751_v18 }
0x379e   :  { %v2755_v16 = vrot.slane %v2753_v20, 6 }
0x37a0   :  { %2756 = vrot.lane.b32.xlu0 %v2755_v16, %s4051_s27 }
0x3812   :  { %v2757_v21 = vpop.permute.xlu0 %2756 }
0x3813   :  { %3768 = vmatmul.mubr.msk.f32.vlgmr.msra.gmra.mxu0 %vm85_vm0, %v2757_v21 }
0x3814   :  { %3782 = vmatpush3.msra.mxu0 %v4678_v44  ;;  %3789 = vmatprep.mubr.msk.f32.mxu0 %vm4049_vm1, %v4048_v2 }
0x3815   :  { %3783 = vmatprep.subr.mxu0 %v4048_v2 }
0x3816   :  { %3784 = vmatpush3.msra.mxu0 %v4688_v51 }
0x3817   :  { %3785 = vmatprep.subr.mxu0 %v4048_v2 }
0x3818   :  { %3786 = vmatpush3.msra.mxu0 %v4700_v53 }
0x3819   :  { %3787 = vmatprep.subr.mxu0 %v4048_v2 }
0x381a   :  { %3788 = vmatpush3.msra.mxu0 %v4709_v41 }
0x381b   :  { %3803 = vmatprep.subr.mxu0 %v4048_v2 }
0x38d3   :  { %v2826_v63 = vpop.f32.mrf.mxu0 }
0x38d4   :  { %v2830_v27 = vadd.f32 %v2826_v63, %v4748_v57 }
0x38d5   :  { %v3769_v29 = vpop.f32.mrf.mxu0 }
0x38d6   :  { %3992 = vtanh.f32 %v2830_v27  ;;  %v3337_v22 = vmul.f32 -1.442695, %v2830_v27 }
0x38d8   :  { %3994 = vpow2.f32 %v3337_v22 }
0x38e3   :  { %v3993_v6 = vpop.eup %3992 }
0x38e4   :  { %2843 = vrot.lane.b32.xlu1 %v3993_v6, %s4050_s3 }
0x38e5   :  { %v3995_v26 = vpop.eup %3994 }
0x38e6   :  { %v2834_v28 = vadd.f32 1.0, %v3995_v26 }
0x38e8   :  { %3996 = vrcp.f32 %v2834_v28 }
0x38f5   :  { %v3997_v31 = vpop.eup %3996 }
0x38f6   :  { %v2841_v35 = vmul.f32 %v3997_v31, %v2839_v34 }
0x3956   :  { %v2844_v32 = vpop.permute.xlu1 %2843 }
0x3957   :  { %v2846_v33 = vmul.f32 %v3997_v31, %v2844_v32 }
0x3959   :  { %2848 = vrot.lane.b32.xlu0 %v2846_v33, %s4051_s27 }
0x39cb   :  { %v2849_v36 = vpop.permute.xlu0 %2848 }
0x39cc   :  { %v2851_v43 = vadd.f32 %v2849_v36, %v2841_v35 }
0x39ce   :  { %3998 = vtanh.f32 %v2851_v43 }
0x39db   :  { %v3999_v37 = vpop.eup %3998 }
0x39dc   :  { %2854 = vrot.lane.b32.xlu1 %v3999_v37, %s4050_s3  ;;  %v3179_v37 = vld [vmem:[%s4893_s13 + $0x8] sm:$0xff] }
0x3a4e   :  { %v2855_v38 = vpop.permute.xlu1 %2854 }
0x3a4f   :  { %v2857_v39 = vmul.f32 %v3997_v31, %v2855_v38 }
0x3a51   :  { %2859 = vrot.lane.b32.xlu0 %v2857_v39, %s4051_s27  ;;  %v3178_v39 = vld [vmem:[%s4893_s13] sm:$0xff] }
0x3ac3   :  { %v2860_v40 = vpop.permute.xlu0 %2859 }
0x3ac4   :  { %3779 = vmatmul.mubr.msk.f32.vlgmr.msra.gmra.mxu1 %vm85_vm0, %v2860_v40 }
0x3ac5   :  { %3793 = vmatpush3.msra.mxu1 %v4678_v44  ;;  %3800 = vmatprep.mubr.msk.f32.mxu1 %vm4049_vm1, %v4048_v2 }
0x3ac6   :  { %3794 = vmatprep.subr.mxu1 %v4048_v2 }
0x3ac7   :  { %3795 = vmatpush3.msra.mxu1 %v4688_v51 }
0x3ac8   :  { %3796 = vmatprep.subr.mxu1 %v4048_v2 }
0x3ac9   :  { %3797 = vmatpush3.msra.mxu1 %v4700_v53 }
0x3aca   :  { %3798 = vmatprep.subr.mxu1 %v4048_v2 }
0x3acb   :  { %3799 = vmatpush3.msra.mxu1 %v4709_v41  ;;  %v2945_v41 = vrot.slane %v2851_v43, 6  ;;  %v3180_v43 = vld [vmem:[%s4893_s13 + $0x10] sm:$0xff] }
0x3b84   :  { %v2929_v42 = vpop.f32.mrf.mxu1 }
0x3b85   :  { %v2934_v45 = vrot.slane %v2929_v42, 6 }
0x3b86   :  { %v3780_v46 = vpop.f32.mrf.mxu1 }
0x3b87   :  { %v2936_v44 = vadd.f32 %v2934_v45, %v4748_v57 }
0x3b89   :  { %4000 = vtanh.f32 %v2936_v44  ;;  %v3339_v25 = vmul.f32 -1.442695, %v2936_v44 }
0x3b8b   :  { %4002 = vpow2.f32 %v3339_v25 }
0x3b96   :  { %v4001_v30 = vpop.eup %4000 }
0x3b97   :  { %2949 = vrot.lane.b32.xlu1 %v4001_v30, %s4050_s3 }
0x3b98   :  { %v4003_v51 = vpop.eup %4002 }
0x3b99   :  { %v2940_v49 = vadd.f32 1.0, %v4003_v51 }
0x3b9b   :  { %4004 = vrcp.f32 %v2940_v49 }
0x3ba8   :  { %v4005_v48 = vpop.eup %4004 }
0x3ba9   :  { %v2947_v23 = vmul.f32 %v4005_v48, %v2945_v41 }
0x3c09   :  { %v2950_v53 = vpop.permute.xlu1 %2949 }
0x3c0a   :  { %v2952_v60 = vmul.f32 %v4005_v48, %v2950_v53 }
0x3c0c   :  { %2954 = vrot.lane.b32.xlu0 %v2952_v60, %s4051_s27 }
0x3c7e   :  { %v2955_v8 = vpop.permute.xlu0 %2954 }
0x3c7f   :  { %v2957_v50 = vadd.f32 %v2955_v8, %v2947_v23 }
0x3c81   :  { %4006 = vtanh.f32 %v2957_v50  ;;  %v3052_v14 = vrot.slane %v2957_v50, 6 }
0x3c8e   :  { %v4007_v9 = vpop.eup %4006 }
0x3c8f   :  { %2960 = vrot.lane.b32.xlu1 %v4007_v9, %s4050_s3 }
0x3d01   :  { %v2961_v17 = vpop.permute.xlu1 %2960 }
0x3d02   :  { %v2963_v54 = vmul.f32 %v4005_v48, %v2961_v17 }
0x3d04   :  { %v2965_v19 = vrot.slane %v2963_v54, 2 }
0x3d06   :  { %2966 = vrot.lane.b32.xlu0 %v2965_v19, %s4051_s27 }
0x3d78   :  { %v2967_v55 = vpop.permute.xlu0 %2966 }
0x3d79   :  { %3790 = vmatmul.mubr.msk.f32.vlgmr.msra.gmra.mxu0 %vm85_vm0, %v2967_v55 }
0x3d7a   :  { %3811 = vmatprep.mubr.msk.f32.mxu0 %vm4049_vm1, %v4048_v2 }
0x3e39   :  { %v3036_v56 = vpop.f32.mrf.mxu0 }
0x3e3a   :  { %v3041_v58 = vrot.slane %v3036_v56, 4 }
0x3e3b   :  { %v3791_v61 = vpop.f32.mrf.mxu0 }
0x3e3c   :  { %v3043_v0 = vadd.f32 %v3041_v58, %v4748_v57 }
0x3e3e   :  { %4008 = vtanh.f32 %v3043_v0  ;;  %v3341_v5 = vmul.f32 -1.442695, %v3043_v0 }
0x3e40   :  { %4010 = vpow2.f32 %v3341_v5 }
0x3e4b   :  { %v4009_v1 = vpop.eup %4008 }
0x3e4c   :  { %3056 = vrot.lane.b32.xlu1 %v4009_v1, %s4050_s3 }
0x3e4d   :  { %v4011_v11 = vpop.eup %4010 }
0x3e4e   :  { %v3047_v12 = vadd.f32 1.0, %v4011_v11 }
0x3e50   :  { %4012 = vrcp.f32 %v3047_v12 }
0x3e5d   :  { %v4013_v10 = vpop.eup %4012 }
0x3e5e   :  { %v3054_v4 = vmul.f32 %v4013_v10, %v3052_v14 }
0x3ebe   :  { %v3057_v3 = vpop.permute.xlu1 %3056 }
0x3ebf   :  { %v3059_v13 = vmul.f32 %v4013_v10, %v3057_v3 }
0x3ec1   :  { %3061 = vrot.lane.b32.xlu0 %v3059_v13, %s4051_s27 }
0x3f33   :  { %v3062_v15 = vpop.permute.xlu0 %3061 }
0x3f34   :  { %v3064_v7 = vadd.f32 %v3062_v15, %v3054_v4 }
0x3f36   :  { %4014 = vtanh.f32 %v3064_v7  ;;  %v3159_v33 = vrot.slane %v3064_v7, 6 }
0x3f43   :  { %v4015_v62 = vpop.eup %4014 }
0x3f44   :  { %3067 = vrot.lane.b32.xlu1 %v4015_v62, %s4050_s3 }
0x3fb6   :  { %v3068_v24 = vpop.permute.xlu1 %3067 }
0x3fb7   :  { %v3070_v59 = vmul.f32 %v4013_v10, %v3068_v24 }
0x3fb9   :  { %v3072_v18 = vrot.slane %v3070_v59, 4 }
0x3fbb   :  { %3073 = vrot.lane.b32.xlu0 %v3072_v18, %s4051_s27 }
0x402d   :  { %v3074_v20 = vpop.permute.xlu0 %3073 }
0x402e   :  { %3801 = vmatmul.mubr.msk.f32.vlgmr.msra.gmra.mxu1 %vm85_vm0, %v3074_v20 }
0x40ee   :  { %v3143_v16 = vpop.f32.mrf.mxu1 }
0x40ef   :  { %v3148_v21 = vrot.slane %v3143_v16, 2 }
0x40f0   :  { %v3802_v63 = vpop.f32.mrf.mxu1 }
0x40f1   :  { %v3150_v27 = vadd.f32 %v3148_v21, %v4748_v57  ;;  %v3181_v57 = vld [vmem:[%s4893_s13 + $0x18] sm:$0xff] }
0x40f2   :  { %3804 = vmatpush3.msra.mxu0 %v3181_v57 }
0x40f3   :  { %4016 = vtanh.f32 %v3150_v27  ;;  %v3343_v6 = vmul.f32 -1.442695, %v3150_v27  ;;  %3805 = vmatprep.subr.mxu0 %v4048_v2 }
0x40f4   :  { %3806 = vmatpush3.msra.mxu0 %v3180_v43 }
0x40f5   :  { %4018 = vpow2.f32 %v3343_v6  ;;  %3807 = vmatprep.subr.mxu0 %v4048_v2 }
0x40f6   :  { %3808 = vmatpush3.msra.mxu0 %v3179_v37 }
0x40f7   :  { %3809 = vmatprep.subr.mxu0 %v4048_v2 }
0x40f8   :  { %3810 = vmatpush3.msra.mxu0 %v3178_v39 }
0x4100   :  { %v4017_v29 = vpop.eup %4016 }
0x4101   :  { %3163 = vrot.lane.b32.xlu1 %v4017_v29, %s4050_s3 }
0x4102   :  { %v4019_v22 = vpop.eup %4018 }
0x4103   :  { %v3154_v26 = vadd.f32 1.0, %v4019_v22 }
0x4105   :  { %4020 = vrcp.f32 %v3154_v26 }
0x4112   :  { %v4021_v28 = vpop.eup %4020 }
0x4113   :  { %v3161_v34 = vmul.f32 %v4021_v28, %v3159_v33 }
0x4173   :  { %v3164_v31 = vpop.permute.xlu1 %3163 }
0x4174   :  { %v3166_v32 = vmul.f32 %v4021_v28, %v3164_v31 }
0x4176   :  { %3168 = vrot.lane.b32.xlu0 %v3166_v32, %s4051_s27 }
0x41e8   :  { %v3169_v35 = vpop.permute.xlu0 %3168 }
0x41e9   :  { %v3171_v36 = vadd.f32 %v3169_v35, %v3161_v34 }
0x41eb   :  { %4022 = vtanh.f32 %v3171_v36 }
0x41f8   :  { %v4023_v38 = vpop.eup %4022 }
0x41f9   :  { %3174 = vrot.lane.b32.xlu1 %v4023_v38, %s4050_s3 }
0x41fd   :  { %2224 = vrot.lane.b32.xlu1 %v4703_v47, %s4054_s28  ;;  %v3344_v47 = vld [vmem:[%s4894_s14] ss:$0 sm:$0xff] }
0x426b   :  { %v3175_v40 = vpop.permute.xlu1 %3174 }
0x426c   :  { %v3177_v42 = vmul.f32 %v4021_v28, %v3175_v40 }
0x426e   :  { %v3190_v45 = vrot.slane %v3177_v42, 6 }
0x426f   :  { %v2225_v46 = vpop.permute.xlu1 %2224 }
0x4270   :  { %2231 = vst.msk [vmem:[%s4896_s16] sm:$0xff] %vm2230_vm7, %v2225_v46  ;;  %3191 = vrot.lane.b32.xlu0 %v3190_v45, %s4051_s27  ;;  %s4026_s27 = scalar_lea.vmem %s3274_s19, 32 }
0x4271   :  { %p4027_p0 = scmp.ne.s32.totalorder %s3274_s19, %s4026_s27  ;;  %p4032_p2 = scmp.lt.s32.totalorder %s4026_s27, %s4026_s27 }
0x4273   :  { %p4033_p3 = por %p4032_p2, %p4031_p1 }
0x4274   :  { %2226 = vrot.lane.b32.xlu0 %v4694_v52, %s4054_s28 }
0x4275   :  { %p4034_p4 = pnand %p4033_p3, %p4027_p0 }
0x42e2   :  { %v3192_v44 = vpop.permute.xlu0 %3191 }
0x42e3   :  { %3812 = vmatmul.mubr.msk.f32.vlgmr.msra.gmra.mxu0 %vm85_vm0, %v3192_v44 }
0x42e6   :  { %v2227_v2 = vpop.permute.xlu0 %2226 }
0x42e7   :  { %2232 = vst.msk [vmem:[%s4896_s16 + $0x8] sm:$0xff] %vm2230_vm7, %v2227_v2 }
0x43a3   :  { %v3261_v30 = vpop.f32.mrf.mxu0 }
0x43a4   :  { %v3262_v25 = vadd.f32 %v3344_v47, %v3261_v30 }
0x43a5   :  { %v3813_v51 = vpop.f32.mrf.mxu0 }
0x43a6   :  { %3266 = vst.msk [vmem:[#allocation2] sm:$0x3] %vm3265_vm8, %v3262_v25 }
0x43a7   :  { %4037 = shalt.err (!%p4034_p4)
}
0x43a8   :  { %3276 = dma.vmem_to_hbm [thread:$0]  %s3274_s19, 32, %s4895_s15, [#allocation3]  }
0x43a9   :  { %4046 = dma.done.wait [#allocation3], 32  }
0x43aa   :  { %4047 = vsyncadd [#allocation3], 4294967264 }
0x43ab   :  { %3284 = vsyncpa [#allocation3], 1 }

</bundles_post_ra>
